<compile_context>
chip_gen: v6e
topology: v6e:2x2x1
jax: 0.10.0
libtpu: 0.0.40
codegen_flags: <defaults>
</compile_context>

<pallas_src>
import functools

import jax
import jax.numpy as jnp
from jax.experimental import pallas as pl
from jax.experimental.pallas import tpu as pltpu

KH = KW = 3          # conv kernel size
S1 = 2               # conv1 stride
LN_EPS = 1e-5

_VMEM = pl.BlockSpec(memory_space=pltpu.MemorySpace.VMEM)

_PARAM_ORDER = ("t1", "cb1", "t2", "cb2", "fc_w", "fc_b", "ln_g", "ln_b",
                "hw0", "hb0", "hw1", "hb1", "hw2", "hb2")


# ----------------------------- Pallas kernel --------------------------------


def _critic_kernel(x_ref, t1_ref, cb1_ref, t2_ref, cb2_ref,
                   wf_ref, bf_ref, g_ref, beta_ref,
                   hw0_ref, hb0_ref, hw1_ref, hb1_ref, hw2_ref, hb2_ref,
                   q1_ref, q2_ref):
    """Entire Critic forward, fully VMEM-resident.

    x_ref   : [B, H*W*Cin]            NHWC-flattened observation
    t1_ref  : [H*W*Cin, Ho1*Wo1*C1]   conv1 as Toeplitz matmul
    t2_ref  : [Ho1*Wo1*C1, Ho2*Wo2*C2] conv2 as Toeplitz matmul
    cb*_ref : [1, *]                  per-position-tiled conv biases
    wf/bf   : fc;  g/beta : LayerNorm affine
    hw0/hw1/hw2, hb0/hb1/hb2 : both Q-head MLPs merged along lanes
    q1/q2   : [B, A] outputs
    """
    a = q1_ref.shape[-1]
    f32 = jnp.float32

    # encoder convs (dense Toeplitz matmuls; activations never leave VMEM)
    h = jnp.dot(x_ref[...], t1_ref[...], preferred_element_type=f32) + cb1_ref[...]
    h = jnp.maximum(h, 0.0)
    h = jnp.dot(h, t2_ref[...], preferred_element_type=f32) + cb2_ref[...]
    h = jnp.maximum(h, 0.0)                       # [B, Ho2*Wo2*C2] lane-dense

    # fc -> LayerNorm -> tanh
    y = jnp.dot(h, wf_ref[...], preferred_element_type=f32) + bf_ref[...]
    mu = jnp.mean(y, axis=-1, keepdims=True)
    var = jnp.mean((y - mu) * (y - mu), axis=-1, keepdims=True)
    z = jnp.tanh((y - mu) * jax.lax.rsqrt(var + LN_EPS) * g_ref[...] + beta_ref[...])

    # both Q-head MLPs in one lane-merged stack (layer0 concat, 1/2 block-diag)
    q = jnp.dot(z, hw0_ref[...], preferred_element_type=f32) + hb0_ref[...]
    q = jnp.maximum(q, 0.0)
    q = jnp.dot(q, hw1_ref[...], preferred_element_type=f32) + hb1_ref[...]
    q = jnp.maximum(q, 0.0)
    q = jnp.dot(q, hw2_ref[...], preferred_element_type=f32) + hb2_ref[...]  # [B, 2A]

    q1_ref[...] = q[:, :a].astype(q1_ref.dtype)
    q2_ref[...] = q[:, a:].astype(q2_ref.dtype)


# ------------------------------ forward --------------------------------------


@functools.partial(jax.jit, static_argnames=("detach",))
def critic_forward(params, x, detach=False):
    # TODO(synk): `detach` only affects the autodiff graph in PyTorch; pallas_call
    # has no automatic VJP (training through this kernel needs a custom_vjp pair),
    # so it is a no-op for this forward pass.
    del detach
    b = x.shape[0]
    xf = jnp.transpose(x, (0, 2, 3, 1)).reshape(b, -1)   # single tiny NCHW->NHWC op

    a = params["hb2"].shape[-1] // 2
    hd = params["fc_w"].shape[1]
    d_in, d1 = params["t1"].shape
    d2 = params["t2"].shape[1]

    flops = 2 * b * (d_in * d1 + d1 * d2 + d2 * hd
                     + hd * 2 * hd + 2 * hd * 2 * hd + 2 * hd * 2 * a)
    transcendentals = b * (hd + 1)                       # tanh + rsqrt
    nbytes = 4 * (xf.size + sum(params[k].size for k in _PARAM_ORDER) + 2 * b * a)

    q1, q2 = pl.pallas_call(
        _critic_kernel,
        out_shape=(jax.ShapeDtypeStruct((b, a), jnp.float32),
                   jax.ShapeDtypeStruct((b, a), jnp.float32)),
        in_specs=[_VMEM] * (1 + len(_PARAM_ORDER)),
        out_specs=(_VMEM, _VMEM),
        cost_estimate=pl.CostEstimate(flops=flops, transcendentals=transcendentals,
                                      bytes_accessed=nbytes),
    )(xf, *[params[k] for k in _PARAM_ORDER])
    return q1, q2


# --------------------------- parameter prep ---------------------------------


def _uniform(key, shape, bound):
    return jax.random.uniform(key, shape, jnp.float32, -bound, bound)


def _conv_toeplitz(w_hwio, h, w, stride):
    """Valid-conv weight [kh,kw,Cin,Cout] -> dense matmul [h*w*Cin, ho*wo*Cout].

    Rows are NHWC-flattened input positions (i, j, cin); cols are NHWC-flattened
    output positions (io, jo, cout).  Built once at init time.
    """
    kh, kw, cin, cout = w_hwio.shape
    ho = (h - kh) // stride + 1
    wo = (w - kw) // stride + 1
    iy = jnp.arange(h)[None, :, None]
    oy = jnp.arange(ho)[None, None, :]
    dy = jnp.arange(kh)[:, None, None]
    ey = (iy == stride * oy + dy).astype(w_hwio.dtype)          # [kh, h, ho]
    ix = jnp.arange(w)[None, :, None]
    ox = jnp.arange(wo)[None, None, :]
    dx = jnp.arange(kw)[:, None, None]
    ex = (ix == stride * ox + dx).astype(w_hwio.dtype)          # [kw, w, wo]
    t = jnp.einsum("yio,xjp,yxcd->ijcopd", ey, ex, w_hwio)      # [h,w,cin,ho,wo,cout]
    return t.reshape(h * w * cin, ho * wo * cout), ho, wo


def _block_diag(a, b):
    ra, ca = a.shape
    rb, cb = b.shape
    top = jnp.concatenate([a, jnp.zeros((ra, cb), a.dtype)], axis=1)
    bot = jnp.concatenate([jnp.zeros((rb, ca), b.dtype), b], axis=1)
    return jnp.concatenate([top, bot], axis=0)


def init_params(key, in_channels, hidden_size, actions_dim, conv_channels, h, w):
    ho1 = (h - KH) // S1 + 1
    wo1 = (w - KW) // S1 + 1
    ho2 = ho1 - KH + 1
    wo2 = wo1 - KW + 1
    flat_dim = ho2 * wo2 * conv_channels

    ks = jax.random.split(key, 18)
    # ---- raw (PyTorch-equivalent) weights ----
    bnd = 1.0 / (in_channels * KH * KW) ** 0.5
    w1 = _uniform(ks[0], (KH, KW, in_channels, conv_channels), bnd)     # HWIO
    cb1 = _uniform(ks[1], (conv_channels,), bnd)
    bnd = 1.0 / (conv_channels * KH * KW) ** 0.5
    w2 = _uniform(ks[2], (KH, KW, conv_channels, conv_channels), bnd)   # HWIO
    cb2 = _uniform(ks[3], (conv_channels,), bnd)
    bnd = 1.0 / flat_dim ** 0.5
    fc_w = _uniform(ks[4], (flat_dim, hidden_size), bnd)   # rows in NHWC (i,j,c) order
    fc_b = _uniform(ks[5], (hidden_size,), bnd)
    bnd = 1.0 / hidden_size ** 0.5
    qw0 = [_uniform(ks[6 + i], (hidden_size, hidden_size), bnd) for i in range(2)]
    qb0 = [_uniform(ks[8 + i], (hidden_size,), bnd) for i in range(2)]
    qw1 = [_uniform(ks[10 + i], (hidden_size, hidden_size), bnd) for i in range(2)]
    qb1 = [_uniform(ks[12 + i], (hidden_size,), bnd) for i in range(2)]
    qw2 = [_uniform(ks[14 + i], (hidden_size, actions_dim), bnd) for i in range(2)]
    qb2 = [_uniform(ks[16 + i], (actions_dim,), bnd) for i in range(2)]

    # ---- kernel-ready (preprocessed once, off the forward path) ----
    p = {}
    p["t1"], _, _ = _conv_toeplitz(w1, h, w, S1)                 # [h*w*Cin, ho1*wo1*C1]
    p["cb1"] = jnp.tile(cb1, ho1 * wo1).reshape(1, -1)
    p["t2"], _, _ = _conv_toeplitz(w2, ho1, wo1, 1)              # [ho1*wo1*C1, flat_dim]
    p["cb2"] = jnp.tile(cb2, ho2 * wo2).reshape(1, -1)
    p["fc_w"] = fc_w
    p["fc_b"] = fc_b.reshape(1, -1)
    p["ln_g"] = jnp.ones((1, hidden_size), jnp.float32)
    p["ln_b"] = jnp.zeros((1, hidden_size), jnp.float32)
    # Q1/Q2 merged along lanes: layer0 concat, layers 1/2 block-diagonal
    p["hw0"] = jnp.concatenate(qw0, axis=1)                      # [hd, 2hd]
    p["hb0"] = jnp.concatenate(qb0, axis=0).reshape(1, -1)
    p["hw1"] = _block_diag(qw1[0], qw1[1])                       # [2hd, 2hd]
    p["hb1"] = jnp.concatenate(qb1, axis=0).reshape(1, -1)
    p["hw2"] = _block_diag(qw2[0], qw2[1])                       # [2hd, 2A]
    p["hb2"] = jnp.concatenate(qb2, axis=0).reshape(1, -1)
    return p


# ------------------------------- main ----------------------------------------


if __name__ == "__main__":
    B, C, H, W = 2, 4, 16, 16      # small synthetic observation (NCHW)
    hidden_size = 32
    actions_dim = 6
    conv_channels = 16

    key = jax.random.PRNGKey(0)
    k_params, k_x = jax.random.split(key)

    params = init_params(k_params, C, hidden_size, actions_dim, conv_channels, H, W)
    x = jax.random.normal(k_x, (B, C, H, W), jnp.float32)

    q1, q2 = critic_forward(params, x)
    jax.block_until_ready((q1, q2))

    assert q1.shape == (B, actions_dim) and q2.shape == (B, actions_dim)
    assert bool(jnp.all(jnp.isfinite(q1))) and bool(jnp.all(jnp.isfinite(q2)))
    print("KERNEL_OK")
</pallas_src>

<mosaic_0001>
module attributes {stable_mosaic.version = 11 : i64} {
  func.func @_critic_kernel(%arg0: memref<2x1024xf32, #tpu.memory_space<vmem>>, %arg1: memref<1024x784xf32, #tpu.memory_space<vmem>>, %arg2: memref<1x784xf32, #tpu.memory_space<vmem>>, %arg3: memref<784x400xf32, #tpu.memory_space<vmem>>, %arg4: memref<1x400xf32, #tpu.memory_space<vmem>>, %arg5: memref<400x32xf32, #tpu.memory_space<vmem>>, %arg6: memref<1x32xf32, #tpu.memory_space<vmem>>, %arg7: memref<1x32xf32, #tpu.memory_space<vmem>>, %arg8: memref<1x32xf32, #tpu.memory_space<vmem>>, %arg9: memref<32x64xf32, #tpu.memory_space<vmem>>, %arg10: memref<1x64xf32, #tpu.memory_space<vmem>>, %arg11: memref<64x64xf32, #tpu.memory_space<vmem>>, %arg12: memref<1x64xf32, #tpu.memory_space<vmem>>, %arg13: memref<64x12xf32, #tpu.memory_space<vmem>>, %arg14: memref<1x12xf32, #tpu.memory_space<vmem>>, %arg15: memref<2x6xf32, #tpu.memory_space<vmem>>, %arg16: memref<2x6xf32, #tpu.memory_space<vmem>>) attributes {dimension_semantics = [], scalar_prefetch = 0 : i64, scratch_operands = 0 : i64, tpu.core_type = #tpu.core_type<tc>} {
    %c0 = arith.constant 0 : index
    %c0_0 = arith.constant 0 : index
    %0 = vector.load %arg0[%c0, %c0_0] : memref<2x1024xf32, #tpu.memory_space<vmem>>, vector<2x1024xf32>
    %c0_1 = arith.constant 0 : index
    %c0_2 = arith.constant 0 : index
    %1 = vector.load %arg1[%c0_1, %c0_2] : memref<1024x784xf32, #tpu.memory_space<vmem>>, vector<1024x784xf32>
    %cst = arith.constant dense<0.000000e+00> : vector<2x784xf32>
    %2 = tpu.matmul %0, %1, %cst {dimension_numbers = #tpu.dot_dimension_numbers<[1], [0], [0], [1], [0, 0, 1, 1], [], []>} : vector<2x1024xf32>, vector<1024x784xf32>, vector<2x784xf32> -> vector<2x784xf32>
    %c0_3 = arith.constant 0 : index
    %c0_4 = arith.constant 0 : index
    %3 = vector.load %arg2[%c0_3, %c0_4] : memref<1x784xf32, #tpu.memory_space<vmem>>, vector<1x784xf32>
    %4 = vector.broadcast %3 : vector<1x784xf32> to vector<2x784xf32>
    %5 = arith.addf %2, %4 : vector<2x784xf32>
    %cst_5 = arith.constant 0.000000e+00 : f32
    %6 = vector.broadcast %cst_5 : f32 to vector<2x784xf32>
    %7 = arith.maximumf %5, %6 : vector<2x784xf32>
    %c0_6 = arith.constant 0 : index
    %c0_7 = arith.constant 0 : index
    %8 = vector.load %arg3[%c0_6, %c0_7] : memref<784x400xf32, #tpu.memory_space<vmem>>, vector<784x400xf32>
    %cst_8 = arith.constant dense<0.000000e+00> : vector<2x400xf32>
    %9 = tpu.matmul %7, %8, %cst_8 {dimension_numbers = #tpu.dot_dimension_numbers<[1], [0], [0], [1], [0, 0, 1, 1], [], []>} : vector<2x784xf32>, vector<784x400xf32>, vector<2x400xf32> -> vector<2x400xf32>
    %c0_9 = arith.constant 0 : index
    %c0_10 = arith.constant 0 : index
    %10 = vector.load %arg4[%c0_9, %c0_10] : memref<1x400xf32, #tpu.memory_space<vmem>>, vector<1x400xf32>
    %11 = vector.broadcast %10 : vector<1x400xf32> to vector<2x400xf32>
    %12 = arith.addf %9, %11 : vector<2x400xf32>
    %cst_11 = arith.constant 0.000000e+00 : f32
    %13 = vector.broadcast %cst_11 : f32 to vector<2x400xf32>
    %14 = arith.maximumf %12, %13 : vector<2x400xf32>
    %c0_12 = arith.constant 0 : index
    %c0_13 = arith.constant 0 : index
    %15 = vector.load %arg5[%c0_12, %c0_13] : memref<400x32xf32, #tpu.memory_space<vmem>>, vector<400x32xf32>
    %cst_14 = arith.constant dense<0.000000e+00> : vector<2x32xf32>
    %16 = tpu.matmul %14, %15, %cst_14 {dimension_numbers = #tpu.dot_dimension_numbers<[1], [0], [0], [1], [0, 0, 1, 1], [], []>} : vector<2x400xf32>, vector<400x32xf32>, vector<2x32xf32> -> vector<2x32xf32>
    %c0_15 = arith.constant 0 : index
    %c0_16 = arith.constant 0 : index
    %17 = vector.load %arg6[%c0_15, %c0_16] : memref<1x32xf32, #tpu.memory_space<vmem>>, vector<1x32xf32>
    %18 = vector.broadcast %17 : vector<1x32xf32> to vector<2x32xf32>
    %19 = arith.addf %16, %18 : vector<2x32xf32>
    %cst_17 = arith.constant dense<0.000000e+00> : vector<2xf32>
    %20 = vector.multi_reduction <add>, %19, %cst_17 [1] : vector<2x32xf32> to vector<2xf32>
    %21 = vector.shape_cast %20 : vector<2xf32> to vector<2x1xf32>
    %cst_18 = arith.constant 3.200000e+01 : f32
    %22 = vector.broadcast %cst_18 : f32 to vector<2x1xf32>
    %23 = arith.divf %21, %22 : vector<2x1xf32>
    %24 = vector.broadcast %23 : vector<2x1xf32> to vector<2x32xf32>
    %25 = arith.subf %19, %24 : vector<2x32xf32>
    %26 = vector.broadcast %23 : vector<2x1xf32> to vector<2x32xf32>
    %27 = arith.subf %19, %26 : vector<2x32xf32>
    %28 = arith.mulf %25, %27 : vector<2x32xf32>
    %cst_19 = arith.constant dense<0.000000e+00> : vector<2xf32>
    %29 = vector.multi_reduction <add>, %28, %cst_19 [1] : vector<2x32xf32> to vector<2xf32>
    %30 = vector.shape_cast %29 : vector<2xf32> to vector<2x1xf32>
    %cst_20 = arith.constant 3.200000e+01 : f32
    %31 = vector.broadcast %cst_20 : f32 to vector<2x1xf32>
    %32 = arith.divf %30, %31 : vector<2x1xf32>
    %33 = vector.broadcast %23 : vector<2x1xf32> to vector<2x32xf32>
    %34 = arith.subf %19, %33 : vector<2x32xf32>
    %cst_21 = arith.constant 9.99999974E-6 : f32
    %35 = vector.broadcast %cst_21 : f32 to vector<2x1xf32>
    %36 = arith.addf %32, %35 : vector<2x1xf32>
    %37 = math.rsqrt %36 : vector<2x1xf32>
    %38 = vector.broadcast %37 : vector<2x1xf32> to vector<2x32xf32>
    %39 = arith.mulf %34, %38 : vector<2x32xf32>
    %c0_22 = arith.constant 0 : index
    %c0_23 = arith.constant 0 : index
    %40 = vector.load %arg7[%c0_22, %c0_23] : memref<1x32xf32, #tpu.memory_space<vmem>>, vector<1x32xf32>
    %41 = vector.broadcast %40 : vector<1x32xf32> to vector<2x32xf32>
    %42 = arith.mulf %39, %41 : vector<2x32xf32>
    %c0_24 = arith.constant 0 : index
    %c0_25 = arith.constant 0 : index
    %43 = vector.load %arg8[%c0_24, %c0_25] : memref<1x32xf32, #tpu.memory_space<vmem>>, vector<1x32xf32>
    %44 = vector.broadcast %43 : vector<1x32xf32> to vector<2x32xf32>
    %45 = arith.addf %42, %44 : vector<2x32xf32>
    %46 = math.tanh %45 : vector<2x32xf32>
    %c0_26 = arith.constant 0 : index
    %c0_27 = arith.constant 0 : index
    %47 = vector.load %arg9[%c0_26, %c0_27] : memref<32x64xf32, #tpu.memory_space<vmem>>, vector<32x64xf32>
    %cst_28 = arith.constant dense<0.000000e+00> : vector<2x64xf32>
    %48 = tpu.matmul %46, %47, %cst_28 {dimension_numbers = #tpu.dot_dimension_numbers<[1], [0], [0], [1], [0, 0, 1, 1], [], []>} : vector<2x32xf32>, vector<32x64xf32>, vector<2x64xf32> -> vector<2x64xf32>
    %c0_29 = arith.constant 0 : index
    %c0_30 = arith.constant 0 : index
    %49 = vector.load %arg10[%c0_29, %c0_30] : memref<1x64xf32, #tpu.memory_space<vmem>>, vector<1x64xf32>
    %50 = vector.broadcast %49 : vector<1x64xf32> to vector<2x64xf32>
    %51 = arith.addf %48, %50 : vector<2x64xf32>
    %cst_31 = arith.constant 0.000000e+00 : f32
    %52 = vector.broadcast %cst_31 : f32 to vector<2x64xf32>
    %53 = arith.maximumf %51, %52 : vector<2x64xf32>
    %c0_32 = arith.constant 0 : index
    %c0_33 = arith.constant 0 : index
    %54 = vector.load %arg11[%c0_32, %c0_33] : memref<64x64xf32, #tpu.memory_space<vmem>>, vector<64x64xf32>
    %cst_34 = arith.constant dense<0.000000e+00> : vector<2x64xf32>
    %55 = tpu.matmul %53, %54, %cst_34 {dimension_numbers = #tpu.dot_dimension_numbers<[1], [0], [0], [1], [0, 0, 1, 1], [], []>} : vector<2x64xf32>, vector<64x64xf32>, vector<2x64xf32> -> vector<2x64xf32>
    %c0_35 = arith.constant 0 : index
    %c0_36 = arith.constant 0 : index
    %56 = vector.load %arg12[%c0_35, %c0_36] : memref<1x64xf32, #tpu.memory_space<vmem>>, vector<1x64xf32>
    %57 = vector.broadcast %56 : vector<1x64xf32> to vector<2x64xf32>
    %58 = arith.addf %55, %57 : vector<2x64xf32>
    %cst_37 = arith.constant 0.000000e+00 : f32
    %59 = vector.broadcast %cst_37 : f32 to vector<2x64xf32>
    %60 = arith.maximumf %58, %59 : vector<2x64xf32>
    %c0_38 = arith.constant 0 : index
    %c0_39 = arith.constant 0 : index
    %61 = vector.load %arg13[%c0_38, %c0_39] : memref<64x12xf32, #tpu.memory_space<vmem>>, vector<64x12xf32>
    %cst_40 = arith.constant dense<0.000000e+00> : vector<2x12xf32>
    %62 = tpu.matmul %60, %61, %cst_40 {dimension_numbers = #tpu.dot_dimension_numbers<[1], [0], [0], [1], [0, 0, 1, 1], [], []>} : vector<2x64xf32>, vector<64x12xf32>, vector<2x12xf32> -> vector<2x12xf32>
    %c0_41 = arith.constant 0 : index
    %c0_42 = arith.constant 0 : index
    %63 = vector.load %arg14[%c0_41, %c0_42] : memref<1x12xf32, #tpu.memory_space<vmem>>, vector<1x12xf32>
    %64 = vector.broadcast %63 : vector<1x12xf32> to vector<2x12xf32>
    %65 = arith.addf %62, %64 : vector<2x12xf32>
    %66 = vector.extract_strided_slice %65 {offsets = [0, 0], sizes = [2, 6], strides = [1, 1]} : vector<2x12xf32> to vector<2x6xf32>
    %c0_43 = arith.constant 0 : index
    %c0_44 = arith.constant 0 : index
    %67 = vector.load %arg15[%c0_43, %c0_44] : memref<2x6xf32, #tpu.memory_space<vmem>>, vector<2x6xf32>
    tpu.vector_store %arg15[%c0_43, %c0_44], %66 {strides = array<i32>} : memref<2x6xf32, #tpu.memory_space<vmem>>, vector<2x6xf32>,
    %68 = vector.extract_strided_slice %65 {offsets = [0, 6], sizes = [2, 6], strides = [1, 1]} : vector<2x12xf32> to vector<2x6xf32>
    %c0_45 = arith.constant 0 : index
    %c0_46 = arith.constant 0 : index
    %69 = vector.load %arg16[%c0_45, %c0_46] : memref<2x6xf32, #tpu.memory_space<vmem>>, vector<2x6xf32>
    tpu.vector_store %arg16[%c0_45, %c0_46], %68 {strides = array<i32>} : memref<2x6xf32, #tpu.memory_space<vmem>>, vector<2x6xf32>,
    return
  }
}

</mosaic_0001>

<bundles_post_ra>
// kernel: critic_forward.1
= control target key start
LH: loop header
LB: loop body
LE: loop exit
PB: predicated region body
PF: predicated region fallthrough
CT: control target
= control target key end

     0   :  { %s8428_s0 = inlined_call_operand.vmem [shape: f32[2,1024], index: 0, kind: input, shape index: {}]   ;;  %s8429_s1 = inlined_call_operand.vmem [shape: f32[1024,784], index: 1, kind: input, shape index: {}]   ;;  %s8430_s2 = inlined_call_operand.vmem [shape: f32[1,784], index: 2, kind: input, shape index: {}]   ;;  %s8431_s3 = inlined_call_operand.vmem [shape: f32[784,400], index: 3, kind: input, shape index: {}]   ;;  %s8432_s4 = inlined_call_operand.vmem [shape: f32[1,400], index: 4, kind: input, shape index: {}]   ;;  %s8433_s5 = inlined_call_operand.vmem [shape: f32[400,32], index: 5, kind: input, shape index: {}]   ;;  %s8434_s6 = inlined_call_operand.vmem [shape: f32[1,32], index: 6, kind: input, shape index: {}]   ;;  %s8435_s7 = inlined_call_operand.vmem [shape: f32[1,32], index: 7, kind: input, shape index: {}]   ;;  %s8436_s8 = inlined_call_operand.vmem [shape: f32[1,32], index: 8, kind: input, shape index: {}]   ;;  %s8437_s9 = inlined_call_operand.vmem [shape: f32[32,64], index: 9, kind: input, shape index: {}]   ;;  %s8438_s10 = inlined_call_operand.vmem [shape: f32[1,64], index: 10, kind: input, shape index: {}]   ;;  %s8439_s11 = inlined_call_operand.vmem [shape: f32[64,64], index: 11, kind: input, shape index: {}]   ;;  %s8440_s12 = inlined_call_operand.vmem [shape: f32[1,64], index: 12, kind: input, shape index: {}]   ;;  %s8441_s13 = inlined_call_operand.vmem [shape: f32[64,12], index: 13, kind: input, shape index: {}]   ;;  %s8442_s14 = inlined_call_operand.vmem [shape: f32[1,12], index: 14, kind: input, shape index: {}]   ;;  %s8443_s15 = inlined_call_operand.hbm [shape: f32[2,6], index: 15, kind: output, shape index: {0}]   ;;  %s8444_s16 = inlined_call_operand.hbm [shape: f32[2,6], index: 16, kind: output, shape index: {1}]  }
   0x1   :  { %8446 = sst [smem:[#allocation8_spill]] %s8428_s0 }
   0x2   :  { %22 = vsyncpa [#allocation3], 0  ;;  %v162_v0 = vld [vmem:[%s8429_s1 + $0x350] sm:$0xff]  ;;  %v161_v2 = vld [vmem:[%s8429_s1 + $0x348] sm:$0xff]  ;;  %s8447_s29 = sld [smem:[#allocation8_spill]] }
   0x3   :  { %v386_v1 = vld [vmem:[%s8429_s1 + $0xa50] sm:$0xff]  ;;  %1033 = vmatprep.subr.mxu0 %v162_v0  ;;  %v385_v3 = vld [vmem:[%s8429_s1 + $0xa48] sm:$0xff]  ;;  %v155_v4 = vld [vmem:[%s8429_s1 + $0x318] sm:$0xff] }
   0x4   :  { %1104 = vmatprep.subr.mxu1 %v386_v1  ;;  %v379_v5 = vld [vmem:[%s8429_s1 + $0xa18] sm:$0xff]  ;;  %1034 = vmatpush1.msra.mxu0 %v161_v2  ;;  %v154_v6 = vld [vmem:[%s8429_s1 + $0x310] sm:$0xff]  ;;  %v148_v8 = vld [vmem:[%s8429_s1 + $0x2e0] sm:$0xff] }
   0x5   :  { %1105 = vmatpush1.msra.mxu1 %v385_v3  ;;  %v378_v7 = vld [vmem:[%s8429_s1 + $0xa10] sm:$0xff]  ;;  %1035 = vmatprep.subr.mxu0 %v155_v4  ;;  %v372_v9 = vld [vmem:[%s8429_s1 + $0x9e0] sm:$0xff]  ;;  %v147_v10 = vld [vmem:[%s8429_s1 + $0x2d8] sm:$0xff] }
   0x6   :  { %1106 = vmatprep.subr.mxu1 %v379_v5  ;;  %v371_v11 = vld [vmem:[%s8429_s1 + $0x9d8] sm:$0xff]  ;;  %1036 = vmatpush1.msra.mxu0 %v154_v6  ;;  %v141_v12 = vld [vmem:[%s8429_s1 + $0x2a8] sm:$0xff]  ;;  %v140_v14 = vld [vmem:[%s8429_s1 + $0x2a0] sm:$0xff] }
   0x7   :  { %1107 = vmatpush1.msra.mxu1 %v378_v7  ;;  %v365_v13 = vld [vmem:[%s8429_s1 + $0x9a8] sm:$0xff]  ;;  %1037 = vmatprep.subr.mxu0 %v148_v8  ;;  %v364_v15 = vld [vmem:[%s8429_s1 + $0x9a0] sm:$0xff]  ;;  %v134_v16 = vld [vmem:[%s8429_s1 + $0x270] sm:$0xff] }
   0x8   :  { %1108 = vmatprep.subr.mxu1 %v372_v9  ;;  %1038 = vmatpush1.msra.mxu0 %v147_v10  ;;  %v358_v17 = vld [vmem:[%s8429_s1 + $0x970] sm:$0xff]  ;;  %v133_v18 = vld [vmem:[%s8429_s1 + $0x268] sm:$0xff]  ;;  %v127_v20 = vld [vmem:[%s8429_s1 + $0x238] sm:$0xff] }
   0x9   :  { %1109 = vmatpush1.msra.mxu1 %v371_v11  ;;  %1039 = vmatprep.subr.mxu0 %v141_v12  ;;  %v357_v19 = vld [vmem:[%s8429_s1 + $0x968] sm:$0xff]  ;;  %v351_v21 = vld [vmem:[%s8429_s1 + $0x938] sm:$0xff]  ;;  %v126_v22 = vld [vmem:[%s8429_s1 + $0x230] sm:$0xff] }
   0xa   :  { %1110 = vmatprep.subr.mxu1 %v365_v13  ;;  %1040 = vmatpush1.msra.mxu0 %v140_v14  ;;  %v350_v23 = vld [vmem:[%s8429_s1 + $0x930] sm:$0xff]  ;;  %v120_v24 = vld [vmem:[%s8429_s1 + $0x200] sm:$0xff]  ;;  %v119_v26 = vld [vmem:[%s8429_s1 + $0x1f8] sm:$0xff] }
   0xb   :  { %1111 = vmatpush1.msra.mxu1 %v364_v15  ;;  %1041 = vmatprep.subr.mxu0 %v134_v16  ;;  %v344_v25 = vld [vmem:[%s8429_s1 + $0x900] sm:$0xff]  ;;  %v343_v27 = vld [vmem:[%s8429_s1 + $0x8f8] sm:$0xff]  ;;  %v113_v28 = vld [vmem:[%s8429_s1 + $0x1c8] sm:$0xff] }
   0xc   :  { %1112 = vmatprep.subr.mxu1 %v358_v17  ;;  %1042 = vmatpush1.msra.mxu0 %v133_v18  ;;  %v337_v29 = vld [vmem:[%s8429_s1 + $0x8c8] sm:$0xff]  ;;  %v112_v30 = vld [vmem:[%s8429_s1 + $0x1c0] sm:$0xff]  ;;  %v106_v32 = vld [vmem:[%s8429_s1 + $0x190] sm:$0xff] }
   0xd   :  { %1113 = vmatpush1.msra.mxu1 %v357_v19  ;;  %1043 = vmatprep.subr.mxu0 %v127_v20  ;;  %v336_v31 = vld [vmem:[%s8429_s1 + $0x8c0] sm:$0xff]  ;;  %v330_v33 = vld [vmem:[%s8429_s1 + $0x890] sm:$0xff]  ;;  %v105_v34 = vld [vmem:[%s8429_s1 + $0x188] sm:$0xff] }
   0xe   :  { %1114 = vmatprep.subr.mxu1 %v351_v21  ;;  %1044 = vmatpush1.msra.mxu0 %v126_v22  ;;  %v329_v35 = vld [vmem:[%s8429_s1 + $0x888] sm:$0xff]  ;;  %v99_v36 = vld [vmem:[%s8429_s1 + $0x158] sm:$0xff]  ;;  %v98_v38 = vld [vmem:[%s8429_s1 + $0x150] sm:$0xff] }
   0xf   :  { %1115 = vmatpush1.msra.mxu1 %v350_v23  ;;  %1045 = vmatprep.subr.mxu0 %v120_v24  ;;  %v323_v37 = vld [vmem:[%s8429_s1 + $0x858] sm:$0xff]  ;;  %v322_v39 = vld [vmem:[%s8429_s1 + $0x850] sm:$0xff]  ;;  %v92_v40 = vld [vmem:[%s8429_s1 + $0x120] sm:$0xff] }
  0x10   :  { %1116 = vmatprep.subr.mxu1 %v344_v25  ;;  %1046 = vmatpush1.msra.mxu0 %v119_v26  ;;  %v316_v41 = vld [vmem:[%s8429_s1 + $0x820] sm:$0xff]  ;;  %v91_v42 = vld [vmem:[%s8429_s1 + $0x118] sm:$0xff]  ;;  %v85_v44 = vld [vmem:[%s8429_s1 + $0xe8] sm:$0xff] }
  0x11   :  { %1117 = vmatpush1.msra.mxu1 %v343_v27  ;;  %1047 = vmatprep.subr.mxu0 %v113_v28  ;;  %v315_v43 = vld [vmem:[%s8429_s1 + $0x818] sm:$0xff]  ;;  %v309_v45 = vld [vmem:[%s8429_s1 + $0x7e8] sm:$0xff]  ;;  %v84_v46 = vld [vmem:[%s8429_s1 + $0xe0] sm:$0xff] }
  0x12   :  { %1118 = vmatprep.subr.mxu1 %v337_v29  ;;  %1048 = vmatpush1.msra.mxu0 %v112_v30  ;;  %v308_v47 = vld [vmem:[%s8429_s1 + $0x7e0] sm:$0xff]  ;;  %v78_v48 = vld [vmem:[%s8429_s1 + $0xb0] sm:$0xff]  ;;  %v77_v50 = vld [vmem:[%s8429_s1 + $0xa8] sm:$0xff]  ;;  %v954_v30 = vlaneseq }
  0x13   :  { %1119 = vmatpush1.msra.mxu1 %v336_v31  ;;  %1049 = vmatprep.subr.mxu0 %v106_v32  ;;  %v302_v49 = vld [vmem:[%s8429_s1 + $0x7b0] sm:$0xff]  ;;  %v301_v51 = vld [vmem:[%s8429_s1 + $0x7a8] sm:$0xff]  ;;  %v71_v52 = vld [vmem:[%s8429_s1 + $0x78] sm:$0xff]  ;;  %v4010_v31 = vmov 1983009808  }
  0x14   :  { %1120 = vmatprep.subr.mxu1 %v330_v33  ;;  %1050 = vmatpush1.msra.mxu0 %v105_v34  ;;  %v295_v53 = vld [vmem:[%s8429_s1 + $0x778] sm:$0xff]  ;;  %v70_v54 = vld [vmem:[%s8429_s1 + $0x70] sm:$0xff]  ;;  %v64_v56 = vld [vmem:[%s8429_s1 + $0x40] sm:$0xff]  ;;  %v993_v32 = vunpack.c.l.s4 %v4010_v31 }
  0x15   :  { %1121 = vmatpush1.msra.mxu1 %v329_v35  ;;  %1051 = vmatprep.subr.mxu0 %v99_v36  ;;  %v294_v55 = vld [vmem:[%s8429_s1 + $0x770] sm:$0xff]  ;;  %v288_v57 = vld [vmem:[%s8429_s1 + $0x740] sm:$0xff]  ;;  %v63_v58 = vld [vmem:[%s8429_s1 + $0x38] sm:$0xff] }
  0x16   :  { %1122 = vmatprep.subr.mxu1 %v323_v37  ;;  %1052 = vmatpush1.msra.mxu0 %v98_v38  ;;  %v287_v59 = vld [vmem:[%s8429_s1 + $0x738] sm:$0xff]  ;;  %v57_v60 = vld [vmem:[%s8429_s1 + $0x8] sm:$0xff]  ;;  %v56_v62 = vld [vmem:[%s8429_s1] sm:$0xff] }
  0x17   :  { %1123 = vmatpush1.msra.mxu1 %v322_v39  ;;  %1053 = vmatprep.subr.mxu0 %v92_v40  ;;  %v281_v61 = vld [vmem:[%s8429_s1 + $0x708] sm:$0xff]  ;;  %v280_v63 = vld [vmem:[%s8429_s1 + $0x700] sm:$0xff]  ;;  %v274_v0 = vld [vmem:[%s8429_s1 + $0x6d0] sm:$0xff] }
  0x18   :  { %1124 = vmatprep.subr.mxu1 %v316_v41  ;;  %1054 = vmatpush1.msra.mxu0 %v91_v42  ;;  %v498_v1 = vld [vmem:[%s8429_s1 + $0xdd0] sm:$0xff]  ;;  %v273_v2 = vld [vmem:[%s8429_s1 + $0x6c8] sm:$0xff]  ;;  %v267_v4 = vld [vmem:[%s8429_s1 + $0x698] sm:$0xff]  ;;  %v4407_v41 = vshrl.u32 %v954_v30, 7  ;;  %v994_v42 = vunpack.c.0.s8 %v993_v32 }
  0x19   :  { %1125 = vmatpush1.msra.mxu1 %v315_v43  ;;  %1055 = vmatprep.subr.mxu0 %v85_v44  ;;  %v497_v3 = vld [vmem:[%s8429_s1 + $0xdc8] sm:$0xff]  ;;  %v491_v5 = vld [vmem:[%s8429_s1 + $0xd98] sm:$0xff]  ;;  %v266_v6 = vld [vmem:[%s8429_s1 + $0x690] sm:$0xff] }
  0x1a   :  { %1126 = vmatprep.subr.mxu1 %v309_v45  ;;  %1056 = vmatpush1.msra.mxu0 %v84_v46  ;;  %v490_v7 = vld [vmem:[%s8429_s1 + $0xd90] sm:$0xff]  ;;  %v260_v8 = vld [vmem:[%s8429_s1 + $0x660] sm:$0xff]  ;;  %v259_v10 = vld [vmem:[%s8429_s1 + $0x658] sm:$0xff] }
  0x1b   :  { %1127 = vmatpush1.msra.mxu1 %v308_v47  ;;  %1057 = vmatprep.subr.mxu0 %v78_v48  ;;  %v484_v9 = vld [vmem:[%s8429_s1 + $0xd60] sm:$0xff]  ;;  %v483_v11 = vld [vmem:[%s8429_s1 + $0xd58] sm:$0xff]  ;;  %v253_v12 = vld [vmem:[%s8429_s1 + $0x628] sm:$0xff] }
  0x1c   :  { %1128 = vmatprep.subr.mxu1 %v302_v49  ;;  %1058 = vmatpush1.msra.mxu0 %v77_v50  ;;  %v477_v13 = vld [vmem:[%s8429_s1 + $0xd28] sm:$0xff]  ;;  %v252_v14 = vld [vmem:[%s8429_s1 + $0x620] sm:$0xff]  ;;  %v246_v16 = vld [vmem:[%s8429_s1 + $0x5f0] sm:$0xff] }
  0x1d   :  { %1129 = vmatpush1.msra.mxu1 %v301_v51  ;;  %1059 = vmatprep.subr.mxu0 %v71_v52  ;;  %v476_v15 = vld [vmem:[%s8429_s1 + $0xd20] sm:$0xff]  ;;  %v470_v17 = vld [vmem:[%s8429_s1 + $0xcf0] sm:$0xff]  ;;  %v245_v18 = vld [vmem:[%s8429_s1 + $0x5e8] sm:$0xff]  ;;  %v4437_v52 = vsub.s32 %v994_v42, %v4407_v41 }
  0x1e   :  { %1130 = vmatprep.subr.mxu1 %v295_v53  ;;  %1060 = vmatpush1.msra.mxu0 %v70_v54  ;;  %v469_v19 = vld [vmem:[%s8429_s1 + $0xce8] sm:$0xff]  ;;  %v239_v20 = vld [vmem:[%s8429_s1 + $0x5b8] sm:$0xff]  ;;  %v238_v22 = vld [vmem:[%s8429_s1 + $0x5b0] sm:$0xff] }
  0x1f   :  { %1131 = vmatpush1.msra.mxu1 %v294_v55  ;;  %1061 = vmatprep.subr.mxu0 %v64_v56  ;;  %v463_v21 = vld [vmem:[%s8429_s1 + $0xcb8] sm:$0xff]  ;;  %v462_v23 = vld [vmem:[%s8429_s1 + $0xcb0] sm:$0xff]  ;;  %v232_v24 = vld [vmem:[%s8429_s1 + $0x580] sm:$0xff] }
  0x20   :  { %1132 = vmatprep.subr.mxu1 %v288_v57  ;;  %1062 = vmatpush1.msra.mxu0 %v63_v58  ;;  %v456_v25 = vld [vmem:[%s8429_s1 + $0xc80] sm:$0xff]  ;;  %v231_v26 = vld [vmem:[%s8429_s1 + $0x578] sm:$0xff]  ;;  %v225_v28 = vld [vmem:[%s8429_s1 + $0x548] sm:$0xff] }
  0x21   :  { %1133 = vmatpush1.msra.mxu1 %v287_v59  ;;  %1063 = vmatprep.subr.mxu0 %v57_v60  ;;  %v455_v27 = vld [vmem:[%s8429_s1 + $0xc78] sm:$0xff]  ;;  %v449_v29 = vld [vmem:[%s8429_s1 + $0xc48] sm:$0xff]  ;;  %v224_v33 = vld [vmem:[%s8429_s1 + $0x540] sm:$0xff] }
  0x22   :  { %1134 = vmatprep.subr.mxu1 %v281_v61  ;;  %1064 = vmatpush1.msra.mxu0 %v56_v62  ;;  %v448_v34 = vld [vmem:[%s8429_s1 + $0xc40] sm:$0xff]  ;;  %v218_v35 = vld [vmem:[%s8429_s1 + $0x510] sm:$0xff]  ;;  %v217_v37 = vld [vmem:[%s8429_s1 + $0x508] sm:$0xff] }
  0x23   :  { %1135 = vmatpush1.msra.mxu1 %v280_v63  ;;  %1065 = vmatprep.subr.mxu0 %v274_v0  ;;  %v442_v36 = vld [vmem:[%s8429_s1 + $0xc10] sm:$0xff]  ;;  %v441_v38 = vld [vmem:[%s8429_s1 + $0xc08] sm:$0xff]  ;;  %v211_v39 = vld [vmem:[%s8429_s1 + $0x4d8] sm:$0xff] }
  0x24   :  { %1136 = vmatprep.subr.mxu1 %v498_v1  ;;  %1066 = vmatpush2.msra.mxu0 %v273_v2  ;;  %v435_v40 = vld [vmem:[%s8429_s1 + $0xbd8] sm:$0xff]  ;;  %v210_v43 = vld [vmem:[%s8429_s1 + $0x4d0] sm:$0xff]  ;;  %v204_v45 = vld [vmem:[%s8429_s1 + $0x4a0] sm:$0xff] }
  0x25   :  { %1137 = vmatpush2.msra.mxu1 %v497_v3  ;;  %1067 = vmatprep.subr.mxu0 %v267_v4  ;;  %v434_v44 = vld [vmem:[%s8429_s1 + $0xbd0] sm:$0xff]  ;;  %v428_v46 = vld [vmem:[%s8429_s1 + $0xba0] sm:$0xff]  ;;  %v203_v47 = vld [vmem:[%s8429_s1 + $0x498] sm:$0xff] }
  0x26   :  { %1138 = vmatprep.subr.mxu1 %v491_v5  ;;  %1068 = vmatpush2.msra.mxu0 %v266_v6  ;;  %v427_v48 = vld [vmem:[%s8429_s1 + $0xb98] sm:$0xff]  ;;  %v54_v49 = vld [vmem:[%s8447_s29] sm:$0xff]  ;;  %v197_v50 = vld [vmem:[%s8429_s1 + $0x468] sm:$0xff] }
  0x27   :  { %1139 = vmatpush2.msra.mxu1 %v490_v7  ;;  %1069 = vmatprep.subr.mxu0 %v260_v8  ;;  %v421_v51 = vld [vmem:[%s8429_s1 + $0xb68] sm:$0xff]  ;;  %v196_v53 = vld [vmem:[%s8429_s1 + $0x460] sm:$0xff]  ;;  %v190_v55 = vld [vmem:[%s8429_s1 + $0x430] sm:$0xff]  ;;  %v991_v57 = vcombine.high %v54_v49, %v54_v49  ;;  %v4464_v62 = vrot.slane %v54_v49, %v4437_v52 }
  0x28   :  { %1140 = vmatprep.subr.mxu1 %v484_v9  ;;  %1070 = vmatpush2.msra.mxu0 %v259_v10  ;;  %v420_v54 = vld [vmem:[%s8429_s1 + $0xb60] sm:$0xff]  ;;  %v414_v56 = vld [vmem:[%s8429_s1 + $0xb30] sm:$0xff]  ;;  %v189_v58 = vld [vmem:[%s8429_s1 + $0x428] sm:$0xff] }
  0x29   :  { %1141 = vmatpush2.msra.mxu1 %v483_v11  ;;  %1071 = vmatprep.subr.mxu0 %v253_v12  ;;  %v413_v59 = vld [vmem:[%s8429_s1 + $0xb28] sm:$0xff]  ;;  %v183_v60 = vld [vmem:[%s8429_s1 + $0x3f8] sm:$0xff]  ;;  %v182_v63 = vld [vmem:[%s8429_s1 + $0x3f0] sm:$0xff]  ;;  %v4479_v3 = vrot.slane %v991_v57, %v4437_v52  ;;  %v4495_v8 = vcombine.high %v4464_v62, %v4464_v62 }
  0x2a   :  { %1142 = vmatprep.subr.mxu1 %v477_v13  ;;  %1072 = vmatpush2.msra.mxu0 %v252_v14  ;;  %v407_v61 = vld [vmem:[%s8429_s1 + $0xaf8] sm:$0xff]  ;;  %v406_v0 = vld [vmem:[%s8429_s1 + $0xaf0] sm:$0xff]  ;;  %v176_v1 = vld [vmem:[%s8429_s1 + $0x3c0] sm:$0xff] }
  0x2b   :  { %1143 = vmatpush2.msra.mxu1 %v476_v15  ;;  %1073 = vmatprep.subr.mxu0 %v246_v16  ;;  %v400_v2 = vld [vmem:[%s8429_s1 + $0xac0] sm:$0xff]  ;;  %v175_v4 = vld [vmem:[%s8429_s1 + $0x3b8] sm:$0xff]  ;;  %v169_v6 = vld [vmem:[%s8429_s1 + $0x388] sm:$0xff]  ;;  %v4505_v11 = vcombine.high %v4479_v3, %v4479_v3 }
  0x2c   :  { %1144 = vmatprep.subr.mxu1 %v470_v17  ;;  %1074 = vmatpush2.msra.mxu0 %v245_v18  ;;  %v399_v5 = vld [vmem:[%s8429_s1 + $0xab8] sm:$0xff]  ;;  %v393_v7 = vld [vmem:[%s8429_s1 + $0xa88] sm:$0xff]  ;;  %v168_v9 = vld [vmem:[%s8429_s1 + $0x380] sm:$0xff] }
  0x2d   :  { %1145 = vmatpush2.msra.mxu1 %v469_v19  ;;  %1075 = vmatprep.subr.mxu0 %v239_v20  ;;  %v392_v10 = vld [vmem:[%s8429_s1 + $0xa80] sm:$0xff]  ;;  %v610_v12 = vld [vmem:[%s8429_s1 + $0x1150] sm:$0xff]  ;;  %v609_v14 = vld [vmem:[%s8429_s1 + $0x1148] sm:$0xff] }
  0x2e   :  { %1146 = vmatprep.subr.mxu1 %v463_v21  ;;  %1076 = vmatpush2.msra.mxu0 %v238_v22  ;;  %v834_v13 = vld [vmem:[%s8429_s1 + $0x1850] sm:$0xff]  ;;  %v833_v15 = vld [vmem:[%s8429_s1 + $0x1848] sm:$0xff]  ;;  %v603_v16 = vld [vmem:[%s8429_s1 + $0x1118] sm:$0xff] }
  0x2f   :  { %1147 = vmatpush2.msra.mxu1 %v462_v23  ;;  %1077 = vmatprep.subr.mxu0 %v232_v24  ;;  %v827_v17 = vld [vmem:[%s8429_s1 + $0x1818] sm:$0xff]  ;;  %v602_v18 = vld [vmem:[%s8429_s1 + $0x1110] sm:$0xff]  ;;  %v596_v20 = vld [vmem:[%s8429_s1 + $0x10e0] sm:$0xff] }
  0x30   :  { %1148 = vmatprep.subr.mxu1 %v456_v25  ;;  %1078 = vmatpush2.msra.mxu0 %v231_v26  ;;  %v826_v19 = vld [vmem:[%s8429_s1 + $0x1810] sm:$0xff]  ;;  %v820_v21 = vld [vmem:[%s8429_s1 + $0x17e0] sm:$0xff]  ;;  %v595_v22 = vld [vmem:[%s8429_s1 + $0x10d8] sm:$0xff] }
  0x31   :  { %1149 = vmatpush2.msra.mxu1 %v455_v27  ;;  %1079 = vmatprep.subr.mxu0 %v225_v28  ;;  %v819_v23 = vld [vmem:[%s8429_s1 + $0x17d8] sm:$0xff]  ;;  %v589_v24 = vld [vmem:[%s8429_s1 + $0x10a8] sm:$0xff]  ;;  %v588_v26 = vld [vmem:[%s8429_s1 + $0x10a0] sm:$0xff] }
  0x32   :  { %1150 = vmatprep.subr.mxu1 %v449_v29  ;;  %1080 = vmatpush2.msra.mxu0 %v224_v33  ;;  %v813_v25 = vld [vmem:[%s8429_s1 + $0x17a8] sm:$0xff]  ;;  %v812_v27 = vld [vmem:[%s8429_s1 + $0x17a0] sm:$0xff]  ;;  %v582_v28 = vld [vmem:[%s8429_s1 + $0x1070] sm:$0xff] }
  0x33   :  { %1151 = vmatpush2.msra.mxu1 %v448_v34  ;;  %1081 = vmatprep.subr.mxu0 %v218_v35  ;;  %v806_v29 = vld [vmem:[%s8429_s1 + $0x1770] sm:$0xff]  ;;  %v581_v30 = vld [vmem:[%s8429_s1 + $0x1068] sm:$0xff]  ;;  %v575_v32 = vld [vmem:[%s8429_s1 + $0x1038] sm:$0xff] }
  0x34   :  { %1152 = vmatprep.subr.mxu1 %v442_v36  ;;  %1082 = vmatpush2.msra.mxu0 %v217_v37  ;;  %v805_v31 = vld [vmem:[%s8429_s1 + $0x1768] sm:$0xff]  ;;  %v799_v33 = vld [vmem:[%s8429_s1 + $0x1738] sm:$0xff]  ;;  %v574_v34 = vld [vmem:[%s8429_s1 + $0x1030] sm:$0xff] }
  0x35   :  { %1153 = vmatpush2.msra.mxu1 %v441_v38  ;;  %1083 = vmatprep.subr.mxu0 %v211_v39  ;;  %v798_v35 = vld [vmem:[%s8429_s1 + $0x1730] sm:$0xff]  ;;  %v568_v36 = vld [vmem:[%s8429_s1 + $0x1000] sm:$0xff]  ;;  %v567_v38 = vld [vmem:[%s8429_s1 + $0xff8] sm:$0xff] }
  0x36   :  { %1154 = vmatprep.subr.mxu1 %v435_v40  ;;  %1084 = vmatpush2.msra.mxu0 %v210_v43  ;;  %v792_v37 = vld [vmem:[%s8429_s1 + $0x1700] sm:$0xff]  ;;  %v791_v39 = vld [vmem:[%s8429_s1 + $0x16f8] sm:$0xff]  ;;  %v561_v40 = vld [vmem:[%s8429_s1 + $0xfc8] sm:$0xff] }
  0x37   :  { %1155 = vmatpush2.msra.mxu1 %v434_v44  ;;  %1085 = vmatprep.subr.mxu0 %v204_v45  ;;  %v785_v42 = vld [vmem:[%s8429_s1 + $0x16c8] sm:$0xff]  ;;  %v560_v43 = vld [vmem:[%s8429_s1 + $0xfc0] sm:$0xff]  ;;  %v554_v45 = vld [vmem:[%s8429_s1 + $0xf90] sm:$0xff] }
  0x38   :  { %1156 = vmatprep.subr.mxu1 %v428_v46  ;;  %1086 = vmatpush2.msra.mxu0 %v203_v47  ;;  %v784_v44 = vld [vmem:[%s8429_s1 + $0x16c0] sm:$0xff]  ;;  %v778_v46 = vld [vmem:[%s8429_s1 + $0x1690] sm:$0xff]  ;;  %v553_v47 = vld [vmem:[%s8429_s1 + $0xf88] sm:$0xff] }
  0x39   :  { %1157 = vmatpush2.msra.mxu1 %v427_v48  ;;  %1087 = vmatprep.subr.mxu0 %v197_v50  ;;  %v777_v48 = vld [vmem:[%s8429_s1 + $0x1688] sm:$0xff]  ;;  %v547_v49 = vld [vmem:[%s8429_s1 + $0xf58] sm:$0xff] }
  0x3a   :  { %1158 = vmatprep.subr.mxu1 %v421_v51  ;;  %1088 = vmatpush2.msra.mxu0 %v196_v53  ;;  %v771_v50 = vld [vmem:[%s8429_s1 + $0x1658] sm:$0xff]  ;;  %v546_v51 = vld [vmem:[%s8429_s1 + $0xf50] sm:$0xff] }
  0x3b   :  { %1159 = vmatpush2.msra.mxu1 %v420_v54  ;;  %1089 = vmatprep.subr.mxu0 %v190_v55  ;;  %v770_v53 = vld [vmem:[%s8429_s1 + $0x1650] sm:$0xff]  ;;  %v540_v54 = vld [vmem:[%s8429_s1 + $0xf20] sm:$0xff]  ;;  %v763_v57 = vld [vmem:[%s8429_s1 + $0x1618] sm:$0xff] }
  0x3c   :  { %1160 = vmatprep.subr.mxu1 %v414_v56  ;;  %1090 = vmatpush2.msra.mxu0 %v189_v58  ;;  %v764_v55 = vld [vmem:[%s8429_s1 + $0x1620] sm:$0xff]  ;;  %v539_v56 = vld [vmem:[%s8429_s1 + $0xf18] sm:$0xff]  ;;  %v533_v58 = vld [vmem:[%s8429_s1 + $0xee8] sm:$0xff] }
  0x3d   :  { %1161 = vmatpush2.msra.mxu1 %v413_v59  ;;  %1091 = vmatprep.subr.mxu0 %v183_v60  ;;  %v757_v59 = vld [vmem:[%s8429_s1 + $0x15e8] sm:$0xff]  ;;  %v532_v60 = vld [vmem:[%s8429_s1 + $0xee0] sm:$0xff] }
  0x3e   :  { %1162 = vmatprep.subr.mxu1 %v407_v61  ;;  %1092 = vmatpush2.msra.mxu0 %v182_v63  ;;  %v756_v61 = vld [vmem:[%s8429_s1 + $0x15e0] sm:$0xff]  ;;  %v526_v63 = vld [vmem:[%s8429_s1 + $0xeb0] sm:$0xff] }
  0x3f   :  { %1163 = vmatpush2.msra.mxu1 %v406_v0  ;;  %1093 = vmatprep.subr.mxu0 %v176_v1  ;;  %v750_v0 = vld [vmem:[%s8429_s1 + $0x15b0] sm:$0xff]  ;;  %v525_v1 = vld [vmem:[%s8429_s1 + $0xea8] sm:$0xff] }
  0x40   :  { %1164 = vmatprep.subr.mxu1 %v400_v2  ;;  %1094 = vmatpush2.msra.mxu0 %v175_v4  ;;  %v749_v2 = vld [vmem:[%s8429_s1 + $0x15a8] sm:$0xff]  ;;  %v519_v4 = vld [vmem:[%s8429_s1 + $0xe78] sm:$0xff] }
  0x41   :  { %1165 = vmatpush2.msra.mxu1 %v399_v5  ;;  %1095 = vmatprep.subr.mxu0 %v169_v6  ;;  %v743_v5 = vld [vmem:[%s8429_s1 + $0x1578] sm:$0xff]  ;;  %v518_v6 = vld [vmem:[%s8429_s1 + $0xe70] sm:$0xff] }
  0x42   :  { %1166 = vmatprep.subr.mxu1 %v393_v7  ;;  %1096 = vmatpush2.msra.mxu0 %v168_v9  ;;  %v742_v7 = vld [vmem:[%s8429_s1 + $0x1570] sm:$0xff]  ;;  %v512_v9 = vld [vmem:[%s8429_s1 + $0xe40] sm:$0xff] }
  0x43   :  { %1097 = vmatprep.mubr.f32.mxu0 %v4495_v8  ;;  %1167 = vmatpush2.msra.mxu1 %v392_v10  ;;  %v736_v10 = vld [vmem:[%s8429_s1 + $0x1540] sm:$0xff] }
  0x44   :  { %1098 = vmatmul.mubr.f32.vlgmr.msra.gmra.mxu0 %v4464_v62  ;;  %1168 = vmatprep.mubr.f32.mxu1 %v4505_v11 }
  0x45   :  { %1175 = vmatprep.subr.mxu0 %v610_v12  ;;  %1246 = vmatprep.subr.mxu1 %v834_v13  ;;  %v511_v12 = vld [vmem:[%s8429_s1 + $0xe38] sm:$0xff] }
  0x46   :  { %1169 = vmatmul.mubr.f32.vlgmr.msra.gmra.mxu1 %v4479_v3  ;;  %1176 = vmatpush1.msra.mxu0 %v609_v14  ;;  %v735_v13 = vld [vmem:[%s8429_s1 + $0x1538] sm:$0xff]  ;;  %v505_v14 = vld [vmem:[%s8429_s1 + $0xe08] sm:$0xff] }
  0x47   :  { %1247 = vmatpush1.msra.mxu1 %v833_v15  ;;  %1177 = vmatprep.subr.mxu0 %v603_v16  ;;  %v729_v15 = vld [vmem:[%s8429_s1 + $0x1508] sm:$0xff]  ;;  %v504_v16 = vld [vmem:[%s8429_s1 + $0xe00] sm:$0xff] }
  0x48   :  { %1248 = vmatprep.subr.mxu1 %v827_v17  ;;  %1178 = vmatpush1.msra.mxu0 %v602_v18  ;;  %v728_v17 = vld [vmem:[%s8429_s1 + $0x1500] sm:$0xff]  ;;  %v722_v18 = vld [vmem:[%s8429_s1 + $0x14d0] sm:$0xff] }
  0x49   :  { %1249 = vmatpush1.msra.mxu1 %v826_v19  ;;  %1179 = vmatprep.subr.mxu0 %v596_v20  ;;  %v946_v19 = vld [vmem:[%s8429_s1 + $0x1bd0] sm:$0xff]  ;;  %v721_v20 = vld [vmem:[%s8429_s1 + $0x14c8] sm:$0xff] }
  0x4a   :  { %1250 = vmatprep.subr.mxu1 %v820_v21  ;;  %1180 = vmatpush1.msra.mxu0 %v595_v22  ;;  %v945_v21 = vld [vmem:[%s8429_s1 + $0x1bc8] sm:$0xff]  ;;  %v715_v22 = vld [vmem:[%s8429_s1 + $0x1498] sm:$0xff] }
  0x4b   :  { %1251 = vmatpush1.msra.mxu1 %v819_v23  ;;  %1181 = vmatprep.subr.mxu0 %v589_v24  ;;  %v939_v23 = vld [vmem:[%s8429_s1 + $0x1b98] sm:$0xff]  ;;  %v714_v24 = vld [vmem:[%s8429_s1 + $0x1490] sm:$0xff] }
  0x4c   :  { %1252 = vmatprep.subr.mxu1 %v813_v25  ;;  %1182 = vmatpush1.msra.mxu0 %v588_v26  ;;  %v938_v25 = vld [vmem:[%s8429_s1 + $0x1b90] sm:$0xff]  ;;  %v708_v26 = vld [vmem:[%s8429_s1 + $0x1460] sm:$0xff] }
  0x4d   :  { %1253 = vmatpush1.msra.mxu1 %v812_v27  ;;  %1183 = vmatprep.subr.mxu0 %v582_v28  ;;  %v932_v27 = vld [vmem:[%s8429_s1 + $0x1b60] sm:$0xff]  ;;  %v707_v28 = vld [vmem:[%s8429_s1 + $0x1458] sm:$0xff] }
  0x4e   :  { %1254 = vmatprep.subr.mxu1 %v806_v29  ;;  %1184 = vmatpush1.msra.mxu0 %v581_v30  ;;  %v931_v29 = vld [vmem:[%s8429_s1 + $0x1b58] sm:$0xff]  ;;  %v701_v30 = vld [vmem:[%s8429_s1 + $0x1428] sm:$0xff] }
  0x4f   :  { %1255 = vmatpush1.msra.mxu1 %v805_v31  ;;  %1185 = vmatprep.subr.mxu0 %v575_v32  ;;  %v925_v31 = vld [vmem:[%s8429_s1 + $0x1b28] sm:$0xff]  ;;  %v700_v32 = vld [vmem:[%s8429_s1 + $0x1420] sm:$0xff] }
  0x50   :  { %1256 = vmatprep.subr.mxu1 %v799_v33  ;;  %1186 = vmatpush1.msra.mxu0 %v574_v34  ;;  %v924_v33 = vld [vmem:[%s8429_s1 + $0x1b20] sm:$0xff]  ;;  %v694_v34 = vld [vmem:[%s8429_s1 + $0x13f0] sm:$0xff] }
  0x51   :  { %1257 = vmatpush1.msra.mxu1 %v798_v35  ;;  %1187 = vmatprep.subr.mxu0 %v568_v36  ;;  %v918_v35 = vld [vmem:[%s8429_s1 + $0x1af0] sm:$0xff]  ;;  %v693_v36 = vld [vmem:[%s8429_s1 + $0x13e8] sm:$0xff] }
  0x52   :  { %1258 = vmatprep.subr.mxu1 %v792_v37  ;;  %1188 = vmatpush1.msra.mxu0 %v567_v38  ;;  %v917_v37 = vld [vmem:[%s8429_s1 + $0x1ae8] sm:$0xff]  ;;  %v687_v38 = vld [vmem:[%s8429_s1 + $0x13b8] sm:$0xff] }
  0x53   :  { %1259 = vmatpush1.msra.mxu1 %v791_v39  ;;  %1189 = vmatprep.subr.mxu0 %v561_v40  ;;  %v911_v39 = vld [vmem:[%s8429_s1 + $0x1ab8] sm:$0xff]  ;;  %v686_v40 = vld [vmem:[%s8429_s1 + $0x13b0] sm:$0xff] }
  0x54   :  { %1260 = vmatprep.subr.mxu1 %v785_v42  ;;  %1190 = vmatpush1.msra.mxu0 %v560_v43  ;;  %v910_v42 = vld [vmem:[%s8429_s1 + $0x1ab0] sm:$0xff]  ;;  %v680_v43 = vld [vmem:[%s8429_s1 + $0x1380] sm:$0xff] }
  0x55   :  { %1261 = vmatpush1.msra.mxu1 %v784_v44  ;;  %1191 = vmatprep.subr.mxu0 %v554_v45  ;;  %v904_v44 = vld [vmem:[%s8429_s1 + $0x1a80] sm:$0xff]  ;;  %v679_v45 = vld [vmem:[%s8429_s1 + $0x1378] sm:$0xff] }
  0x56   :  { %1262 = vmatprep.subr.mxu1 %v778_v46  ;;  %1192 = vmatpush1.msra.mxu0 %v553_v47  ;;  %v903_v46 = vld [vmem:[%s8429_s1 + $0x1a78] sm:$0xff]  ;;  %v673_v47 = vld [vmem:[%s8429_s1 + $0x1348] sm:$0xff] }
  0x57   :  { %1263 = vmatpush1.msra.mxu1 %v777_v48  ;;  %1193 = vmatprep.subr.mxu0 %v547_v49  ;;  %v897_v48 = vld [vmem:[%s8429_s1 + $0x1a48] sm:$0xff]  ;;  %v672_v49 = vld [vmem:[%s8429_s1 + $0x1340] sm:$0xff] }
  0x58   :  { %1264 = vmatprep.subr.mxu1 %v771_v50  ;;  %1194 = vmatpush1.msra.mxu0 %v546_v51  ;;  %v896_v50 = vld [vmem:[%s8429_s1 + $0x1a40] sm:$0xff]  ;;  %v666_v51 = vld [vmem:[%s8429_s1 + $0x1310] sm:$0xff] }
  0x59   :  { %1265 = vmatpush1.msra.mxu1 %v770_v53  ;;  %1195 = vmatprep.subr.mxu0 %v540_v54  ;;  %v890_v53 = vld [vmem:[%s8429_s1 + $0x1a10] sm:$0xff]  ;;  %v665_v54 = vld [vmem:[%s8429_s1 + $0x1308] sm:$0xff] }
  0x5a   :  { %1266 = vmatprep.subr.mxu1 %v764_v55  ;;  %1196 = vmatpush1.msra.mxu0 %v539_v56  ;;  %v889_v55 = vld [vmem:[%s8429_s1 + $0x1a08] sm:$0xff]  ;;  %v659_v56 = vld [vmem:[%s8429_s1 + $0x12d8] sm:$0xff] }
  0x5b   :  { %1267 = vmatpush1.msra.mxu1 %v763_v57  ;;  %1197 = vmatprep.subr.mxu0 %v533_v58  ;;  %v883_v57 = vld [vmem:[%s8429_s1 + $0x19d8] sm:$0xff]  ;;  %v658_v58 = vld [vmem:[%s8429_s1 + $0x12d0] sm:$0xff] }
  0x5c   :  { %1268 = vmatprep.subr.mxu1 %v757_v59  ;;  %1198 = vmatpush1.msra.mxu0 %v532_v60  ;;  %v882_v59 = vld [vmem:[%s8429_s1 + $0x19d0] sm:$0xff]  ;;  %v652_v60 = vld [vmem:[%s8429_s1 + $0x12a0] sm:$0xff] }
  0x5d   :  { %1269 = vmatpush1.msra.mxu1 %v756_v61  ;;  %1199 = vmatprep.subr.mxu0 %v526_v63  ;;  %v876_v61 = vld [vmem:[%s8429_s1 + $0x19a0] sm:$0xff]  ;;  %v651_v63 = vld [vmem:[%s8429_s1 + $0x1298] sm:$0xff] }
  0x5e   :  { %1270 = vmatprep.subr.mxu1 %v750_v0  ;;  %1200 = vmatpush1.msra.mxu0 %v525_v1  ;;  %v875_v0 = vld [vmem:[%s8429_s1 + $0x1998] sm:$0xff]  ;;  %v55_v1 = vld [vmem:[%s8447_s29 + $0x8] sm:$0xff] }
  0x5f   :  { %1271 = vmatpush1.msra.mxu1 %v749_v2  ;;  %1201 = vmatprep.subr.mxu0 %v519_v4  ;;  %v645_v2 = vld [vmem:[%s8429_s1 + $0x1268] sm:$0xff] }
  0x60   :  { %1272 = vmatprep.subr.mxu1 %v743_v5  ;;  %1202 = vmatpush1.msra.mxu0 %v518_v6  ;;  %v869_v4 = vld [vmem:[%s8429_s1 + $0x1968] sm:$0xff]  ;;  %v644_v5 = vld [vmem:[%s8429_s1 + $0x1260] sm:$0xff] }
  0x61   :  { %1273 = vmatpush1.msra.mxu1 %v742_v7  ;;  %1203 = vmatprep.subr.mxu0 %v512_v9  ;;  %v868_v6 = vld [vmem:[%s8429_s1 + $0x1960] sm:$0xff]  ;;  %v638_v7 = vld [vmem:[%s8429_s1 + $0x1230] sm:$0xff] }
  0x62   :  { %1274 = vmatprep.subr.mxu1 %v736_v10  ;;  %1204 = vmatpush1.msra.mxu0 %v511_v12  ;;  %v862_v9 = vld [vmem:[%s8429_s1 + $0x1930] sm:$0xff]  ;;  %v1008_v10 = vcombine.high %v55_v1, %v55_v1  ;;  %v637_v12 = vld [vmem:[%s8429_s1 + $0x1228] sm:$0xff] }
  0x63   :  { %1275 = vmatpush1.msra.mxu1 %v735_v13  ;;  %1205 = vmatprep.subr.mxu0 %v505_v14  ;;  %v861_v13 = vld [vmem:[%s8429_s1 + $0x1928] sm:$0xff]  ;;  %v631_v14 = vld [vmem:[%s8429_s1 + $0x11f8] sm:$0xff] }
  0x64   :  { %1276 = vmatprep.subr.mxu1 %v729_v15  ;;  %1206 = vmatpush1.msra.mxu0 %v504_v16  ;;  %v855_v15 = vld [vmem:[%s8429_s1 + $0x18f8] sm:$0xff]  ;;  %v4869_v16 = vrot.slane %v55_v1, %v4437_v52  ;;  %v332_v1 = vld [vmem:[%s8429_s1 + $0x8a0] sm:$0xff] }
  0x65   :  { %1277 = vmatpush1.msra.mxu1 %v728_v17  ;;  %1207 = vmatprep.subr.mxu0 %v722_v18  ;;  %v630_v17 = vld [vmem:[%s8429_s1 + $0x11f0] sm:$0xff] }
  0x66   :  { %1278 = vmatprep.subr.mxu1 %v946_v19  ;;  %1208 = vmatpush2.msra.mxu0 %v721_v20  ;;  %v854_v18 = vld [vmem:[%s8429_s1 + $0x18f0] sm:$0xff]  ;;  %v624_v19 = vld [vmem:[%s8429_s1 + $0x11c0] sm:$0xff] }
  0x67   :  { %1279 = vmatpush2.msra.mxu1 %v945_v21  ;;  %1209 = vmatprep.subr.mxu0 %v715_v22  ;;  %v848_v20 = vld [vmem:[%s8429_s1 + $0x18c0] sm:$0xff]  ;;  %v4884_v21 = vrot.slane %v1008_v10, %v4437_v52  ;;  %v623_v22 = vld [vmem:[%s8429_s1 + $0x11b8] sm:$0xff]  ;;  %v841_v52 = vld [vmem:[%s8429_s1 + $0x1888] sm:$0xff] }
  0x68   :  { %1280 = vmatprep.subr.mxu1 %v939_v23  ;;  %1210 = vmatpush2.msra.mxu0 %v714_v24  ;;  %v847_v23 = vld [vmem:[%s8429_s1 + $0x18b8] sm:$0xff]  ;;  %v617_v24 = vld [vmem:[%s8429_s1 + $0x1188] sm:$0xff]  ;;  %v94_v10 = vld [vmem:[%s8429_s1 + $0x130] sm:$0xff] }
  0x69   :  { %1281 = vmatpush2.msra.mxu1 %v938_v25  ;;  %1211 = vmatprep.subr.mxu0 %v708_v26  ;;  %v4900_v25 = vcombine.high %v4869_v16, %v4869_v16  ;;  %v616_v26 = vld [vmem:[%s8429_s1 + $0x1180] sm:$0xff] }
  0x6a   :  { %1282 = vmatprep.subr.mxu1 %v932_v27  ;;  %1212 = vmatpush2.msra.mxu0 %v707_v28  ;;  %v840_v27 = vld [vmem:[%s8429_s1 + $0x1880] sm:$0xff]  ;;  %v4910_v28 = vcombine.high %v4884_v21, %v4884_v21 }
  0x6b   :  { %1283 = vmatpush2.msra.mxu1 %v931_v29  ;;  %1213 = vmatprep.subr.mxu0 %v701_v30  ;;  %v164_v29 = vld [vmem:[%s8429_s1 + $0x360] sm:$0xff] }
  0x6c   :  { %1284 = vmatprep.subr.mxu1 %v925_v31  ;;  %1214 = vmatpush2.msra.mxu0 %v700_v32  ;;  %v388_v30 = vld [vmem:[%s8429_s1 + $0xa60] sm:$0xff]  ;;  %v163_v31 = vld [vmem:[%s8429_s1 + $0x358] sm:$0xff] }
  0x6d   :  { %1285 = vmatpush2.msra.mxu1 %v924_v33  ;;  %1215 = vmatprep.subr.mxu0 %v694_v34  ;;  %v387_v32 = vld [vmem:[%s8429_s1 + $0xa58] sm:$0xff]  ;;  %v157_v33 = vld [vmem:[%s8429_s1 + $0x328] sm:$0xff] }
  0x6e   :  { %1286 = vmatprep.subr.mxu1 %v918_v35  ;;  %1216 = vmatpush2.msra.mxu0 %v693_v36  ;;  %v381_v34 = vld [vmem:[%s8429_s1 + $0xa28] sm:$0xff]  ;;  %v156_v35 = vld [vmem:[%s8429_s1 + $0x320] sm:$0xff] }
  0x6f   :  { %1287 = vmatpush2.msra.mxu1 %v917_v37  ;;  %1217 = vmatprep.subr.mxu0 %v687_v38  ;;  %v380_v36 = vld [vmem:[%s8429_s1 + $0xa20] sm:$0xff]  ;;  %v150_v37 = vld [vmem:[%s8429_s1 + $0x2f0] sm:$0xff] }
  0x70   :  { %1288 = vmatprep.subr.mxu1 %v911_v39  ;;  %1218 = vmatpush2.msra.mxu0 %v686_v40  ;;  %v374_v38 = vld [vmem:[%s8429_s1 + $0x9f0] sm:$0xff]  ;;  %v149_v39 = vld [vmem:[%s8429_s1 + $0x2e8] sm:$0xff] }
  0x71   :  { %1289 = vmatpush2.msra.mxu1 %v910_v42  ;;  %1219 = vmatprep.subr.mxu0 %v680_v43  ;;  %v373_v40 = vld [vmem:[%s8429_s1 + $0x9e8] sm:$0xff]  ;;  %v143_v42 = vld [vmem:[%s8429_s1 + $0x2b8] sm:$0xff] }
  0x72   :  { %1290 = vmatprep.subr.mxu1 %v904_v44  ;;  %1220 = vmatpush2.msra.mxu0 %v679_v45  ;;  %v367_v43 = vld [vmem:[%s8429_s1 + $0x9b8] sm:$0xff]  ;;  %v142_v44 = vld [vmem:[%s8429_s1 + $0x2b0] sm:$0xff] }
  0x73   :  { %1291 = vmatpush2.msra.mxu1 %v903_v46  ;;  %1221 = vmatprep.subr.mxu0 %v673_v47  ;;  %v366_v45 = vld [vmem:[%s8429_s1 + $0x9b0] sm:$0xff]  ;;  %v136_v46 = vld [vmem:[%s8429_s1 + $0x280] sm:$0xff] }
  0x74   :  { %1292 = vmatprep.subr.mxu1 %v897_v48  ;;  %1222 = vmatpush2.msra.mxu0 %v672_v49  ;;  %v360_v47 = vld [vmem:[%s8429_s1 + $0x980] sm:$0xff]  ;;  %v135_v48 = vld [vmem:[%s8429_s1 + $0x278] sm:$0xff] }
  0x75   :  { %1293 = vmatpush2.msra.mxu1 %v896_v50  ;;  %1223 = vmatprep.subr.mxu0 %v666_v51  ;;  %v359_v49 = vld [vmem:[%s8429_s1 + $0x978] sm:$0xff]  ;;  %v129_v50 = vld [vmem:[%s8429_s1 + $0x248] sm:$0xff] }
  0x76   :  { %1294 = vmatprep.subr.mxu1 %v890_v53  ;;  %1224 = vmatpush2.msra.mxu0 %v665_v54  ;;  %v353_v51 = vld [vmem:[%s8429_s1 + $0x948] sm:$0xff]  ;;  %v128_v53 = vld [vmem:[%s8429_s1 + $0x240] sm:$0xff] }
  0x77   :  { %1295 = vmatpush2.msra.mxu1 %v889_v55  ;;  %1225 = vmatprep.subr.mxu0 %v659_v56  ;;  %v352_v54 = vld [vmem:[%s8429_s1 + $0x940] sm:$0xff]  ;;  %v122_v55 = vld [vmem:[%s8429_s1 + $0x210] sm:$0xff] }
  0x78   :  { %1296 = vmatprep.subr.mxu1 %v883_v57  ;;  %1226 = vmatpush2.msra.mxu0 %v658_v58  ;;  %v346_v56 = vld [vmem:[%s8429_s1 + $0x910] sm:$0xff]  ;;  %v121_v57 = vld [vmem:[%s8429_s1 + $0x208] sm:$0xff] }
  0x79   :  { %1297 = vmatpush2.msra.mxu1 %v882_v59  ;;  %1227 = vmatprep.subr.mxu0 %v652_v60  ;;  %v345_v58 = vld [vmem:[%s8429_s1 + $0x908] sm:$0xff]  ;;  %v115_v59 = vld [vmem:[%s8429_s1 + $0x1d8] sm:$0xff] }
  0x7a   :  { %1298 = vmatprep.subr.mxu1 %v876_v61  ;;  %1228 = vmatpush2.msra.mxu0 %v651_v63  ;;  %v339_v60 = vld [vmem:[%s8429_s1 + $0x8d8] sm:$0xff]  ;;  %v114_v61 = vld [vmem:[%s8429_s1 + $0x1d0] sm:$0xff] }
  0x7b   :  { %1299 = vmatpush2.msra.mxu1 %v875_v0  ;;  %1229 = vmatprep.subr.mxu0 %v645_v2  ;;  %v338_v63 = vld [vmem:[%s8429_s1 + $0x8d0] sm:$0xff]  ;;  %v108_v0 = vld [vmem:[%s8429_s1 + $0x1a0] sm:$0xff]  ;;  %v107_v2 = vld [vmem:[%s8429_s1 + $0x198] sm:$0xff] }
  0x7c   :  { %1300 = vmatprep.subr.mxu1 %v869_v4  ;;  %1230 = vmatpush2.msra.mxu0 %v644_v5  ;;  %v331_v4 = vld [vmem:[%s8429_s1 + $0x898] sm:$0xff]  ;;  %v101_v5 = vld [vmem:[%s8429_s1 + $0x168] sm:$0xff] }
  0x7d   :  { %1301 = vmatpush2.msra.mxu1 %v868_v6  ;;  %1231 = vmatprep.subr.mxu0 %v638_v7  ;;  %v325_v6 = vld [vmem:[%s8429_s1 + $0x868] sm:$0xff]  ;;  %v100_v7 = vld [vmem:[%s8429_s1 + $0x160] sm:$0xff] }
  0x7e   :  { %1302 = vmatprep.subr.mxu1 %v862_v9  ;;  %1232 = vmatpush2.msra.mxu0 %v637_v12  ;;  %v324_v9 = vld [vmem:[%s8429_s1 + $0x860] sm:$0xff]  ;;  %v318_v12 = vld [vmem:[%s8429_s1 + $0x830] sm:$0xff] }
  0x7f   :  { %1303 = vmatpush2.msra.mxu1 %v861_v13  ;;  %1233 = vmatprep.subr.mxu0 %v631_v14  ;;  %v93_v13 = vld [vmem:[%s8429_s1 + $0x128] sm:$0xff] }
  0x80   :  { %1304 = vmatprep.subr.mxu1 %v855_v15  ;;  %1234 = vmatpush2.msra.mxu0 %v630_v17  ;;  %v317_v14 = vld [vmem:[%s8429_s1 + $0x828] sm:$0xff]  ;;  %v87_v15 = vld [vmem:[%s8429_s1 + $0xf8] sm:$0xff] }
  0x81   :  { %1305 = vmatpush2.msra.mxu1 %v854_v18  ;;  %1235 = vmatprep.subr.mxu0 %v624_v19  ;;  %v311_v17 = vld [vmem:[%s8429_s1 + $0x7f8] sm:$0xff]  ;;  %v86_v18 = vld [vmem:[%s8429_s1 + $0xf0] sm:$0xff] }
  0x82   :  { %1306 = vmatprep.subr.mxu1 %v848_v20  ;;  %1236 = vmatpush2.msra.mxu0 %v623_v22  ;;  %v310_v19 = vld [vmem:[%s8429_s1 + $0x7f0] sm:$0xff]  ;;  %v80_v20 = vld [vmem:[%s8429_s1 + $0xc0] sm:$0xff] }
  0x83   :  { %1307 = vmatpush2.msra.mxu1 %v847_v23  ;;  %1237 = vmatprep.subr.mxu0 %v617_v24  ;;  %v304_v22 = vld [vmem:[%s8429_s1 + $0x7c0] sm:$0xff]  ;;  %v79_v23 = vld [vmem:[%s8429_s1 + $0xb8] sm:$0xff] }
  0x84   :  { %1308 = vmatprep.subr.mxu1 %v841_v52  ;;  %1238 = vmatpush2.msra.mxu0 %v616_v26  ;;  %v303_v24 = vld [vmem:[%s8429_s1 + $0x7b8] sm:$0xff]  ;;  %v73_v52 = vld [vmem:[%s8429_s1 + $0x88] sm:$0xff] }
  0x85   :  { %1239 = vmatprep.mubr.f32.mxu0 %v4900_v25  ;;  %1309 = vmatpush2.msra.mxu1 %v840_v27  ;;  %v297_v26 = vld [vmem:[%s8429_s1 + $0x788] sm:$0xff]  ;;  %v72_v27 = vld [vmem:[%s8429_s1 + $0x80] sm:$0xff] }
  0x86   :  { %1240 = vmatmul.mubr.f32.vlgmr.msra.gmra.mxu0 %v4869_v16  ;;  %1310 = vmatprep.mubr.f32.mxu1 %v4910_v28 }
  0x87   :  { %1317 = vmatprep.subr.mxu0 %v164_v29  ;;  %1388 = vmatprep.subr.mxu1 %v388_v30  ;;  %v296_v29 = vld [vmem:[%s8429_s1 + $0x780] sm:$0xff]  ;;  %v66_v30 = vld [vmem:[%s8429_s1 + $0x50] sm:$0xff] }
  0x88   :  { %1311 = vmatmul.mubr.f32.vlgmr.msra.gmra.mxu1 %v4884_v21  ;;  %1318 = vmatpush1.msra.mxu0 %v163_v31  ;;  %v290_v31 = vld [vmem:[%s8429_s1 + $0x750] sm:$0xff] }
  0x89   :  { %1389 = vmatpush1.msra.mxu1 %v387_v32  ;;  %1319 = vmatprep.subr.mxu0 %v157_v33  ;;  %v65_v32 = vld [vmem:[%s8429_s1 + $0x48] sm:$0xff] }
  0x8a   :  { %1390 = vmatprep.subr.mxu1 %v381_v34  ;;  %1320 = vmatpush1.msra.mxu0 %v156_v35  ;;  %v289_v33 = vld [vmem:[%s8429_s1 + $0x748] sm:$0xff]  ;;  %v59_v34 = vld [vmem:[%s8429_s1 + $0x18] sm:$0xff] }
  0x8b   :  { %1391 = vmatpush1.msra.mxu1 %v380_v36  ;;  %1321 = vmatprep.subr.mxu0 %v150_v37  ;;  %v283_v35 = vld [vmem:[%s8429_s1 + $0x718] sm:$0xff]  ;;  %v58_v36 = vld [vmem:[%s8429_s1 + $0x10] sm:$0xff] }
  0x8c   :  { %1392 = vmatprep.subr.mxu1 %v374_v38  ;;  %1322 = vmatpush1.msra.mxu0 %v149_v39  ;;  %v282_v37 = vld [vmem:[%s8429_s1 + $0x710] sm:$0xff]  ;;  %v276_v38 = vld [vmem:[%s8429_s1 + $0x6e0] sm:$0xff] }
  0x8d   :  { %1393 = vmatpush1.msra.mxu1 %v373_v40  ;;  %1323 = vmatprep.subr.mxu0 %v143_v42  ;;  %v500_v39 = vld [vmem:[%s8429_s1 + $0xde0] sm:$0xff]  ;;  %v275_v40 = vld [vmem:[%s8429_s1 + $0x6d8] sm:$0xff] }
  0x8e   :  { %1394 = vmatprep.subr.mxu1 %v367_v43  ;;  %1324 = vmatpush1.msra.mxu0 %v142_v44  ;;  %v499_v42 = vld [vmem:[%s8429_s1 + $0xdd8] sm:$0xff]  ;;  %v269_v43 = vld [vmem:[%s8429_s1 + $0x6a8] sm:$0xff] }
  0x8f   :  { %1395 = vmatpush1.msra.mxu1 %v366_v45  ;;  %1325 = vmatprep.subr.mxu0 %v136_v46  ;;  %v493_v44 = vld [vmem:[%s8429_s1 + $0xda8] sm:$0xff]  ;;  %v268_v45 = vld [vmem:[%s8429_s1 + $0x6a0] sm:$0xff] }
  0x90   :  { %1396 = vmatprep.subr.mxu1 %v360_v47  ;;  %1326 = vmatpush1.msra.mxu0 %v135_v48  ;;  %v492_v46 = vld [vmem:[%s8429_s1 + $0xda0] sm:$0xff]  ;;  %v262_v47 = vld [vmem:[%s8429_s1 + $0x670] sm:$0xff] }
  0x91   :  { %1397 = vmatpush1.msra.mxu1 %v359_v49  ;;  %1327 = vmatprep.subr.mxu0 %v129_v50  ;;  %v486_v48 = vld [vmem:[%s8429_s1 + $0xd70] sm:$0xff]  ;;  %v261_v49 = vld [vmem:[%s8429_s1 + $0x668] sm:$0xff] }
  0x92   :  { %1398 = vmatprep.subr.mxu1 %v353_v51  ;;  %1328 = vmatpush1.msra.mxu0 %v128_v53  ;;  %v485_v50 = vld [vmem:[%s8429_s1 + $0xd68] sm:$0xff]  ;;  %v255_v51 = vld [vmem:[%s8429_s1 + $0x638] sm:$0xff] }
  0x93   :  { %1399 = vmatpush1.msra.mxu1 %v352_v54  ;;  %1329 = vmatprep.subr.mxu0 %v122_v55  ;;  %v479_v53 = vld [vmem:[%s8429_s1 + $0xd38] sm:$0xff]  ;;  %v254_v54 = vld [vmem:[%s8429_s1 + $0x630] sm:$0xff] }
  0x94   :  { %1400 = vmatprep.subr.mxu1 %v346_v56  ;;  %1330 = vmatpush1.msra.mxu0 %v121_v57  ;;  %v478_v55 = vld [vmem:[%s8429_s1 + $0xd30] sm:$0xff]  ;;  %v248_v56 = vld [vmem:[%s8429_s1 + $0x600] sm:$0xff] }
  0x95   :  { %1401 = vmatpush1.msra.mxu1 %v345_v58  ;;  %1331 = vmatprep.subr.mxu0 %v115_v59  ;;  %v472_v57 = vld [vmem:[%s8429_s1 + $0xd00] sm:$0xff]  ;;  %v247_v58 = vld [vmem:[%s8429_s1 + $0x5f8] sm:$0xff] }
  0x96   :  { %1402 = vmatprep.subr.mxu1 %v339_v60  ;;  %1332 = vmatpush1.msra.mxu0 %v114_v61  ;;  %v471_v59 = vld [vmem:[%s8429_s1 + $0xcf8] sm:$0xff]  ;;  %v241_v60 = vld [vmem:[%s8429_s1 + $0x5c8] sm:$0xff] }
  0x97   :  { %1403 = vmatpush1.msra.mxu1 %v338_v63  ;;  %1333 = vmatprep.subr.mxu0 %v108_v0  ;;  %v465_v61 = vld [vmem:[%s8429_s1 + $0xcc8] sm:$0xff]  ;;  %v240_v63 = vld [vmem:[%s8429_s1 + $0x5c0] sm:$0xff] }
  0x98   :  { %1404 = vmatprep.subr.mxu1 %v332_v1  ;;  %1334 = vmatpush1.msra.mxu0 %v107_v2  ;;  %v464_v0 = vld [vmem:[%s8429_s1 + $0xcc0] sm:$0xff]  ;;  %v234_v1 = vld [vmem:[%s8429_s1 + $0x590] sm:$0xff] }
  0x99   :  { %1405 = vmatpush1.msra.mxu1 %v331_v4  ;;  %1335 = vmatprep.subr.mxu0 %v101_v5  ;;  %v458_v2 = vld [vmem:[%s8429_s1 + $0xc90] sm:$0xff]  ;;  %v233_v4 = vld [vmem:[%s8429_s1 + $0x588] sm:$0xff] }
  0x9a   :  { %1406 = vmatprep.subr.mxu1 %v325_v6  ;;  %1336 = vmatpush1.msra.mxu0 %v100_v7  ;;  %v457_v5 = vld [vmem:[%s8429_s1 + $0xc88] sm:$0xff]  ;;  %v227_v6 = vld [vmem:[%s8429_s1 + $0x558] sm:$0xff] }
  0x9b   :  { %1407 = vmatpush1.msra.mxu1 %v324_v9  ;;  %1337 = vmatprep.subr.mxu0 %v94_v10  ;;  %v451_v7 = vld [vmem:[%s8429_s1 + $0xc58] sm:$0xff]  ;;  %v226_v9 = vld [vmem:[%s8429_s1 + $0x550] sm:$0xff] }
  0x9c   :  { %1408 = vmatprep.subr.mxu1 %v318_v12  ;;  %1338 = vmatpush1.msra.mxu0 %v93_v13  ;;  %v450_v10 = vld [vmem:[%s8429_s1 + $0xc50] sm:$0xff]  ;;  %v220_v12 = vld [vmem:[%s8429_s1 + $0x520] sm:$0xff] }
  0x9d   :  { %1409 = vmatpush1.msra.mxu1 %v317_v14  ;;  %1339 = vmatprep.subr.mxu0 %v87_v15  ;;  %v444_v13 = vld [vmem:[%s8429_s1 + $0xc20] sm:$0xff]  ;;  %v219_v14 = vld [vmem:[%s8429_s1 + $0x518] sm:$0xff] }
  0x9e   :  { %1410 = vmatprep.subr.mxu1 %v311_v17  ;;  %1340 = vmatpush1.msra.mxu0 %v86_v18  ;;  %v443_v15 = vld [vmem:[%s8429_s1 + $0xc18] sm:$0xff]  ;;  %v213_v17 = vld [vmem:[%s8429_s1 + $0x4e8] sm:$0xff] }
  0x9f   :  { %1411 = vmatpush1.msra.mxu1 %v310_v19  ;;  %1341 = vmatprep.subr.mxu0 %v80_v20  ;;  %v437_v18 = vld [vmem:[%s8429_s1 + $0xbe8] sm:$0xff]  ;;  %v212_v19 = vld [vmem:[%s8429_s1 + $0x4e0] sm:$0xff] }
  0xa0   :  { %1412 = vmatprep.subr.mxu1 %v304_v22  ;;  %1342 = vmatpush1.msra.mxu0 %v79_v23  ;;  %v436_v20 = vld [vmem:[%s8429_s1 + $0xbe0] sm:$0xff]  ;;  %v206_v22 = vld [vmem:[%s8429_s1 + $0x4b0] sm:$0xff] }
  0xa1   :  { %1413 = vmatpush1.msra.mxu1 %v303_v24  ;;  %1343 = vmatprep.subr.mxu0 %v73_v52  ;;  %v430_v23 = vld [vmem:[%s8429_s1 + $0xbb0] sm:$0xff]  ;;  %v205_v24 = vld [vmem:[%s8429_s1 + $0x4a8] sm:$0xff] }
  0xa2   :  { %1414 = vmatprep.subr.mxu1 %v297_v26  ;;  %1344 = vmatpush1.msra.mxu0 %v72_v27  ;;  %v429_v52 = vld [vmem:[%s8429_s1 + $0xba8] sm:$0xff]  ;;  %v199_v26 = vld [vmem:[%s8429_s1 + $0x478] sm:$0xff] }
  0xa3   :  { %1415 = vmatpush1.msra.mxu1 %v296_v29  ;;  %1345 = vmatprep.subr.mxu0 %v66_v30  ;;  %v423_v27 = vld [vmem:[%s8429_s1 + $0xb78] sm:$0xff]  ;;  %v198_v29 = vld [vmem:[%s8429_s1 + $0x470] sm:$0xff] }
  0xa4   :  { %1416 = vmatprep.subr.mxu1 %v290_v31  ;;  %1346 = vmatpush1.msra.mxu0 %v65_v32  ;;  %v422_v30 = vld [vmem:[%s8429_s1 + $0xb70] sm:$0xff]  ;;  %v192_v31 = vld [vmem:[%s8429_s1 + $0x440] sm:$0xff] }
  0xa5   :  { %1417 = vmatpush1.msra.mxu1 %v289_v33  ;;  %1347 = vmatprep.subr.mxu0 %v59_v34  ;;  %v416_v32 = vld [vmem:[%s8429_s1 + $0xb40] sm:$0xff]  ;;  %v191_v33 = vld [vmem:[%s8429_s1 + $0x438] sm:$0xff] }
  0xa6   :  { %1418 = vmatprep.subr.mxu1 %v283_v35  ;;  %1348 = vmatpush1.msra.mxu0 %v58_v36  ;;  %v415_v34 = vld [vmem:[%s8429_s1 + $0xb38] sm:$0xff]  ;;  %v185_v35 = vld [vmem:[%s8429_s1 + $0x408] sm:$0xff] }
  0xa7   :  { %1419 = vmatpush1.msra.mxu1 %v282_v37  ;;  %1349 = vmatprep.subr.mxu0 %v276_v38  ;;  %v409_v36 = vld [vmem:[%s8429_s1 + $0xb08] sm:$0xff]  ;;  %v184_v37 = vld [vmem:[%s8429_s1 + $0x400] sm:$0xff] }
  0xa8   :  { %1420 = vmatprep.subr.mxu1 %v500_v39  ;;  %1350 = vmatpush2.msra.mxu0 %v275_v40  ;;  %v408_v38 = vld [vmem:[%s8429_s1 + $0xb00] sm:$0xff]  ;;  %v178_v39 = vld [vmem:[%s8429_s1 + $0x3d0] sm:$0xff] }
  0xa9   :  { %1421 = vmatpush2.msra.mxu1 %v499_v42  ;;  %1351 = vmatprep.subr.mxu0 %v269_v43  ;;  %v402_v40 = vld [vmem:[%s8429_s1 + $0xad0] sm:$0xff]  ;;  %v177_v42 = vld [vmem:[%s8429_s1 + $0x3c8] sm:$0xff] }
  0xaa   :  { %1422 = vmatprep.subr.mxu1 %v493_v44  ;;  %1352 = vmatpush2.msra.mxu0 %v268_v45  ;;  %v401_v43 = vld [vmem:[%s8429_s1 + $0xac8] sm:$0xff]  ;;  %v171_v44 = vld [vmem:[%s8429_s1 + $0x398] sm:$0xff] }
  0xab   :  { %1423 = vmatpush2.msra.mxu1 %v492_v46  ;;  %1353 = vmatprep.subr.mxu0 %v262_v47  ;;  %v395_v45 = vld [vmem:[%s8429_s1 + $0xa98] sm:$0xff]  ;;  %v170_v46 = vld [vmem:[%s8429_s1 + $0x390] sm:$0xff] }
  0xac   :  { %1424 = vmatprep.subr.mxu1 %v486_v48  ;;  %1354 = vmatpush2.msra.mxu0 %v261_v49  ;;  %v394_v47 = vld [vmem:[%s8429_s1 + $0xa90] sm:$0xff]  ;;  %v612_v48 = vld [vmem:[%s8429_s1 + $0x1160] sm:$0xff] }
  0xad   :  { %1425 = vmatpush2.msra.mxu1 %v485_v50  ;;  %1355 = vmatprep.subr.mxu0 %v255_v51  ;;  %v836_v49 = vld [vmem:[%s8429_s1 + $0x1860] sm:$0xff]  ;;  %v611_v50 = vld [vmem:[%s8429_s1 + $0x1158] sm:$0xff] }
  0xae   :  { %1426 = vmatprep.subr.mxu1 %v479_v53  ;;  %1356 = vmatpush2.msra.mxu0 %v254_v54  ;;  %v835_v51 = vld [vmem:[%s8429_s1 + $0x1858] sm:$0xff]  ;;  %v605_v53 = vld [vmem:[%s8429_s1 + $0x1128] sm:$0xff] }
  0xaf   :  { %1427 = vmatpush2.msra.mxu1 %v478_v55  ;;  %1357 = vmatprep.subr.mxu0 %v248_v56  ;;  %v829_v54 = vld [vmem:[%s8429_s1 + $0x1828] sm:$0xff]  ;;  %v604_v55 = vld [vmem:[%s8429_s1 + $0x1120] sm:$0xff] }
  0xb0   :  { %1428 = vmatprep.subr.mxu1 %v472_v57  ;;  %1358 = vmatpush2.msra.mxu0 %v247_v58  ;;  %v828_v56 = vld [vmem:[%s8429_s1 + $0x1820] sm:$0xff]  ;;  %v598_v57 = vld [vmem:[%s8429_s1 + $0x10f0] sm:$0xff] }
  0xb1   :  { %1429 = vmatpush2.msra.mxu1 %v471_v59  ;;  %1359 = vmatprep.subr.mxu0 %v241_v60  ;;  %v822_v58 = vld [vmem:[%s8429_s1 + $0x17f0] sm:$0xff]  ;;  %v597_v59 = vld [vmem:[%s8429_s1 + $0x10e8] sm:$0xff] }
  0xb2   :  { %1430 = vmatprep.subr.mxu1 %v465_v61  ;;  %1360 = vmatpush2.msra.mxu0 %v240_v63  ;;  %v821_v60 = vld [vmem:[%s8429_s1 + $0x17e8] sm:$0xff]  ;;  %v591_v61 = vld [vmem:[%s8429_s1 + $0x10b8] sm:$0xff] }
  0xb3   :  { %1431 = vmatpush2.msra.mxu1 %v464_v0  ;;  %1361 = vmatprep.subr.mxu0 %v234_v1  ;;  %v815_v63 = vld [vmem:[%s8429_s1 + $0x17b8] sm:$0xff]  ;;  %v590_v0 = vld [vmem:[%s8429_s1 + $0x10b0] sm:$0xff] }
  0xb4   :  { %1432 = vmatprep.subr.mxu1 %v458_v2  ;;  %1362 = vmatpush2.msra.mxu0 %v233_v4  ;;  %v814_v1 = vld [vmem:[%s8429_s1 + $0x17b0] sm:$0xff]  ;;  %v584_v2 = vld [vmem:[%s8429_s1 + $0x1080] sm:$0xff] }
  0xb5   :  { %1433 = vmatpush2.msra.mxu1 %v457_v5  ;;  %1363 = vmatprep.subr.mxu0 %v227_v6  ;;  %v808_v4 = vld [vmem:[%s8429_s1 + $0x1780] sm:$0xff]  ;;  %v583_v5 = vld [vmem:[%s8429_s1 + $0x1078] sm:$0xff] }
  0xb6   :  { %1434 = vmatprep.subr.mxu1 %v451_v7  ;;  %1364 = vmatpush2.msra.mxu0 %v226_v9  ;;  %v807_v6 = vld [vmem:[%s8429_s1 + $0x1778] sm:$0xff]  ;;  %v577_v7 = vld [vmem:[%s8429_s1 + $0x1048] sm:$0xff] }
  0xb7   :  { %1435 = vmatpush2.msra.mxu1 %v450_v10  ;;  %1365 = vmatprep.subr.mxu0 %v220_v12  ;;  %v801_v9 = vld [vmem:[%s8429_s1 + $0x1748] sm:$0xff]  ;;  %v576_v10 = vld [vmem:[%s8429_s1 + $0x1040] sm:$0xff] }
  0xb8   :  { %1436 = vmatprep.subr.mxu1 %v444_v13  ;;  %1366 = vmatpush2.msra.mxu0 %v219_v14  ;;  %v800_v12 = vld [vmem:[%s8429_s1 + $0x1740] sm:$0xff]  ;;  %v570_v13 = vld [vmem:[%s8429_s1 + $0x1010] sm:$0xff] }
  0xb9   :  { %1437 = vmatpush2.msra.mxu1 %v443_v15  ;;  %1367 = vmatprep.subr.mxu0 %v213_v17  ;;  %v794_v14 = vld [vmem:[%s8429_s1 + $0x1710] sm:$0xff]  ;;  %v569_v15 = vld [vmem:[%s8429_s1 + $0x1008] sm:$0xff] }
  0xba   :  { %1438 = vmatprep.subr.mxu1 %v437_v18  ;;  %1368 = vmatpush2.msra.mxu0 %v212_v19  ;;  %v793_v17 = vld [vmem:[%s8429_s1 + $0x1708] sm:$0xff]  ;;  %v563_v18 = vld [vmem:[%s8429_s1 + $0xfd8] sm:$0xff] }
  0xbb   :  { %1439 = vmatpush2.msra.mxu1 %v436_v20  ;;  %1369 = vmatprep.subr.mxu0 %v206_v22  ;;  %v787_v19 = vld [vmem:[%s8429_s1 + $0x16d8] sm:$0xff]  ;;  %v562_v20 = vld [vmem:[%s8429_s1 + $0xfd0] sm:$0xff] }
  0xbc   :  { %1440 = vmatprep.subr.mxu1 %v430_v23  ;;  %1370 = vmatpush2.msra.mxu0 %v205_v24  ;;  %v786_v22 = vld [vmem:[%s8429_s1 + $0x16d0] sm:$0xff]  ;;  %v556_v23 = vld [vmem:[%s8429_s1 + $0xfa0] sm:$0xff] }
  0xbd   :  { %1441 = vmatpush2.msra.mxu1 %v429_v52  ;;  %1371 = vmatprep.subr.mxu0 %v199_v26  ;;  %v780_v24 = vld [vmem:[%s8429_s1 + $0x16a0] sm:$0xff]  ;;  %v555_v52 = vld [vmem:[%s8429_s1 + $0xf98] sm:$0xff] }
  0xbe   :  { %1442 = vmatprep.subr.mxu1 %v423_v27  ;;  %1372 = vmatpush2.msra.mxu0 %v198_v29  ;;  %v779_v26 = vld [vmem:[%s8429_s1 + $0x1698] sm:$0xff]  ;;  %v549_v27 = vld [vmem:[%s8429_s1 + $0xf68] sm:$0xff] }
  0xbf   :  { %1443 = vmatpush2.msra.mxu1 %v422_v30  ;;  %1373 = vmatprep.subr.mxu0 %v192_v31  ;;  %v773_v29 = vld [vmem:[%s8429_s1 + $0x1668] sm:$0xff]  ;;  %v548_v30 = vld [vmem:[%s8429_s1 + $0xf60] sm:$0xff] }
  0xc0   :  { %1444 = vmatprep.subr.mxu1 %v416_v32  ;;  %1374 = vmatpush2.msra.mxu0 %v191_v33  ;;  %v772_v31 = vld [vmem:[%s8429_s1 + $0x1660] sm:$0xff]  ;;  %v542_v32 = vld [vmem:[%s8429_s1 + $0xf30] sm:$0xff] }
  0xc1   :  { %1445 = vmatpush2.msra.mxu1 %v415_v34  ;;  %1375 = vmatprep.subr.mxu0 %v185_v35  ;;  %v766_v33 = vld [vmem:[%s8429_s1 + $0x1630] sm:$0xff]  ;;  %v541_v34 = vld [vmem:[%s8429_s1 + $0xf28] sm:$0xff] }
  0xc2   :  { %1446 = vmatprep.subr.mxu1 %v409_v36  ;;  %1376 = vmatpush2.msra.mxu0 %v184_v37  ;;  %v765_v35 = vld [vmem:[%s8429_s1 + $0x1628] sm:$0xff]  ;;  %v535_v36 = vld [vmem:[%s8429_s1 + $0xef8] sm:$0xff] }
  0xc3   :  { %1447 = vmatpush2.msra.mxu1 %v408_v38  ;;  %1377 = vmatprep.subr.mxu0 %v178_v39  ;;  %v759_v37 = vld [vmem:[%s8429_s1 + $0x15f8] sm:$0xff]  ;;  %v534_v38 = vld [vmem:[%s8429_s1 + $0xef0] sm:$0xff] }
  0xc4   :  { %1448 = vmatprep.subr.mxu1 %v402_v40  ;;  %1378 = vmatpush2.msra.mxu0 %v177_v42  ;;  %v758_v39 = vld [vmem:[%s8429_s1 + $0x15f0] sm:$0xff]  ;;  %v528_v40 = vld [vmem:[%s8429_s1 + $0xec0] sm:$0xff] }
  0xc5   :  { %1449 = vmatpush2.msra.mxu1 %v401_v43  ;;  %1379 = vmatprep.subr.mxu0 %v171_v44  ;;  %v752_v42 = vld [vmem:[%s8429_s1 + $0x15c0] sm:$0xff]  ;;  %v527_v43 = vld [vmem:[%s8429_s1 + $0xeb8] sm:$0xff] }
  0xc6   :  { %1450 = vmatprep.subr.mxu1 %v395_v45  ;;  %1380 = vmatpush2.msra.mxu0 %v170_v46  ;;  %v751_v44 = vld [vmem:[%s8429_s1 + $0x15b8] sm:$0xff]  ;;  %v521_v45 = vld [vmem:[%s8429_s1 + $0xe88] sm:$0xff] }
  0xc7   :  { %1381 = vmatprep.mubr.f32.mxu0 %v4495_v8  ;;  %1451 = vmatpush2.msra.mxu1 %v394_v47  ;;  %v745_v46 = vld [vmem:[%s8429_s1 + $0x1588] sm:$0xff]  ;;  %v520_v47 = vld [vmem:[%s8429_s1 + $0xe80] sm:$0xff] }
  0xc8   :  { %1382 = vmatmul.mubr.f32.vlgmr.msra.gmra.mxu0 %v4464_v62  ;;  %1452 = vmatprep.mubr.f32.mxu1 %v4505_v11 }
  0xc9   :  { %1459 = vmatprep.subr.mxu0 %v612_v48  ;;  %1530 = vmatprep.subr.mxu1 %v836_v49  ;;  %v744_v48 = vld [vmem:[%s8429_s1 + $0x1580] sm:$0xff]  ;;  %v514_v49 = vld [vmem:[%s8429_s1 + $0xe50] sm:$0xff] }
  0xca   :  { %1453 = vmatmul.mubr.f32.vlgmr.msra.gmra.mxu1 %v4479_v3  ;;  %1460 = vmatpush1.msra.mxu0 %v611_v50  ;;  %v738_v50 = vld [vmem:[%s8429_s1 + $0x1550] sm:$0xff] }
  0xcb   :  { %1531 = vmatpush1.msra.mxu1 %v835_v51  ;;  %1461 = vmatprep.subr.mxu0 %v605_v53  ;;  %v513_v51 = vld [vmem:[%s8429_s1 + $0xe48] sm:$0xff] }
  0xcc   :  { %1532 = vmatprep.subr.mxu1 %v829_v54  ;;  %1462 = vmatpush1.msra.mxu0 %v604_v55  ;;  %v737_v53 = vld [vmem:[%s8429_s1 + $0x1548] sm:$0xff]  ;;  %v507_v54 = vld [vmem:[%s8429_s1 + $0xe18] sm:$0xff] }
  0xcd   :  { %1533 = vmatpush1.msra.mxu1 %v828_v56  ;;  %1463 = vmatprep.subr.mxu0 %v598_v57  ;;  %v731_v55 = vld [vmem:[%s8429_s1 + $0x1518] sm:$0xff]  ;;  %v506_v56 = vld [vmem:[%s8429_s1 + $0xe10] sm:$0xff] }
  0xce   :  { %1534 = vmatprep.subr.mxu1 %v822_v58  ;;  %1464 = vmatpush1.msra.mxu0 %v597_v59  ;;  %v730_v57 = vld [vmem:[%s8429_s1 + $0x1510] sm:$0xff]  ;;  %v724_v58 = vld [vmem:[%s8429_s1 + $0x14e0] sm:$0xff] }
  0xcf   :  { %1535 = vmatpush1.msra.mxu1 %v821_v60  ;;  %1465 = vmatprep.subr.mxu0 %v591_v61  ;;  %v948_v59 = vld [vmem:[%s8429_s1 + $0x1be0] sm:$0xff]  ;;  %v723_v60 = vld [vmem:[%s8429_s1 + $0x14d8] sm:$0xff] }
  0xd0   :  { %1536 = vmatprep.subr.mxu1 %v815_v63  ;;  %1466 = vmatpush1.msra.mxu0 %v590_v0  ;;  %v947_v61 = vld [vmem:[%s8429_s1 + $0x1bd8] sm:$0xff]  ;;  %v717_v63 = vld [vmem:[%s8429_s1 + $0x14a8] sm:$0xff] }
  0xd1   :  { %1537 = vmatpush1.msra.mxu1 %v814_v1  ;;  %1467 = vmatprep.subr.mxu0 %v584_v2  ;;  %v941_v0 = vld [vmem:[%s8429_s1 + $0x1ba8] sm:$0xff]  ;;  %v716_v1 = vld [vmem:[%s8429_s1 + $0x14a0] sm:$0xff] }
  0xd2   :  { %1538 = vmatprep.subr.mxu1 %v808_v4  ;;  %1468 = vmatpush1.msra.mxu0 %v583_v5  ;;  %v940_v2 = vld [vmem:[%s8429_s1 + $0x1ba0] sm:$0xff]  ;;  %v710_v4 = vld [vmem:[%s8429_s1 + $0x1470] sm:$0xff] }
  0xd3   :  { %1539 = vmatpush1.msra.mxu1 %v807_v6  ;;  %1469 = vmatprep.subr.mxu0 %v577_v7  ;;  %v934_v5 = vld [vmem:[%s8429_s1 + $0x1b70] sm:$0xff]  ;;  %v709_v6 = vld [vmem:[%s8429_s1 + $0x1468] sm:$0xff] }
  0xd4   :  { %1540 = vmatprep.subr.mxu1 %v801_v9  ;;  %1470 = vmatpush1.msra.mxu0 %v576_v10  ;;  %v933_v7 = vld [vmem:[%s8429_s1 + $0x1b68] sm:$0xff]  ;;  %v703_v9 = vld [vmem:[%s8429_s1 + $0x1438] sm:$0xff] }
  0xd5   :  { %1541 = vmatpush1.msra.mxu1 %v800_v12  ;;  %1471 = vmatprep.subr.mxu0 %v570_v13  ;;  %v927_v10 = vld [vmem:[%s8429_s1 + $0x1b38] sm:$0xff]  ;;  %v702_v12 = vld [vmem:[%s8429_s1 + $0x1430] sm:$0xff] }
  0xd6   :  { %1542 = vmatprep.subr.mxu1 %v794_v14  ;;  %1472 = vmatpush1.msra.mxu0 %v569_v15  ;;  %v926_v13 = vld [vmem:[%s8429_s1 + $0x1b30] sm:$0xff]  ;;  %v696_v14 = vld [vmem:[%s8429_s1 + $0x1400] sm:$0xff] }
  0xd7   :  { %1543 = vmatpush1.msra.mxu1 %v793_v17  ;;  %1473 = vmatprep.subr.mxu0 %v563_v18  ;;  %v920_v15 = vld [vmem:[%s8429_s1 + $0x1b00] sm:$0xff]  ;;  %v695_v17 = vld [vmem:[%s8429_s1 + $0x13f8] sm:$0xff] }
  0xd8   :  { %1544 = vmatprep.subr.mxu1 %v787_v19  ;;  %1474 = vmatpush1.msra.mxu0 %v562_v20  ;;  %v919_v18 = vld [vmem:[%s8429_s1 + $0x1af8] sm:$0xff]  ;;  %v689_v19 = vld [vmem:[%s8429_s1 + $0x13c8] sm:$0xff] }
  0xd9   :  { %1545 = vmatpush1.msra.mxu1 %v786_v22  ;;  %1475 = vmatprep.subr.mxu0 %v556_v23  ;;  %v913_v20 = vld [vmem:[%s8429_s1 + $0x1ac8] sm:$0xff]  ;;  %v688_v22 = vld [vmem:[%s8429_s1 + $0x13c0] sm:$0xff] }
  0xda   :  { %1546 = vmatprep.subr.mxu1 %v780_v24  ;;  %1476 = vmatpush1.msra.mxu0 %v555_v52  ;;  %v912_v23 = vld [vmem:[%s8429_s1 + $0x1ac0] sm:$0xff] }
  0xdb   :  { %1547 = vmatpush1.msra.mxu1 %v779_v26  ;;  %1477 = vmatprep.subr.mxu0 %v549_v27 }
  0xdc   :  { %1548 = vmatprep.subr.mxu1 %v773_v29  ;;  %1478 = vmatpush1.msra.mxu0 %v548_v30 }
  0xdd   :  { %1549 = vmatpush1.msra.mxu1 %v772_v31  ;;  %1479 = vmatprep.subr.mxu0 %v542_v32 }
  0xde   :  { %1550 = vmatprep.subr.mxu1 %v766_v33  ;;  %1480 = vmatpush1.msra.mxu0 %v541_v34 }
  0xdf   :  { %1551 = vmatpush1.msra.mxu1 %v765_v35  ;;  %1481 = vmatprep.subr.mxu0 %v535_v36 }
  0xe0   :  { %1552 = vmatprep.subr.mxu1 %v759_v37  ;;  %1482 = vmatpush1.msra.mxu0 %v534_v38 }
  0xe1   :  { %1553 = vmatpush1.msra.mxu1 %v758_v39  ;;  %1483 = vmatprep.subr.mxu0 %v528_v40 }
  0xe2   :  { %1554 = vmatprep.subr.mxu1 %v752_v42  ;;  %1484 = vmatpush1.msra.mxu0 %v527_v43 }
  0xe3   :  { %1555 = vmatpush1.msra.mxu1 %v751_v44  ;;  %1485 = vmatprep.subr.mxu0 %v521_v45 }
  0xe4   :  { %1556 = vmatprep.subr.mxu1 %v745_v46  ;;  %1486 = vmatpush1.msra.mxu0 %v520_v47 }
  0xe5   :  { %1557 = vmatpush1.msra.mxu1 %v744_v48  ;;  %1487 = vmatprep.subr.mxu0 %v514_v49 }
  0xe6   :  { %1558 = vmatprep.subr.mxu1 %v738_v50  ;;  %1488 = vmatpush1.msra.mxu0 %v513_v51 }
  0xe7   :  { %1559 = vmatpush1.msra.mxu1 %v737_v53  ;;  %1489 = vmatprep.subr.mxu0 %v507_v54 }
  0xe8   :  { %1560 = vmatprep.subr.mxu1 %v731_v55  ;;  %1490 = vmatpush1.msra.mxu0 %v506_v56 }
  0xe9   :  { %1561 = vmatpush1.msra.mxu1 %v730_v57  ;;  %1491 = vmatprep.subr.mxu0 %v724_v58 }
  0xea   :  { %1562 = vmatprep.subr.mxu1 %v948_v59  ;;  %1492 = vmatpush2.msra.mxu0 %v723_v60 }
  0xeb   :  { %1563 = vmatpush2.msra.mxu1 %v947_v61  ;;  %1493 = vmatprep.subr.mxu0 %v717_v63 }
  0xec   :  { %1564 = vmatprep.subr.mxu1 %v941_v0  ;;  %1494 = vmatpush2.msra.mxu0 %v716_v1 }
  0xed   :  { %1565 = vmatpush2.msra.mxu1 %v940_v2  ;;  %1495 = vmatprep.subr.mxu0 %v710_v4 }
  0xee   :  { %1566 = vmatprep.subr.mxu1 %v934_v5  ;;  %1496 = vmatpush2.msra.mxu0 %v709_v6 }
  0xef   :  { %1567 = vmatpush2.msra.mxu1 %v933_v7  ;;  %1497 = vmatprep.subr.mxu0 %v703_v9 }
  0xf0   :  { %1568 = vmatprep.subr.mxu1 %v927_v10  ;;  %1498 = vmatpush2.msra.mxu0 %v702_v12 }
  0xf1   :  { %1569 = vmatpush2.msra.mxu1 %v926_v13  ;;  %1499 = vmatprep.subr.mxu0 %v696_v14 }
  0xf2   :  { %1570 = vmatprep.subr.mxu1 %v920_v15 }
  0xf3   :  { %23 = vsyncpa [#allocation5], 0  ;;  %1500 = vmatpush2.msra.mxu0 %v695_v17  ;;  %1571 = vmatpush2.msra.mxu1 %v919_v18  ;;  %v682_v24 = vld [vmem:[%s8429_s1 + $0x1390] sm:$0xff]  ;;  %v681_v26 = vld [vmem:[%s8429_s1 + $0x1388] sm:$0xff]  ;;  %v956_v48 = vsub.s32 0, %v4407_v41  ;;  %vm2586_vm0 = vcmask 130048  }
  0xf4   :  { %v906_v52 = vld [vmem:[%s8429_s1 + $0x1a90] sm:$0xff]  ;;  %1501 = vmatprep.subr.mxu0 %v689_v19  ;;  %1572 = vmatprep.subr.mxu1 %v913_v20  ;;  %v905_v27 = vld [vmem:[%s8429_s1 + $0x1a88] sm:$0xff]  ;;  %v675_v29 = vld [vmem:[%s8429_s1 + $0x1358] sm:$0xff]  ;;  %vm3362_vm1 = vcmask 254976   ;;  %vm4012_vm2 = vmmov 0   ;;  %vm3405_vm3 = vcmask 261120  }
  0xf5   :  { %1502 = vmatpush2.msra.mxu0 %v688_v22  ;;  %1573 = vmatpush2.msra.mxu1 %v912_v23  ;;  %v899_v30 = vld [vmem:[%s8429_s1 + $0x1a58] sm:$0xff]  ;;  %v674_v31 = vld [vmem:[%s8429_s1 + $0x1350] sm:$0xff]  ;;  %v668_v33 = vld [vmem:[%s8429_s1 + $0x1320] sm:$0xff]  ;;  %vm3495_vm4 = vcmask 523264   ;;  %vm3658_vm5 = vcmask 41984  }
  0xf6   :  { %1503 = vmatprep.subr.mxu0 %v682_v24  ;;  %1574 = vmatprep.subr.mxu1 %v906_v52  ;;  %v898_v32 = vld [vmem:[%s8429_s1 + $0x1a50] sm:$0xff]  ;;  %v892_v34 = vld [vmem:[%s8429_s1 + $0x1a20] sm:$0xff]  ;;  %v667_v35 = vld [vmem:[%s8429_s1 + $0x1318] sm:$0xff] }
  0xf7   :  { %1504 = vmatpush2.msra.mxu0 %v681_v26  ;;  %1575 = vmatpush2.msra.mxu1 %v905_v27  ;;  %v891_v36 = vld [vmem:[%s8429_s1 + $0x1a18] sm:$0xff]  ;;  %v661_v37 = vld [vmem:[%s8429_s1 + $0x12e8] sm:$0xff]  ;;  %v660_v39 = vld [vmem:[%s8429_s1 + $0x12e0] sm:$0xff] }
  0xf8   :  { %1505 = vmatprep.subr.mxu0 %v675_v29  ;;  %1576 = vmatprep.subr.mxu1 %v899_v30  ;;  %v885_v38 = vld [vmem:[%s8429_s1 + $0x19e8] sm:$0xff]  ;;  %v884_v40 = vld [vmem:[%s8429_s1 + $0x19e0] sm:$0xff]  ;;  %v654_v42 = vld [vmem:[%s8429_s1 + $0x12b0] sm:$0xff] }
  0xf9   :  { %1506 = vmatpush2.msra.mxu0 %v674_v31  ;;  %1577 = vmatpush2.msra.mxu1 %v898_v32  ;;  %v878_v43 = vld [vmem:[%s8429_s1 + $0x19b0] sm:$0xff]  ;;  %v653_v44 = vld [vmem:[%s8429_s1 + $0x12a8] sm:$0xff]  ;;  %v647_v46 = vld [vmem:[%s8429_s1 + $0x1278] sm:$0xff] }
  0xfa   :  { %1507 = vmatprep.subr.mxu0 %v668_v33  ;;  %1578 = vmatprep.subr.mxu1 %v892_v34  ;;  %v877_v45 = vld [vmem:[%s8429_s1 + $0x19a8] sm:$0xff]  ;;  %v871_v47 = vld [vmem:[%s8429_s1 + $0x1978] sm:$0xff]  ;;  %v646_v49 = vld [vmem:[%s8429_s1 + $0x1270] sm:$0xff] }
  0xfb   :  { %1508 = vmatpush2.msra.mxu0 %v667_v35  ;;  %1579 = vmatpush2.msra.mxu1 %v891_v36  ;;  %v870_v50 = vld [vmem:[%s8429_s1 + $0x1970] sm:$0xff]  ;;  %v952_v51 = vld [vmem:[%s8430_s2] sm:$0x7f]  ;;  %v639_v55 = vld [vmem:[%s8429_s1 + $0x1238] sm:$0xff] }
  0xfc   :  { %1509 = vmatprep.subr.mxu0 %v661_v37  ;;  %1580 = vmatprep.subr.mxu1 %v885_v38  ;;  %v640_v53 = vld [vmem:[%s8429_s1 + $0x1240] sm:$0xff]  ;;  %v863_v56 = vld [vmem:[%s8429_s1 + $0x1938] sm:$0xff]  ;;  %v633_v57 = vld [vmem:[%s8429_s1 + $0x1208] sm:$0xff]  ;;  %v957_v59 = vrot.slane %v952_v51, %v956_v48 }
  0xfd   :  { %1510 = vmatpush2.msra.mxu0 %v660_v39  ;;  %1581 = vmatpush2.msra.mxu1 %v884_v40  ;;  %v864_v54 = vld [vmem:[%s8429_s1 + $0x1940] sm:$0xff]  ;;  %v857_v58 = vld [vmem:[%s8429_s1 + $0x1908] sm:$0xff]  ;;  %v626_v63 = vld [vmem:[%s8429_s1 + $0x11d0] sm:$0xff] }
  0xfe   :  { %1511 = vmatprep.subr.mxu0 %v654_v42  ;;  %1582 = vmatprep.subr.mxu1 %v878_v43  ;;  %v632_v60 = vld [vmem:[%s8429_s1 + $0x1200] sm:$0xff]  ;;  %v850_v0 = vld [vmem:[%s8429_s1 + $0x18d0] sm:$0xff]  ;;  %v625_v1 = vld [vmem:[%s8429_s1 + $0x11c8] sm:$0xff] }
  0xff   :  { %1512 = vmatpush2.msra.mxu0 %v653_v44  ;;  %1583 = vmatpush2.msra.mxu1 %v877_v45  ;;  %v856_v61 = vld [vmem:[%s8429_s1 + $0x1900] sm:$0xff]  ;;  %v849_v2 = vld [vmem:[%s8429_s1 + $0x18c8] sm:$0xff]  ;;  %v619_v5 = vld [vmem:[%s8429_s1 + $0x1198] sm:$0xff] }
 0x100   :  { %1513 = vmatprep.subr.mxu0 %v647_v46  ;;  %1584 = vmatprep.subr.mxu1 %v871_v47  ;;  %v843_v6 = vld [vmem:[%s8429_s1 + $0x1898] sm:$0xff]  ;;  %v618_v9 = vld [vmem:[%s8429_s1 + $0x1190] sm:$0xff]  ;;  %v165_v17 = vld [vmem:[%s8429_s1 + $0x368] sm:$0xff] }
 0x101   :  { %1514 = vmatpush2.msra.mxu0 %v646_v49  ;;  %1585 = vmatpush2.msra.mxu1 %v870_v50  ;;  %v842_v12 = vld [vmem:[%s8429_s1 + $0x1890] sm:$0xff]  ;;  %v389_v18 = vld [vmem:[%s8429_s1 + $0xa68] sm:$0xff]  ;;  %v159_v19 = vld [vmem:[%s8429_s1 + $0x338] sm:$0xff] }
 0x102   :  { %1515 = vmatprep.subr.mxu0 %v640_v53  ;;  %1586 = vmatprep.subr.mxu1 %v864_v54  ;;  %v166_v14 = vld [vmem:[%s8429_s1 + $0x370] sm:$0xff]  ;;  %v383_v20 = vld [vmem:[%s8429_s1 + $0xa38] sm:$0xff]  ;;  %v152_v24 = vld [vmem:[%s8429_s1 + $0x300] sm:$0xff] }
 0x103   :  { %1516 = vmatpush2.msra.mxu0 %v639_v55  ;;  %1587 = vmatpush2.msra.mxu1 %v863_v56  ;;  %v390_v15 = vld [vmem:[%s8429_s1 + $0xa70] sm:$0xff]  ;;  %v376_v52 = vld [vmem:[%s8429_s1 + $0xa00] sm:$0xff]  ;;  %v151_v26 = vld [vmem:[%s8429_s1 + $0x2f8] sm:$0xff] }
 0x104   :  { %1517 = vmatprep.subr.mxu0 %v633_v57  ;;  %1588 = vmatprep.subr.mxu1 %v857_v58  ;;  %v1099_v4 = vpop.f32.mrf.mxu0  ;;  %v158_v22 = vld [vmem:[%s8429_s1 + $0x330] sm:$0xff]  ;;  %v375_v27 = vld [vmem:[%s8429_s1 + $0x9f8] sm:$0xff]  ;;  %v145_v29 = vld [vmem:[%s8429_s1 + $0x2c8] sm:$0xff] }
 0x105   :  { %1518 = vmatpush2.msra.mxu0 %v632_v60  ;;  %1589 = vmatpush2.msra.mxu1 %v856_v61  ;;  %v1100_v7 = vadd.f32 %v1099_v4, %v957_v59  ;;  %v382_v23 = vld [vmem:[%s8429_s1 + $0xa30] sm:$0xff]  ;;  %v369_v30 = vld [vmem:[%s8429_s1 + $0x9c8] sm:$0xff]  ;;  %v144_v31 = vld [vmem:[%s8429_s1 + $0x2c0] sm:$0xff] }
 0x106   :  { %1519 = vmatprep.subr.mxu0 %v626_v63  ;;  %1590 = vmatprep.subr.mxu1 %v850_v0  ;;  %v1170_v10 = vpop.f32.mrf.mxu1  ;;  %v368_v32 = vld [vmem:[%s8429_s1 + $0x9c0] sm:$0xff]  ;;  %v138_v33 = vld [vmem:[%s8429_s1 + $0x290] sm:$0xff]  ;;  %v137_v35 = vld [vmem:[%s8429_s1 + $0x288] sm:$0xff] }
 0x107   :  { %1520 = vmatpush2.msra.mxu0 %v625_v1  ;;  %1591 = vmatpush2.msra.mxu1 %v849_v2  ;;  %v5694_v13 = vadd.f32 %v1170_v10, %v1100_v7  ;;  %v362_v34 = vld [vmem:[%s8429_s1 + $0x990] sm:$0xff]  ;;  %v361_v36 = vld [vmem:[%s8429_s1 + $0x988] sm:$0xff]  ;;  %v131_v37 = vld [vmem:[%s8429_s1 + $0x258] sm:$0xff] }
 0x108   :  { %1521 = vmatprep.subr.mxu0 %v619_v5  ;;  %1592 = vmatprep.subr.mxu1 %v843_v6  ;;  %v355_v38 = vld [vmem:[%s8429_s1 + $0x958] sm:$0xff]  ;;  %v130_v39 = vld [vmem:[%s8429_s1 + $0x250] sm:$0xff]  ;;  %v124_v42 = vld [vmem:[%s8429_s1 + $0x220] sm:$0xff] }
 0x109   :  { %1522 = vmatpush2.msra.mxu0 %v618_v9  ;;  %1523 = vmatprep.mubr.f32.mxu0 %v4900_v25  ;;  %v354_v40 = vld [vmem:[%s8429_s1 + $0x950] sm:$0xff]  ;;  %v348_v43 = vld [vmem:[%s8429_s1 + $0x920] sm:$0xff]  ;;  %v123_v44 = vld [vmem:[%s8429_s1 + $0x218] sm:$0xff] }
 0x10a   :  { %1593 = vmatpush2.msra.mxu1 %v842_v12  ;;  %1524 = vmatmul.mubr.f32.vlgmr.msra.gmra.mxu0 %v4869_v16  ;;  %v347_v45 = vld [vmem:[%s8429_s1 + $0x918] sm:$0xff]  ;;  %v117_v46 = vld [vmem:[%s8429_s1 + $0x1e8] sm:$0xff]  ;;  %v116_v49 = vld [vmem:[%s8429_s1 + $0x1e0] sm:$0xff] }
 0x10b   :  { %1594 = vmatprep.mubr.f32.mxu1 %v4910_v28  ;;  %1601 = vmatprep.subr.mxu0 %v166_v14  ;;  %v341_v47 = vld [vmem:[%s8429_s1 + $0x8e8] sm:$0xff]  ;;  %v340_v50 = vld [vmem:[%s8429_s1 + $0x8e0] sm:$0xff]  ;;  %v110_v51 = vld [vmem:[%s8429_s1 + $0x1b0] sm:$0xff] }
 0x10c   :  { %1672 = vmatprep.subr.mxu1 %v390_v15  ;;  %1595 = vmatmul.mubr.f32.vlgmr.msra.gmra.mxu1 %v4884_v21  ;;  %v334_v53 = vld [vmem:[%s8429_s1 + $0x8b0] sm:$0xff]  ;;  %v109_v54 = vld [vmem:[%s8429_s1 + $0x1a8] sm:$0xff]  ;;  %v103_v56 = vld [vmem:[%s8429_s1 + $0x178] sm:$0xff] }
 0x10d   :  { %1602 = vmatpush1.msra.mxu0 %v165_v17  ;;  %1673 = vmatpush1.msra.mxu1 %v389_v18  ;;  %v333_v55 = vld [vmem:[%s8429_s1 + $0x8a8] sm:$0xff]  ;;  %v327_v57 = vld [vmem:[%s8429_s1 + $0x878] sm:$0xff]  ;;  %v102_v58 = vld [vmem:[%s8429_s1 + $0x170] sm:$0xff] }
 0x10e   :  { %1603 = vmatprep.subr.mxu0 %v159_v19  ;;  %1674 = vmatprep.subr.mxu1 %v383_v20  ;;  %v326_v59 = vld [vmem:[%s8429_s1 + $0x870] sm:$0xff]  ;;  %v96_v60 = vld [vmem:[%s8429_s1 + $0x140] sm:$0xff]  ;;  %v95_v63 = vld [vmem:[%s8429_s1 + $0x138] sm:$0xff] }
 0x10f   :  { %1604 = vmatpush1.msra.mxu0 %v158_v22  ;;  %1675 = vmatpush1.msra.mxu1 %v382_v23  ;;  %v320_v61 = vld [vmem:[%s8429_s1 + $0x840] sm:$0xff]  ;;  %v319_v0 = vld [vmem:[%s8429_s1 + $0x838] sm:$0xff]  ;;  %v89_v1 = vld [vmem:[%s8429_s1 + $0x108] sm:$0xff] }
 0x110   :  { %1605 = vmatprep.subr.mxu0 %v152_v24  ;;  %1676 = vmatprep.subr.mxu1 %v376_v52  ;;  %v313_v2 = vld [vmem:[%s8429_s1 + $0x808] sm:$0xff]  ;;  %v88_v4 = vld [vmem:[%s8429_s1 + $0x100] sm:$0xff]  ;;  %v82_v6 = vld [vmem:[%s8429_s1 + $0xd0] sm:$0xff] }
 0x111   :  { %1606 = vmatpush1.msra.mxu0 %v151_v26  ;;  %1677 = vmatpush1.msra.mxu1 %v375_v27  ;;  %v312_v5 = vld [vmem:[%s8429_s1 + $0x800] sm:$0xff]  ;;  %v306_v7 = vld [vmem:[%s8429_s1 + $0x7d0] sm:$0xff]  ;;  %v81_v9 = vld [vmem:[%s8429_s1 + $0xc8] sm:$0xff] }
 0x112   :  { %1607 = vmatprep.subr.mxu0 %v145_v29  ;;  %1678 = vmatprep.subr.mxu1 %v369_v30  ;;  %v305_v10 = vld [vmem:[%s8429_s1 + $0x7c8] sm:$0xff]  ;;  %v75_v12 = vld [vmem:[%s8429_s1 + $0x98] sm:$0xff]  ;;  %v74_v15 = vld [vmem:[%s8429_s1 + $0x90] sm:$0xff] }
 0x113   :  { %1608 = vmatpush1.msra.mxu0 %v144_v31  ;;  %1679 = vmatpush1.msra.mxu1 %v368_v32  ;;  %v299_v14 = vld [vmem:[%s8429_s1 + $0x798] sm:$0xff]  ;;  %v298_v17 = vld [vmem:[%s8429_s1 + $0x790] sm:$0xff]  ;;  %v68_v18 = vld [vmem:[%s8429_s1 + $0x60] sm:$0xff] }
 0x114   :  { %1609 = vmatprep.subr.mxu0 %v138_v33  ;;  %1680 = vmatprep.subr.mxu1 %v362_v34  ;;  %v292_v19 = vld [vmem:[%s8429_s1 + $0x760] sm:$0xff]  ;;  %v67_v20 = vld [vmem:[%s8429_s1 + $0x58] sm:$0xff]  ;;  %v61_v23 = vld [vmem:[%s8429_s1 + $0x28] sm:$0xff] }
 0x115   :  { %1610 = vmatpush1.msra.mxu0 %v137_v35  ;;  %1681 = vmatpush1.msra.mxu1 %v361_v36  ;;  %v291_v22 = vld [vmem:[%s8429_s1 + $0x758] sm:$0xff]  ;;  %v285_v24 = vld [vmem:[%s8429_s1 + $0x728] sm:$0xff]  ;;  %v60_v52 = vld [vmem:[%s8429_s1 + $0x20] sm:$0xff] }
 0x116   :  { %1611 = vmatprep.subr.mxu0 %v131_v37  ;;  %1682 = vmatprep.subr.mxu1 %v355_v38  ;;  %v284_v26 = vld [vmem:[%s8429_s1 + $0x720] sm:$0xff]  ;;  %v278_v27 = vld [vmem:[%s8429_s1 + $0x6f0] sm:$0xff]  ;;  %v277_v30 = vld [vmem:[%s8429_s1 + $0x6e8] sm:$0xff] }
 0x117   :  { %1612 = vmatpush1.msra.mxu0 %v130_v39  ;;  %1683 = vmatpush1.msra.mxu1 %v354_v40  ;;  %v502_v29 = vld [vmem:[%s8429_s1 + $0xdf0] sm:$0xff]  ;;  %v501_v31 = vld [vmem:[%s8429_s1 + $0xde8] sm:$0xff]  ;;  %v271_v32 = vld [vmem:[%s8429_s1 + $0x6b8] sm:$0xff] }
 0x118   :  { %1613 = vmatprep.subr.mxu0 %v124_v42  ;;  %1684 = vmatprep.subr.mxu1 %v348_v43  ;;  %v495_v33 = vld [vmem:[%s8429_s1 + $0xdb8] sm:$0xff]  ;;  %v270_v34 = vld [vmem:[%s8429_s1 + $0x6b0] sm:$0xff]  ;;  %v264_v36 = vld [vmem:[%s8429_s1 + $0x680] sm:$0xff] }
 0x119   :  { %1614 = vmatpush1.msra.mxu0 %v123_v44  ;;  %1685 = vmatpush1.msra.mxu1 %v347_v45  ;;  %v494_v35 = vld [vmem:[%s8429_s1 + $0xdb0] sm:$0xff]  ;;  %v488_v37 = vld [vmem:[%s8429_s1 + $0xd80] sm:$0xff]  ;;  %v263_v38 = vld [vmem:[%s8429_s1 + $0x678] sm:$0xff] }
 0x11a   :  { %1615 = vmatprep.subr.mxu0 %v117_v46  ;;  %1686 = vmatprep.subr.mxu1 %v341_v47  ;;  %v487_v39 = vld [vmem:[%s8429_s1 + $0xd78] sm:$0xff]  ;;  %v257_v40 = vld [vmem:[%s8429_s1 + $0x648] sm:$0xff]  ;;  %v256_v43 = vld [vmem:[%s8429_s1 + $0x640] sm:$0xff] }
 0x11b   :  { %1616 = vmatpush1.msra.mxu0 %v116_v49  ;;  %1687 = vmatpush1.msra.mxu1 %v340_v50  ;;  %v481_v42 = vld [vmem:[%s8429_s1 + $0xd48] sm:$0xff]  ;;  %v480_v44 = vld [vmem:[%s8429_s1 + $0xd40] sm:$0xff]  ;;  %v250_v45 = vld [vmem:[%s8429_s1 + $0x610] sm:$0xff] }
 0x11c   :  { %1617 = vmatprep.subr.mxu0 %v110_v51  ;;  %1688 = vmatprep.subr.mxu1 %v334_v53  ;;  %v474_v46 = vld [vmem:[%s8429_s1 + $0xd10] sm:$0xff]  ;;  %v249_v47 = vld [vmem:[%s8429_s1 + $0x608] sm:$0xff]  ;;  %v243_v50 = vld [vmem:[%s8429_s1 + $0x5d8] sm:$0xff] }
 0x11d   :  { %1618 = vmatpush1.msra.mxu0 %v109_v54  ;;  %1689 = vmatpush1.msra.mxu1 %v333_v55  ;;  %v473_v49 = vld [vmem:[%s8429_s1 + $0xd08] sm:$0xff]  ;;  %v467_v51 = vld [vmem:[%s8429_s1 + $0xcd8] sm:$0xff]  ;;  %v242_v53 = vld [vmem:[%s8429_s1 + $0x5d0] sm:$0xff] }
 0x11e   :  { %1619 = vmatprep.subr.mxu0 %v103_v56  ;;  %1690 = vmatprep.subr.mxu1 %v327_v57  ;;  %v466_v54 = vld [vmem:[%s8429_s1 + $0xcd0] sm:$0xff]  ;;  %v236_v55 = vld [vmem:[%s8429_s1 + $0x5a0] sm:$0xff]  ;;  %v235_v57 = vld [vmem:[%s8429_s1 + $0x598] sm:$0xff] }
 0x11f   :  { %1620 = vmatpush1.msra.mxu0 %v102_v58  ;;  %1691 = vmatpush1.msra.mxu1 %v326_v59  ;;  %v460_v56 = vld [vmem:[%s8429_s1 + $0xca0] sm:$0xff]  ;;  %v459_v58 = vld [vmem:[%s8429_s1 + $0xc98] sm:$0xff]  ;;  %v229_v59 = vld [vmem:[%s8429_s1 + $0x568] sm:$0xff] }
 0x120   :  { %1621 = vmatprep.subr.mxu0 %v96_v60  ;;  %1692 = vmatprep.subr.mxu1 %v320_v61  ;;  %v453_v60 = vld [vmem:[%s8429_s1 + $0xc68] sm:$0xff]  ;;  %v228_v61 = vld [vmem:[%s8429_s1 + $0x560] sm:$0xff] }
 0x121   :  { %1622 = vmatpush1.msra.mxu0 %v95_v63  ;;  %1693 = vmatpush1.msra.mxu1 %v319_v0  ;;  %v452_v63 = vld [vmem:[%s8429_s1 + $0xc60] sm:$0xff]  ;;  %v222_v0 = vld [vmem:[%s8429_s1 + $0x530] sm:$0xff] }
 0x122   :  { %1623 = vmatprep.subr.mxu0 %v89_v1  ;;  %1694 = vmatprep.subr.mxu1 %v313_v2  ;;  %v446_v1 = vld [vmem:[%s8429_s1 + $0xc30] sm:$0xff]  ;;  %v221_v2 = vld [vmem:[%s8429_s1 + $0x528] sm:$0xff] }
 0x123   :  { %1624 = vmatpush1.msra.mxu0 %v88_v4  ;;  %1695 = vmatpush1.msra.mxu1 %v312_v5  ;;  %v445_v4 = vld [vmem:[%s8429_s1 + $0xc28] sm:$0xff]  ;;  %v215_v5 = vld [vmem:[%s8429_s1 + $0x4f8] sm:$0xff] }
 0x124   :  { %1625 = vmatprep.subr.mxu0 %v82_v6  ;;  %1696 = vmatprep.subr.mxu1 %v306_v7  ;;  %v439_v6 = vld [vmem:[%s8429_s1 + $0xbf8] sm:$0xff]  ;;  %v214_v7 = vld [vmem:[%s8429_s1 + $0x4f0] sm:$0xff] }
 0x125   :  { %1626 = vmatpush1.msra.mxu0 %v81_v9  ;;  %1697 = vmatpush1.msra.mxu1 %v305_v10  ;;  %v438_v9 = vld [vmem:[%s8429_s1 + $0xbf0] sm:$0xff]  ;;  %v208_v10 = vld [vmem:[%s8429_s1 + $0x4c0] sm:$0xff] }
 0x126   :  { %1627 = vmatprep.subr.mxu0 %v75_v12  ;;  %1698 = vmatprep.subr.mxu1 %v299_v14  ;;  %v432_v12 = vld [vmem:[%s8429_s1 + $0xbc0] sm:$0xff]  ;;  %v207_v14 = vld [vmem:[%s8429_s1 + $0x4b8] sm:$0xff] }
 0x127   :  { %1628 = vmatpush1.msra.mxu0 %v74_v15  ;;  %1699 = vmatpush1.msra.mxu1 %v298_v17  ;;  %v431_v15 = vld [vmem:[%s8429_s1 + $0xbb8] sm:$0xff]  ;;  %v201_v17 = vld [vmem:[%s8429_s1 + $0x488] sm:$0xff] }
 0x128   :  { %1629 = vmatprep.subr.mxu0 %v68_v18  ;;  %1700 = vmatprep.subr.mxu1 %v292_v19  ;;  %v425_v18 = vld [vmem:[%s8429_s1 + $0xb88] sm:$0xff]  ;;  %v200_v19 = vld [vmem:[%s8429_s1 + $0x480] sm:$0xff] }
 0x129   :  { %1630 = vmatpush1.msra.mxu0 %v67_v20  ;;  %1701 = vmatpush1.msra.mxu1 %v291_v22  ;;  %v424_v20 = vld [vmem:[%s8429_s1 + $0xb80] sm:$0xff]  ;;  %v194_v22 = vld [vmem:[%s8429_s1 + $0x450] sm:$0xff] }
 0x12a   :  { %1631 = vmatprep.subr.mxu0 %v61_v23  ;;  %1702 = vmatprep.subr.mxu1 %v285_v24  ;;  %v418_v23 = vld [vmem:[%s8429_s1 + $0xb50] sm:$0xff]  ;;  %v193_v24 = vld [vmem:[%s8429_s1 + $0x448] sm:$0xff] }
 0x12b   :  { %1632 = vmatpush1.msra.mxu0 %v60_v52  ;;  %1703 = vmatpush1.msra.mxu1 %v284_v26  ;;  %v417_v52 = vld [vmem:[%s8429_s1 + $0xb48] sm:$0xff]  ;;  %v187_v26 = vld [vmem:[%s8429_s1 + $0x418] sm:$0xff] }
 0x12c   :  { %1633 = vmatprep.subr.mxu0 %v278_v27  ;;  %1704 = vmatprep.subr.mxu1 %v502_v29  ;;  %v411_v27 = vld [vmem:[%s8429_s1 + $0xb18] sm:$0xff]  ;;  %v6054_v29 = vpop.f32.mrf.mxu0 }
 0x12d   :  { %1634 = vmatpush2.msra.mxu0 %v277_v30  ;;  %1705 = vmatpush2.msra.mxu1 %v501_v31  ;;  %v186_v30 = vld [vmem:[%s8429_s1 + $0x410] sm:$0xff] }
 0x12e   :  { %1635 = vmatprep.subr.mxu0 %v271_v32  ;;  %1706 = vmatprep.subr.mxu1 %v495_v33  ;;  %v410_v31 = vld [vmem:[%s8429_s1 + $0xb10] sm:$0xff]  ;;  %v180_v32 = vld [vmem:[%s8429_s1 + $0x3e0] sm:$0xff] }
 0x12f   :  { %1636 = vmatpush2.msra.mxu0 %v270_v34  ;;  %1707 = vmatpush2.msra.mxu1 %v494_v35  ;;  %v404_v33 = vld [vmem:[%s8429_s1 + $0xae0] sm:$0xff]  ;;  %v6068_v34 = vpop.f32.mrf.mxu1  ;;  %v179_v35 = vld [vmem:[%s8429_s1 + $0x3d8] sm:$0xff] }
 0x130   :  { %1637 = vmatprep.subr.mxu0 %v264_v36  ;;  %1708 = vmatprep.subr.mxu1 %v488_v37  ;;  %v403_v36 = vld [vmem:[%s8429_s1 + $0xad8] sm:$0xff] }
 0x131   :  { %1638 = vmatpush2.msra.mxu0 %v263_v38  ;;  %1709 = vmatpush2.msra.mxu1 %v487_v39  ;;  %v173_v38 = vld [vmem:[%s8429_s1 + $0x3a8] sm:$0xff] }
 0x132   :  { %1639 = vmatprep.subr.mxu0 %v257_v40  ;;  %1710 = vmatprep.subr.mxu1 %v481_v42  ;;  %v397_v39 = vld [vmem:[%s8429_s1 + $0xaa8] sm:$0xff]  ;;  %v172_v42 = vld [vmem:[%s8429_s1 + $0x3a0] sm:$0xff] }
 0x133   :  { %1640 = vmatpush2.msra.mxu0 %v256_v43  ;;  %1711 = vmatpush2.msra.mxu1 %v480_v44  ;;  %v396_v44 = vld [vmem:[%s8429_s1 + $0xaa0] sm:$0xff] }
 0x134   :  { %1641 = vmatprep.subr.mxu0 %v250_v45  ;;  %1712 = vmatprep.subr.mxu1 %v474_v46  ;;  %v838_v46 = vld [vmem:[%s8429_s1 + $0x1870] sm:$0xff] }
 0x135   :  { %1642 = vmatpush2.msra.mxu0 %v249_v47  ;;  %1713 = vmatpush2.msra.mxu1 %v473_v49  ;;  %v613_v47 = vld [vmem:[%s8429_s1 + $0x1168] sm:$0xff] }
 0x136   :  { %1643 = vmatprep.subr.mxu0 %v243_v50  ;;  %1714 = vmatprep.subr.mxu1 %v467_v51  ;;  %v837_v49 = vld [vmem:[%s8429_s1 + $0x1868] sm:$0xff]  ;;  %v607_v50 = vld [vmem:[%s8429_s1 + $0x1138] sm:$0xff] }
 0x137   :  { %1644 = vmatpush2.msra.mxu0 %v242_v53  ;;  %1715 = vmatpush2.msra.mxu1 %v466_v54  ;;  %v831_v51 = vld [vmem:[%s8429_s1 + $0x1838] sm:$0xff]  ;;  %v606_v53 = vld [vmem:[%s8429_s1 + $0x1130] sm:$0xff] }
 0x138   :  { %1645 = vmatprep.subr.mxu0 %v236_v55  ;;  %1716 = vmatprep.subr.mxu1 %v460_v56  ;;  %v830_v54 = vld [vmem:[%s8429_s1 + $0x1830] sm:$0xff]  ;;  %v600_v55 = vld [vmem:[%s8429_s1 + $0x1100] sm:$0xff] }
 0x139   :  { %1646 = vmatpush2.msra.mxu0 %v235_v57  ;;  %1717 = vmatpush2.msra.mxu1 %v459_v58  ;;  %v824_v56 = vld [vmem:[%s8429_s1 + $0x1800] sm:$0xff]  ;;  %v599_v57 = vld [vmem:[%s8429_s1 + $0x10f8] sm:$0xff] }
 0x13a   :  { %1647 = vmatprep.subr.mxu0 %v229_v59  ;;  %1718 = vmatprep.subr.mxu1 %v453_v60  ;;  %v823_v58 = vld [vmem:[%s8429_s1 + $0x17f8] sm:$0xff]  ;;  %v593_v59 = vld [vmem:[%s8429_s1 + $0x10c8] sm:$0xff] }
 0x13b   :  { %1648 = vmatpush2.msra.mxu0 %v228_v61  ;;  %1719 = vmatpush2.msra.mxu1 %v452_v63  ;;  %v817_v60 = vld [vmem:[%s8429_s1 + $0x17c8] sm:$0xff]  ;;  %v592_v61 = vld [vmem:[%s8429_s1 + $0x10c0] sm:$0xff] }
 0x13c   :  { %1649 = vmatprep.subr.mxu0 %v222_v0  ;;  %1720 = vmatprep.subr.mxu1 %v446_v1  ;;  %v816_v63 = vld [vmem:[%s8429_s1 + $0x17c0] sm:$0xff]  ;;  %v586_v0 = vld [vmem:[%s8429_s1 + $0x1090] sm:$0xff] }
 0x13d   :  { %1650 = vmatpush2.msra.mxu0 %v221_v2  ;;  %1721 = vmatpush2.msra.mxu1 %v445_v4  ;;  %v810_v1 = vld [vmem:[%s8429_s1 + $0x1790] sm:$0xff]  ;;  %v585_v2 = vld [vmem:[%s8429_s1 + $0x1088] sm:$0xff] }
 0x13e   :  { %1651 = vmatprep.subr.mxu0 %v215_v5  ;;  %1722 = vmatprep.subr.mxu1 %v439_v6  ;;  %v809_v4 = vld [vmem:[%s8429_s1 + $0x1788] sm:$0xff]  ;;  %v579_v5 = vld [vmem:[%s8429_s1 + $0x1058] sm:$0xff] }
 0x13f   :  { %1652 = vmatpush2.msra.mxu0 %v214_v7  ;;  %1723 = vmatpush2.msra.mxu1 %v438_v9  ;;  %v803_v6 = vld [vmem:[%s8429_s1 + $0x1758] sm:$0xff]  ;;  %v578_v7 = vld [vmem:[%s8429_s1 + $0x1050] sm:$0xff] }
 0x140   :  { %1653 = vmatprep.subr.mxu0 %v208_v10  ;;  %1724 = vmatprep.subr.mxu1 %v432_v12  ;;  %v802_v9 = vld [vmem:[%s8429_s1 + $0x1750] sm:$0xff]  ;;  %v572_v10 = vld [vmem:[%s8429_s1 + $0x1020] sm:$0xff] }
 0x141   :  { %1654 = vmatpush2.msra.mxu0 %v207_v14  ;;  %1725 = vmatpush2.msra.mxu1 %v431_v15  ;;  %v796_v12 = vld [vmem:[%s8429_s1 + $0x1720] sm:$0xff]  ;;  %v571_v14 = vld [vmem:[%s8429_s1 + $0x1018] sm:$0xff] }
 0x142   :  { %1655 = vmatprep.subr.mxu0 %v201_v17  ;;  %1726 = vmatprep.subr.mxu1 %v425_v18  ;;  %v795_v15 = vld [vmem:[%s8429_s1 + $0x1718] sm:$0xff]  ;;  %v565_v17 = vld [vmem:[%s8429_s1 + $0xfe8] sm:$0xff] }
 0x143   :  { %1656 = vmatpush2.msra.mxu0 %v200_v19  ;;  %1727 = vmatpush2.msra.mxu1 %v424_v20  ;;  %v789_v18 = vld [vmem:[%s8429_s1 + $0x16e8] sm:$0xff]  ;;  %v564_v19 = vld [vmem:[%s8429_s1 + $0xfe0] sm:$0xff] }
 0x144   :  { %1657 = vmatprep.subr.mxu0 %v194_v22  ;;  %1728 = vmatprep.subr.mxu1 %v418_v23  ;;  %v788_v20 = vld [vmem:[%s8429_s1 + $0x16e0] sm:$0xff]  ;;  %v558_v22 = vld [vmem:[%s8429_s1 + $0xfb0] sm:$0xff] }
 0x145   :  { %1658 = vmatpush2.msra.mxu0 %v193_v24  ;;  %1729 = vmatpush2.msra.mxu1 %v417_v52  ;;  %v782_v23 = vld [vmem:[%s8429_s1 + $0x16b0] sm:$0xff]  ;;  %v557_v24 = vld [vmem:[%s8429_s1 + $0xfa8] sm:$0xff] }
 0x146   :  { %1659 = vmatprep.subr.mxu0 %v187_v26  ;;  %1730 = vmatprep.subr.mxu1 %v411_v27  ;;  %v1241_v37 = vpop.f32.mrf.mxu0  ;;  %v781_v52 = vld [vmem:[%s8429_s1 + $0x16a8] sm:$0xff]  ;;  %v551_v26 = vld [vmem:[%s8429_s1 + $0xf78] sm:$0xff] }
 0x147   :  { %1660 = vmatpush2.msra.mxu0 %v186_v30  ;;  %1731 = vmatpush2.msra.mxu1 %v410_v31  ;;  %v1242_v40 = vadd.f32 %v1241_v37, %v5694_v13  ;;  %v614_v13 = vld [vmem:[%s8429_s1 + $0x1170] sm:$0xff]  ;;  %v775_v27 = vld [vmem:[%s8429_s1 + $0x1678] sm:$0xff]  ;;  %v537_v37 = vld [vmem:[%s8429_s1 + $0xf08] sm:$0xff] }
 0x148   :  { %1661 = vmatprep.subr.mxu0 %v180_v32  ;;  %1732 = vmatprep.subr.mxu1 %v404_v33  ;;  %v1312_v43 = vpop.f32.mrf.mxu1  ;;  %v550_v30 = vld [vmem:[%s8429_s1 + $0xf70] sm:$0xff]  ;;  %v544_v32 = vld [vmem:[%s8429_s1 + $0xf40] sm:$0xff] }
 0x149   :  { %1662 = vmatpush2.msra.mxu0 %v179_v35  ;;  %1733 = vmatpush2.msra.mxu1 %v403_v36  ;;  %v6089_v45 = vadd.f32 %v1312_v43, %v1242_v40  ;;  %v774_v31 = vld [vmem:[%s8429_s1 + $0x1670] sm:$0xff]  ;;  %v768_v33 = vld [vmem:[%s8429_s1 + $0x1640] sm:$0xff]  ;;  %v543_v35 = vld [vmem:[%s8429_s1 + $0xf38] sm:$0xff] }
 0x14a   :  { %1663 = vmatprep.subr.mxu0 %v173_v38  ;;  %1734 = vmatprep.subr.mxu1 %v397_v39  ;;  %v767_v36 = vld [vmem:[%s8429_s1 + $0x1638] sm:$0xff]  ;;  %v761_v38 = vld [vmem:[%s8429_s1 + $0x1608] sm:$0xff]  ;;  %v536_v39 = vld [vmem:[%s8429_s1 + $0xf00] sm:$0xff] }
 0x14b   :  { %1664 = vmatpush2.msra.mxu0 %v172_v42  ;;  %1665 = vmatprep.mubr.f32.mxu0 %v4495_v8  ;;  %v760_v40 = vld [vmem:[%s8429_s1 + $0x1600] sm:$0xff]  ;;  %v530_v42 = vld [vmem:[%s8429_s1 + $0xed0] sm:$0xff] }
 0x14c   :  { %1735 = vmatpush2.msra.mxu1 %v396_v44  ;;  %1666 = vmatmul.mubr.f32.vlgmr.msra.gmra.mxu0 %v4464_v62  ;;  %v754_v43 = vld [vmem:[%s8429_s1 + $0x15d0] sm:$0xff]  ;;  %v529_v44 = vld [vmem:[%s8429_s1 + $0xec8] sm:$0xff] }
 0x14d   :  { %1736 = vmatprep.mubr.f32.mxu1 %v4505_v11  ;;  %1743 = vmatprep.subr.mxu0 %v614_v13  ;;  %v753_v13 = vld [vmem:[%s8429_s1 + $0x15c8] sm:$0xff] }
 0x14e   :  { %1814 = vmatprep.subr.mxu1 %v838_v46  ;;  %1737 = vmatmul.mubr.f32.vlgmr.msra.gmra.mxu1 %v4479_v3  ;;  %v523_v46 = vld [vmem:[%s8429_s1 + $0xe98] sm:$0xff] }
 0x14f   :  { %1744 = vmatpush1.msra.mxu0 %v613_v47  ;;  %1815 = vmatpush1.msra.mxu1 %v837_v49  ;;  %v747_v47 = vld [vmem:[%s8429_s1 + $0x1598] sm:$0xff]  ;;  %v522_v49 = vld [vmem:[%s8429_s1 + $0xe90] sm:$0xff] }
 0x150   :  { %1745 = vmatprep.subr.mxu0 %v607_v50  ;;  %1816 = vmatprep.subr.mxu1 %v831_v51  ;;  %v746_v50 = vld [vmem:[%s8429_s1 + $0x1590] sm:$0xff]  ;;  %v516_v51 = vld [vmem:[%s8429_s1 + $0xe60] sm:$0xff] }
 0x151   :  { %1746 = vmatpush1.msra.mxu0 %v606_v53  ;;  %1817 = vmatpush1.msra.mxu1 %v830_v54  ;;  %v740_v53 = vld [vmem:[%s8429_s1 + $0x1560] sm:$0xff]  ;;  %v515_v54 = vld [vmem:[%s8429_s1 + $0xe58] sm:$0xff] }
 0x152   :  { %1747 = vmatprep.subr.mxu0 %v600_v55  ;;  %1818 = vmatprep.subr.mxu1 %v824_v56  ;;  %v739_v55 = vld [vmem:[%s8429_s1 + $0x1558] sm:$0xff]  ;;  %v509_v56 = vld [vmem:[%s8429_s1 + $0xe28] sm:$0xff] }
 0x153   :  { %1748 = vmatpush1.msra.mxu0 %v599_v57  ;;  %1819 = vmatpush1.msra.mxu1 %v823_v58  ;;  %v733_v57 = vld [vmem:[%s8429_s1 + $0x1528] sm:$0xff]  ;;  %v508_v58 = vld [vmem:[%s8429_s1 + $0xe20] sm:$0xff] }
 0x154   :  { %1749 = vmatprep.subr.mxu0 %v593_v59  ;;  %1820 = vmatprep.subr.mxu1 %v817_v60  ;;  %v732_v59 = vld [vmem:[%s8429_s1 + $0x1520] sm:$0xff]  ;;  %v726_v60 = vld [vmem:[%s8429_s1 + $0x14f0] sm:$0xff] }
 0x155   :  { %1750 = vmatpush1.msra.mxu0 %v592_v61  ;;  %1821 = vmatpush1.msra.mxu1 %v816_v63  ;;  %v950_v61 = vld [vmem:[%s8429_s1 + $0x1bf0] sm:$0xff]  ;;  %v725_v63 = vld [vmem:[%s8429_s1 + $0x14e8] sm:$0xff] }
 0x156   :  { %1751 = vmatprep.subr.mxu0 %v586_v0  ;;  %1822 = vmatprep.subr.mxu1 %v810_v1  ;;  %v949_v0 = vld [vmem:[%s8429_s1 + $0x1be8] sm:$0xff]  ;;  %v719_v1 = vld [vmem:[%s8429_s1 + $0x14b8] sm:$0xff] }
 0x157   :  { %1752 = vmatpush1.msra.mxu0 %v585_v2  ;;  %1823 = vmatpush1.msra.mxu1 %v809_v4  ;;  %v943_v2 = vld [vmem:[%s8429_s1 + $0x1bb8] sm:$0xff]  ;;  %v718_v4 = vld [vmem:[%s8429_s1 + $0x14b0] sm:$0xff] }
 0x158   :  { %1753 = vmatprep.subr.mxu0 %v579_v5  ;;  %1824 = vmatprep.subr.mxu1 %v803_v6  ;;  %v942_v5 = vld [vmem:[%s8429_s1 + $0x1bb0] sm:$0xff]  ;;  %v712_v6 = vld [vmem:[%s8429_s1 + $0x1480] sm:$0xff] }
 0x159   :  { %1754 = vmatpush1.msra.mxu0 %v578_v7  ;;  %1825 = vmatpush1.msra.mxu1 %v802_v9  ;;  %v936_v7 = vld [vmem:[%s8429_s1 + $0x1b80] sm:$0xff]  ;;  %v711_v9 = vld [vmem:[%s8429_s1 + $0x1478] sm:$0xff] }
 0x15a   :  { %1755 = vmatprep.subr.mxu0 %v572_v10  ;;  %1826 = vmatprep.subr.mxu1 %v796_v12  ;;  %v935_v10 = vld [vmem:[%s8429_s1 + $0x1b78] sm:$0xff]  ;;  %v705_v12 = vld [vmem:[%s8429_s1 + $0x1448] sm:$0xff] }
 0x15b   :  { %1756 = vmatpush1.msra.mxu0 %v571_v14  ;;  %1827 = vmatpush1.msra.mxu1 %v795_v15  ;;  %v929_v14 = vld [vmem:[%s8429_s1 + $0x1b48] sm:$0xff]  ;;  %v704_v15 = vld [vmem:[%s8429_s1 + $0x1440] sm:$0xff] }
 0x15c   :  { %1757 = vmatprep.subr.mxu0 %v565_v17  ;;  %1828 = vmatprep.subr.mxu1 %v789_v18  ;;  %v928_v17 = vld [vmem:[%s8429_s1 + $0x1b40] sm:$0xff]  ;;  %v698_v18 = vld [vmem:[%s8429_s1 + $0x1410] sm:$0xff] }
 0x15d   :  { %1758 = vmatpush1.msra.mxu0 %v564_v19  ;;  %1829 = vmatpush1.msra.mxu1 %v788_v20  ;;  %v922_v19 = vld [vmem:[%s8429_s1 + $0x1b10] sm:$0xff]  ;;  %v697_v20 = vld [vmem:[%s8429_s1 + $0x1408] sm:$0xff] }
 0x15e   :  { %1759 = vmatprep.subr.mxu0 %v558_v22  ;;  %1830 = vmatprep.subr.mxu1 %v782_v23  ;;  %v921_v22 = vld [vmem:[%s8429_s1 + $0x1b08] sm:$0xff]  ;;  %v691_v23 = vld [vmem:[%s8429_s1 + $0x13d8] sm:$0xff] }
 0x15f   :  { %1760 = vmatpush1.msra.mxu0 %v557_v24  ;;  %1831 = vmatpush1.msra.mxu1 %v781_v52  ;;  %v915_v24 = vld [vmem:[%s8429_s1 + $0x1ad8] sm:$0xff]  ;;  %v690_v52 = vld [vmem:[%s8429_s1 + $0x13d0] sm:$0xff] }
 0x160   :  { %1761 = vmatprep.subr.mxu0 %v551_v26  ;;  %1832 = vmatprep.subr.mxu1 %v775_v27  ;;  %v914_v26 = vld [vmem:[%s8429_s1 + $0x1ad0] sm:$0xff]  ;;  %v684_v27 = vld [vmem:[%s8429_s1 + $0x13a0] sm:$0xff] }
 0x161   :  { %1762 = vmatpush1.msra.mxu0 %v550_v30  ;;  %1833 = vmatpush1.msra.mxu1 %v774_v31  ;;  %v908_v30 = vld [vmem:[%s8429_s1 + $0x1aa0] sm:$0xff]  ;;  %v683_v31 = vld [vmem:[%s8429_s1 + $0x1398] sm:$0xff] }
 0x162   :  { %1763 = vmatprep.subr.mxu0 %v544_v32  ;;  %1834 = vmatprep.subr.mxu1 %v768_v33  ;;  %v907_v32 = vld [vmem:[%s8429_s1 + $0x1a98] sm:$0xff]  ;;  %v677_v33 = vld [vmem:[%s8429_s1 + $0x1368] sm:$0xff] }
 0x163   :  { %1764 = vmatpush1.msra.mxu0 %v543_v35  ;;  %1835 = vmatpush1.msra.mxu1 %v767_v36  ;;  %v901_v35 = vld [vmem:[%s8429_s1 + $0x1a68] sm:$0xff]  ;;  %v676_v36 = vld [vmem:[%s8429_s1 + $0x1360] sm:$0xff] }
 0x164   :  { %1765 = vmatprep.subr.mxu0 %v537_v37  ;;  %1836 = vmatprep.subr.mxu1 %v761_v38  ;;  %v900_v37 = vld [vmem:[%s8429_s1 + $0x1a60] sm:$0xff]  ;;  %v670_v38 = vld [vmem:[%s8429_s1 + $0x1330] sm:$0xff] }
 0x165   :  { %1766 = vmatpush1.msra.mxu0 %v536_v39  ;;  %1837 = vmatpush1.msra.mxu1 %v760_v40  ;;  %v894_v39 = vld [vmem:[%s8429_s1 + $0x1a30] sm:$0xff]  ;;  %v669_v40 = vld [vmem:[%s8429_s1 + $0x1328] sm:$0xff] }
 0x166   :  { %1767 = vmatprep.subr.mxu0 %v530_v42  ;;  %1838 = vmatprep.subr.mxu1 %v754_v43  ;;  %v893_v42 = vld [vmem:[%s8429_s1 + $0x1a28] sm:$0xff]  ;;  %v663_v43 = vld [vmem:[%s8429_s1 + $0x12f8] sm:$0xff] }
 0x167   :  { %1768 = vmatpush1.msra.mxu0 %v529_v44  ;;  %1839 = vmatpush1.msra.mxu1 %v753_v13  ;;  %v887_v44 = vld [vmem:[%s8429_s1 + $0x19f8] sm:$0xff]  ;;  %v662_v13 = vld [vmem:[%s8429_s1 + $0x12f0] sm:$0xff] }
 0x168   :  { %1769 = vmatprep.subr.mxu0 %v523_v46  ;;  %1840 = vmatprep.subr.mxu1 %v747_v47  ;;  %v886_v46 = vld [vmem:[%s8429_s1 + $0x19f0] sm:$0xff]  ;;  %v656_v47 = vld [vmem:[%s8429_s1 + $0x12c0] sm:$0xff] }
 0x169   :  { %1770 = vmatpush1.msra.mxu0 %v522_v49  ;;  %1841 = vmatpush1.msra.mxu1 %v746_v50  ;;  %v880_v49 = vld [vmem:[%s8429_s1 + $0x19c0] sm:$0xff]  ;;  %v655_v50 = vld [vmem:[%s8429_s1 + $0x12b8] sm:$0xff] }
 0x16a   :  { %1771 = vmatprep.subr.mxu0 %v516_v51  ;;  %1842 = vmatprep.subr.mxu1 %v740_v53  ;;  %v879_v51 = vld [vmem:[%s8429_s1 + $0x19b8] sm:$0xff]  ;;  %v649_v53 = vld [vmem:[%s8429_s1 + $0x1288] sm:$0xff] }
 0x16b   :  { %1772 = vmatpush1.msra.mxu0 %v515_v54  ;;  %1843 = vmatpush1.msra.mxu1 %v739_v55  ;;  %v873_v54 = vld [vmem:[%s8429_s1 + $0x1988] sm:$0xff]  ;;  %v648_v55 = vld [vmem:[%s8429_s1 + $0x1280] sm:$0xff] }
 0x16c   :  { %1773 = vmatprep.subr.mxu0 %v509_v56  ;;  %1844 = vmatprep.subr.mxu1 %v733_v57  ;;  %v872_v56 = vld [vmem:[%s8429_s1 + $0x1980] sm:$0xff]  ;;  %v642_v57 = vld [vmem:[%s8429_s1 + $0x1250] sm:$0xff] }
 0x16d   :  { %1774 = vmatpush1.msra.mxu0 %v508_v58  ;;  %1845 = vmatpush1.msra.mxu1 %v732_v59  ;;  %v866_v58 = vld [vmem:[%s8429_s1 + $0x1950] sm:$0xff]  ;;  %v641_v59 = vld [vmem:[%s8429_s1 + $0x1248] sm:$0xff] }
 0x16e   :  { %1775 = vmatprep.subr.mxu0 %v726_v60  ;;  %1846 = vmatprep.subr.mxu1 %v950_v61  ;;  %v865_v60 = vld [vmem:[%s8429_s1 + $0x1948] sm:$0xff]  ;;  %v635_v61 = vld [vmem:[%s8429_s1 + $0x1218] sm:$0xff] }
 0x16f   :  { %1776 = vmatpush2.msra.mxu0 %v725_v63  ;;  %1847 = vmatpush2.msra.mxu1 %v949_v0  ;;  %v859_v63 = vld [vmem:[%s8429_s1 + $0x1918] sm:$0xff]  ;;  %v634_v0 = vld [vmem:[%s8429_s1 + $0x1210] sm:$0xff] }
 0x170   :  { %1777 = vmatprep.subr.mxu0 %v719_v1  ;;  %1848 = vmatprep.subr.mxu1 %v943_v2  ;;  %v858_v1 = vld [vmem:[%s8429_s1 + $0x1910] sm:$0xff]  ;;  %v628_v2 = vld [vmem:[%s8429_s1 + $0x11e0] sm:$0xff] }
 0x171   :  { %1778 = vmatpush2.msra.mxu0 %v718_v4  ;;  %1849 = vmatpush2.msra.mxu1 %v942_v5  ;;  %v852_v4 = vld [vmem:[%s8429_s1 + $0x18e0] sm:$0xff]  ;;  %v627_v5 = vld [vmem:[%s8429_s1 + $0x11d8] sm:$0xff] }
 0x172   :  { %1779 = vmatprep.subr.mxu0 %v712_v6  ;;  %1850 = vmatprep.subr.mxu1 %v936_v7  ;;  %v851_v6 = vld [vmem:[%s8429_s1 + $0x18d8] sm:$0xff]  ;;  %v621_v7 = vld [vmem:[%s8429_s1 + $0x11a8] sm:$0xff] }
 0x173   :  { %1780 = vmatpush2.msra.mxu0 %v711_v9  ;;  %1851 = vmatpush2.msra.mxu1 %v935_v10  ;;  %v845_v9 = vld [vmem:[%s8429_s1 + $0x18a8] sm:$0xff]  ;;  %v620_v10 = vld [vmem:[%s8429_s1 + $0x11a0] sm:$0xff] }
 0x174   :  { %1781 = vmatprep.subr.mxu0 %v705_v12  ;;  %1852 = vmatprep.subr.mxu1 %v929_v14  ;;  %v844_v12 = vld [vmem:[%s8429_s1 + $0x18a0] sm:$0xff]  ;;  %v279_v14 = vld [vmem:[%s8429_s1 + $0x6f8] sm:$0xff] }
 0x175   :  { %1782 = vmatpush2.msra.mxu0 %v704_v15  ;;  %1853 = vmatpush2.msra.mxu1 %v928_v17  ;;  %v503_v15 = vld [vmem:[%s8429_s1 + $0xdf8] sm:$0xff] }
 0x176   :  { %1783 = vmatprep.subr.mxu0 %v698_v18  ;;  %1854 = vmatprep.subr.mxu1 %v922_v19  ;;  %v167_v17 = vld [vmem:[%s8429_s1 + $0x378] sm:$0xff]  ;;  %v272_v19 = vld [vmem:[%s8429_s1 + $0x6c0] sm:$0xff] }
 0x177   :  { %1784 = vmatpush2.msra.mxu0 %v697_v20  ;;  %1855 = vmatpush2.msra.mxu1 %v921_v22  ;;  %v391_v18 = vld [vmem:[%s8429_s1 + $0xa78] sm:$0xff]  ;;  %v496_v20 = vld [vmem:[%s8429_s1 + $0xdc0] sm:$0xff] }
 0x178   :  { %1785 = vmatprep.subr.mxu0 %v691_v23  ;;  %1856 = vmatprep.subr.mxu1 %v915_v24  ;;  %v160_v22 = vld [vmem:[%s8429_s1 + $0x340] sm:$0xff]  ;;  %v265_v24 = vld [vmem:[%s8429_s1 + $0x688] sm:$0xff] }
 0x179   :  { %1786 = vmatpush2.msra.mxu0 %v690_v52  ;;  %1857 = vmatpush2.msra.mxu1 %v914_v26  ;;  %v384_v23 = vld [vmem:[%s8429_s1 + $0xa40] sm:$0xff]  ;;  %v489_v52 = vld [vmem:[%s8429_s1 + $0xd88] sm:$0xff] }
 0x17a   :  { %1787 = vmatprep.subr.mxu0 %v684_v27  ;;  %1858 = vmatprep.subr.mxu1 %v908_v30  ;;  %v153_v26 = vld [vmem:[%s8429_s1 + $0x308] sm:$0xff]  ;;  %v258_v30 = vld [vmem:[%s8429_s1 + $0x650] sm:$0xff] }
 0x17b   :  { %1788 = vmatpush2.msra.mxu0 %v683_v31  ;;  %1859 = vmatpush2.msra.mxu1 %v907_v32  ;;  %v377_v27 = vld [vmem:[%s8429_s1 + $0xa08] sm:$0xff]  ;;  %v482_v31 = vld [vmem:[%s8429_s1 + $0xd50] sm:$0xff] }
 0x17c   :  { %1789 = vmatprep.subr.mxu0 %v677_v33  ;;  %1860 = vmatprep.subr.mxu1 %v901_v35  ;;  %v146_v32 = vld [vmem:[%s8429_s1 + $0x2d0] sm:$0xff]  ;;  %v251_v35 = vld [vmem:[%s8429_s1 + $0x618] sm:$0xff] }
 0x17d   :  { %1790 = vmatpush2.msra.mxu0 %v676_v36  ;;  %1861 = vmatpush2.msra.mxu1 %v900_v37  ;;  %v370_v33 = vld [vmem:[%s8429_s1 + $0x9d0] sm:$0xff]  ;;  %v475_v36 = vld [vmem:[%s8429_s1 + $0xd18] sm:$0xff] }
 0x17e   :  { %1791 = vmatprep.subr.mxu0 %v670_v38  ;;  %1862 = vmatprep.subr.mxu1 %v894_v39  ;;  %v139_v37 = vld [vmem:[%s8429_s1 + $0x298] sm:$0xff]  ;;  %v244_v39 = vld [vmem:[%s8429_s1 + $0x5e0] sm:$0xff] }
 0x17f   :  { %1792 = vmatpush2.msra.mxu0 %v669_v40  ;;  %1863 = vmatpush2.msra.mxu1 %v893_v42  ;;  %v363_v38 = vld [vmem:[%s8429_s1 + $0x998] sm:$0xff]  ;;  %v468_v40 = vld [vmem:[%s8429_s1 + $0xce0] sm:$0xff] }
 0x180   :  { %1793 = vmatprep.subr.mxu0 %v663_v43  ;;  %1864 = vmatprep.subr.mxu1 %v887_v44  ;;  %v132_v42 = vld [vmem:[%s8429_s1 + $0x260] sm:$0xff]  ;;  %v237_v44 = vld [vmem:[%s8429_s1 + $0x5a8] sm:$0xff] }
 0x181   :  { %1794 = vmatpush2.msra.mxu0 %v662_v13  ;;  %1865 = vmatpush2.msra.mxu1 %v886_v46  ;;  %v356_v43 = vld [vmem:[%s8429_s1 + $0x960] sm:$0xff]  ;;  %v461_v13 = vld [vmem:[%s8429_s1 + $0xca8] sm:$0xff] }
 0x182   :  { %1795 = vmatprep.subr.mxu0 %v656_v47  ;;  %1866 = vmatprep.subr.mxu1 %v880_v49  ;;  %v125_v46 = vld [vmem:[%s8429_s1 + $0x228] sm:$0xff]  ;;  %v230_v49 = vld [vmem:[%s8429_s1 + $0x570] sm:$0xff] }
 0x183   :  { %1796 = vmatpush2.msra.mxu0 %v655_v50  ;;  %1867 = vmatpush2.msra.mxu1 %v879_v51  ;;  %v349_v47 = vld [vmem:[%s8429_s1 + $0x928] sm:$0xff]  ;;  %v454_v50 = vld [vmem:[%s8429_s1 + $0xc70] sm:$0xff] }
 0x184   :  { %1797 = vmatprep.subr.mxu0 %v649_v53  ;;  %1868 = vmatprep.subr.mxu1 %v873_v54  ;;  %v118_v51 = vld [vmem:[%s8429_s1 + $0x1f0] sm:$0xff]  ;;  %v223_v54 = vld [vmem:[%s8429_s1 + $0x538] sm:$0xff] }
 0x185   :  { %1798 = vmatpush2.msra.mxu0 %v648_v55  ;;  %1869 = vmatpush2.msra.mxu1 %v872_v56  ;;  %v342_v53 = vld [vmem:[%s8429_s1 + $0x8f0] sm:$0xff]  ;;  %v447_v55 = vld [vmem:[%s8429_s1 + $0xc38] sm:$0xff] }
 0x186   :  { %1799 = vmatprep.subr.mxu0 %v642_v57  ;;  %1870 = vmatprep.subr.mxu1 %v866_v58  ;;  %v111_v56 = vld [vmem:[%s8429_s1 + $0x1b8] sm:$0xff]  ;;  %v216_v58 = vld [vmem:[%s8429_s1 + $0x500] sm:$0xff] }
 0x187   :  { %1800 = vmatpush2.msra.mxu0 %v641_v59  ;;  %1871 = vmatpush2.msra.mxu1 %v865_v60  ;;  %v335_v57 = vld [vmem:[%s8429_s1 + $0x8b8] sm:$0xff]  ;;  %v440_v59 = vld [vmem:[%s8429_s1 + $0xc00] sm:$0xff] }
 0x188   :  { %1801 = vmatprep.subr.mxu0 %v635_v61  ;;  %1872 = vmatprep.subr.mxu1 %v859_v63  ;;  %v104_v60 = vld [vmem:[%s8429_s1 + $0x180] sm:$0xff]  ;;  %v209_v63 = vld [vmem:[%s8429_s1 + $0x4c8] sm:$0xff] }
 0x189   :  { %1802 = vmatpush2.msra.mxu0 %v634_v0  ;;  %1873 = vmatpush2.msra.mxu1 %v858_v1  ;;  %v328_v61 = vld [vmem:[%s8429_s1 + $0x880] sm:$0xff]  ;;  %v433_v0 = vld [vmem:[%s8429_s1 + $0xbc8] sm:$0xff] }
 0x18a   :  { %1803 = vmatprep.subr.mxu0 %v628_v2  ;;  %1874 = vmatprep.subr.mxu1 %v852_v4  ;;  %v97_v1 = vld [vmem:[%s8429_s1 + $0x148] sm:$0xff]  ;;  %v202_v4 = vld [vmem:[%s8429_s1 + $0x490] sm:$0xff] }
 0x18b   :  { %1804 = vmatpush2.msra.mxu0 %v627_v5  ;;  %1875 = vmatpush2.msra.mxu1 %v851_v6  ;;  %v321_v2 = vld [vmem:[%s8429_s1 + $0x848] sm:$0xff]  ;;  %v426_v5 = vld [vmem:[%s8429_s1 + $0xb90] sm:$0xff] }
 0x18c   :  { %1805 = vmatprep.subr.mxu0 %v621_v7  ;;  %1876 = vmatprep.subr.mxu1 %v845_v9  ;;  %v90_v6 = vld [vmem:[%s8429_s1 + $0x110] sm:$0xff]  ;;  %v195_v9 = vld [vmem:[%s8429_s1 + $0x458] sm:$0xff] }
 0x18d   :  { %1806 = vmatpush2.msra.mxu0 %v620_v10  ;;  %1807 = vmatprep.mubr.f32.mxu0 %v4900_v25  ;;  %v314_v7 = vld [vmem:[%s8429_s1 + $0x810] sm:$0xff]  ;;  %v419_v10 = vld [vmem:[%s8429_s1 + $0xb58] sm:$0xff] }
 0x18e   :  { %1877 = vmatpush2.msra.mxu1 %v844_v12  ;;  %1808 = vmatmul.mubr.f32.vlgmr.msra.gmra.mxu0 %v4869_v16  ;;  %v83_v12 = vld [vmem:[%s8429_s1 + $0xd8] sm:$0xff] }
 0x18f   :  { %1878 = vmatprep.mubr.f32.mxu1 %v4910_v28  ;;  %3705 = vmatprep.subr.mxu0 %v279_v14  ;;  %v307_v14 = vld [vmem:[%s8429_s1 + $0x7d8] sm:$0xff] }
 0x190   :  { %3740 = vmatprep.subr.mxu1 %v503_v15  ;;  %1879 = vmatmul.mubr.f32.vlgmr.msra.gmra.mxu1 %v4884_v21  ;;  %v188_v15 = vld [vmem:[%s8429_s1 + $0x420] sm:$0xff] }
 0x191   :  { %3706 = vmatpush3.msra.mxu0 %v167_v17  ;;  %3741 = vmatpush3.msra.mxu1 %v391_v18  ;;  %v412_v17 = vld [vmem:[%s8429_s1 + $0xb20] sm:$0xff] }
 0x192   :  { %3707 = vmatprep.subr.mxu0 %v272_v19  ;;  %3742 = vmatprep.subr.mxu1 %v496_v20  ;;  %v76_v18 = vld [vmem:[%s8429_s1 + $0xa0] sm:$0xff]  ;;  %v181_v20 = vld [vmem:[%s8429_s1 + $0x3e8] sm:$0xff] }
 0x193   :  { %3708 = vmatpush3.msra.mxu0 %v160_v22  ;;  %3743 = vmatpush3.msra.mxu1 %v384_v23  ;;  %v300_v19 = vld [vmem:[%s8429_s1 + $0x7a0] sm:$0xff]  ;;  %v405_v22 = vld [vmem:[%s8429_s1 + $0xae8] sm:$0xff] }
 0x194   :  { %3709 = vmatprep.subr.mxu0 %v265_v24  ;;  %3744 = vmatprep.subr.mxu1 %v489_v52  ;;  %v69_v23 = vld [vmem:[%s8429_s1 + $0x68] sm:$0xff]  ;;  %v174_v52 = vld [vmem:[%s8429_s1 + $0x3b0] sm:$0xff] }
 0x195   :  { %3710 = vmatpush3.msra.mxu0 %v153_v26  ;;  %3745 = vmatpush3.msra.mxu1 %v377_v27  ;;  %v293_v24 = vld [vmem:[%s8429_s1 + $0x768] sm:$0xff]  ;;  %v398_v26 = vld [vmem:[%s8429_s1 + $0xab0] sm:$0xff] }
 0x196   :  { %3711 = vmatprep.subr.mxu0 %v258_v30  ;;  %3746 = vmatprep.subr.mxu1 %v482_v31  ;;  %v62_v27 = vld [vmem:[%s8429_s1 + $0x30] sm:$0xff]  ;;  %v727_v31 = vld [vmem:[%s8429_s1 + $0x14f8] sm:$0xff] }
 0x197   :  { %3712 = vmatpush3.msra.mxu0 %v146_v32  ;;  %3747 = vmatpush3.msra.mxu1 %v370_v33  ;;  %v286_v30 = vld [vmem:[%s8429_s1 + $0x730] sm:$0xff]  ;;  %v951_v32 = vld [vmem:[%s8429_s1 + $0x1bf8] sm:$0xff] }
 0x198   :  { %3713 = vmatprep.subr.mxu0 %v251_v35  ;;  %3748 = vmatprep.subr.mxu1 %v475_v36  ;;  %v615_v33 = vld [vmem:[%s8429_s1 + $0x1178] sm:$0xff]  ;;  %v944_v36 = vld [vmem:[%s8429_s1 + $0x1bc0] sm:$0xff] }
 0x199   :  { %3714 = vmatpush3.msra.mxu0 %v139_v37  ;;  %3749 = vmatpush3.msra.mxu1 %v363_v38  ;;  %v839_v35 = vld [vmem:[%s8429_s1 + $0x1878] sm:$0xff]  ;;  %v713_v37 = vld [vmem:[%s8429_s1 + $0x1488] sm:$0xff] }
 0x19a   :  { %3715 = vmatprep.subr.mxu0 %v244_v39  ;;  %3750 = vmatprep.subr.mxu1 %v468_v40  ;;  %v937_v38 = vld [vmem:[%s8429_s1 + $0x1b88] sm:$0xff]  ;;  %v706_v40 = vld [vmem:[%s8429_s1 + $0x1450] sm:$0xff] }
 0x19b   :  { %3716 = vmatpush3.msra.mxu0 %v132_v42  ;;  %3751 = vmatpush3.msra.mxu1 %v356_v43  ;;  %v825_v39 = vld [vmem:[%s8429_s1 + $0x1808] sm:$0xff]  ;;  %v930_v42 = vld [vmem:[%s8429_s1 + $0x1b50] sm:$0xff] }
 0x19c   :  { %3717 = vmatprep.subr.mxu0 %v237_v44  ;;  %3752 = vmatprep.subr.mxu1 %v461_v13  ;;  %v594_v43 = vld [vmem:[%s8429_s1 + $0x10d0] sm:$0xff]  ;;  %v699_v13 = vld [vmem:[%s8429_s1 + $0x1418] sm:$0xff] }
 0x19d   :  { %3718 = vmatpush3.msra.mxu0 %v125_v46  ;;  %3753 = vmatpush3.msra.mxu1 %v349_v47  ;;  %v818_v44 = vld [vmem:[%s8429_s1 + $0x17d0] sm:$0xff]  ;;  %v923_v46 = vld [vmem:[%s8429_s1 + $0x1b18] sm:$0xff] }
 0x19e   :  { %3719 = vmatprep.subr.mxu0 %v230_v49  ;;  %3754 = vmatprep.subr.mxu1 %v454_v50  ;;  %v587_v47 = vld [vmem:[%s8429_s1 + $0x1098] sm:$0xff]  ;;  %v692_v50 = vld [vmem:[%s8429_s1 + $0x13e0] sm:$0xff] }
 0x19f   :  { %3720 = vmatpush3.msra.mxu0 %v118_v51  ;;  %3755 = vmatpush3.msra.mxu1 %v342_v53  ;;  %v811_v49 = vld [vmem:[%s8429_s1 + $0x1798] sm:$0xff]  ;;  %v916_v51 = vld [vmem:[%s8429_s1 + $0x1ae0] sm:$0xff] }
 0x1a0   :  { %3721 = vmatprep.subr.mxu0 %v223_v54  ;;  %3756 = vmatprep.subr.mxu1 %v447_v55  ;;  %v580_v53 = vld [vmem:[%s8429_s1 + $0x1060] sm:$0xff]  ;;  %v685_v55 = vld [vmem:[%s8429_s1 + $0x13a8] sm:$0xff] }
 0x1a1   :  { %3722 = vmatpush3.msra.mxu0 %v111_v56  ;;  %3757 = vmatpush3.msra.mxu1 %v335_v57  ;;  %v804_v54 = vld [vmem:[%s8429_s1 + $0x1760] sm:$0xff]  ;;  %v909_v56 = vld [vmem:[%s8429_s1 + $0x1aa8] sm:$0xff] }
 0x1a2   :  { %3723 = vmatprep.subr.mxu0 %v216_v58  ;;  %3758 = vmatprep.subr.mxu1 %v440_v59  ;;  %v573_v57 = vld [vmem:[%s8429_s1 + $0x1028] sm:$0xff]  ;;  %v960_v59 = vsub.s32 1, %v4407_v41 }
 0x1a3   :  { %3724 = vmatpush3.msra.mxu0 %v104_v60  ;;  %3759 = vmatpush3.msra.mxu1 %v328_v61  ;;  %v797_v58 = vld [vmem:[%s8429_s1 + $0x1728] sm:$0xff]  ;;  %v678_v60 = vld [vmem:[%s8429_s1 + $0x1370] sm:$0xff] }
 0x1a4   :  { %3725 = vmatprep.subr.mxu0 %v209_v63  ;;  %3760 = vmatprep.subr.mxu1 %v433_v0  ;;  %v902_v61 = vld [vmem:[%s8429_s1 + $0x1a70] sm:$0xff] }
 0x1a5   :  { %3726 = vmatpush3.msra.mxu0 %v97_v1  ;;  %3761 = vmatpush3.msra.mxu1 %v321_v2  ;;  %v566_v63 = vld [vmem:[%s8429_s1 + $0xff0] sm:$0xff]  ;;  %v671_v1 = vld [vmem:[%s8429_s1 + $0x1338] sm:$0xff] }
 0x1a6   :  { %3727 = vmatprep.subr.mxu0 %v202_v4  ;;  %3762 = vmatprep.subr.mxu1 %v426_v5  ;;  %v790_v0 = vld [vmem:[%s8429_s1 + $0x16f0] sm:$0xff]  ;;  %v895_v2 = vld [vmem:[%s8429_s1 + $0x1a38] sm:$0xff] }
 0x1a7   :  { %3728 = vmatpush3.msra.mxu0 %v90_v6  ;;  %3763 = vmatpush3.msra.mxu1 %v314_v7  ;;  %v559_v4 = vld [vmem:[%s8429_s1 + $0xfb8] sm:$0xff]  ;;  %v6791_v6 = vld [vmem:[%s8430_s2] sm:$0x7f] }
 0x1a8   :  { %3729 = vmatprep.subr.mxu0 %v195_v9  ;;  %3764 = vmatprep.subr.mxu1 %v419_v10  ;;  %v783_v5 = vld [vmem:[%s8429_s1 + $0x16b8] sm:$0xff]  ;;  %v961_v7 = vrot.slane %v6791_v6, %v960_v59  ;;  %v664_v9 = vld [vmem:[%s8429_s1 + $0x1300] sm:$0xff] }
 0x1a9   :  { %3730 = vmatpush3.msra.mxu0 %v83_v12  ;;  %3765 = vmatpush3.msra.mxu1 %v307_v14  ;;  %v888_v10 = vld [vmem:[%s8429_s1 + $0x1a00] sm:$0xff] }
 0x1aa   :  { %3731 = vmatprep.subr.mxu0 %v188_v15  ;;  %3766 = vmatprep.subr.mxu1 %v412_v17  ;;  %v552_v12 = vld [vmem:[%s8429_s1 + $0xf80] sm:$0xff]  ;;  %v1243_v15 = vpop.f32.mrf.mxu0  ;;  %v657_v17 = vld [vmem:[%s8429_s1 + $0x12c8] sm:$0xff] }
 0x1ab   :  { %3732 = vmatpush3.msra.mxu0 %v76_v18  ;;  %3767 = vmatpush3.msra.mxu1 %v300_v19  ;;  %v776_v14 = vld [vmem:[%s8429_s1 + $0x1680] sm:$0xff]  ;;  %v881_v18 = vld [vmem:[%s8429_s1 + $0x19c8] sm:$0xff]  ;;  %v968_v19 = vsub.s32 3, %v4407_v41 }
 0x1ac   :  { %3733 = vmatprep.subr.mxu0 %v181_v20  ;;  %3768 = vmatprep.subr.mxu1 %v405_v22  ;;  %v545_v20 = vld [vmem:[%s8429_s1 + $0xf48] sm:$0xff] }
 0x1ad   :  { %3734 = vmatpush3.msra.mxu0 %v69_v23  ;;  %3769 = vmatpush3.msra.mxu1 %v293_v24  ;;  %v769_v22 = vld [vmem:[%s8429_s1 + $0x1648] sm:$0xff]  ;;  %v1102_v23 = vadd.f32 %v6054_v29, %v961_v7  ;;  %v6822_v24 = vpop.f32.mrf.mxu0  ;;  %v762_v29 = vld [vmem:[%s8429_s1 + $0x1610] sm:$0xff] }
 0x1ae   :  { %3735 = vmatprep.subr.mxu0 %v174_v52  ;;  %3770 = vmatprep.subr.mxu1 %v398_v26  ;;  %v650_v52 = vld [vmem:[%s8429_s1 + $0x1290] sm:$0xff]  ;;  %v2353_v7 = vld [vmem:[%s8431_s3 + $0x5a8] sm:$0xff] }
 0x1af   :  { %3736 = vmatpush3.msra.mxu0 %v62_v27  ;;  %1949 = vmatprep.mubr.f32.mxu0 %v4495_v8  ;;  %v720_v8 = vld [vmem:[%s8429_s1 + $0x14c0] sm:$0xff]  ;;  %v874_v26 = vld [vmem:[%s8429_s1 + $0x1990] sm:$0xff] }
 0x1b0   :  { %3771 = vmatpush3.msra.mxu1 %v286_v30  ;;  %1950 = vmatmul.mubr.f32.vlgmr.msra.gmra.mxu0 %v4464_v62  ;;  %v608_v62 = vld [vmem:[%s8429_s1 + $0x1140] sm:$0xff]  ;;  %v538_v27 = vld [vmem:[%s8429_s1 + $0xf10] sm:$0xff]  ;;  %v1314_v30 = vpop.f32.mrf.mxu1 }
 0x1b1   :  { %2019 = vmatprep.mubr.f32.mxu1 %v4505_v11  ;;  %3775 = vmatprep.subr.mxu0 %v727_v31  ;;  %v832_v11 = vld [vmem:[%s8429_s1 + $0x1840] sm:$0xff]  ;;  %v643_v31 = vld [vmem:[%s8429_s1 + $0x1258] sm:$0xff] }
 0x1b2   :  { %3810 = vmatprep.subr.mxu1 %v951_v32  ;;  %2020 = vmatmul.mubr.f32.vlgmr.msra.gmra.mxu1 %v4479_v3  ;;  %v601_v3 = vld [vmem:[%s8429_s1 + $0x1108] sm:$0xff]  ;;  %v867_v32 = vld [vmem:[%s8429_s1 + $0x1958] sm:$0xff] }
 0x1b3   :  { %3776 = vmatpush3.msra.mxu0 %v615_v33  ;;  %3811 = vmatpush3.msra.mxu1 %v839_v35  ;;  %v969_v33 = vrot.slane %v6791_v6, %v968_v19  ;;  %v531_v35 = vld [vmem:[%s8429_s1 + $0xed8] sm:$0xff] }
 0x1b4   :  { %3777 = vmatprep.subr.mxu0 %v720_v8  ;;  %3812 = vmatprep.subr.mxu1 %v944_v36  ;;  %v755_v8 = vld [vmem:[%s8429_s1 + $0x15d8] sm:$0xff]  ;;  %v1173_v36 = vadd.f32 %v6068_v34, %v1102_v23  ;;  %v748_v34 = vld [vmem:[%s8429_s1 + $0x15a0] sm:$0xff] }
 0x1b5   :  { %3778 = vmatpush3.msra.mxu0 %v608_v62  ;;  %3813 = vmatpush3.msra.mxu1 %v832_v11  ;;  %v6852_v62 = vpop.f32.mrf.mxu1  ;;  %v1385_v11 = vpop.f32.mrf.mxu0  ;;  %v2216_v23 = vld [vmem:[%s8431_s3 + $0x160] sm:$0xff] }
 0x1b6   :  { %3779 = vmatprep.subr.mxu0 %v713_v37  ;;  %3814 = vmatprep.subr.mxu1 %v937_v38  ;;  %v636_v37 = vld [vmem:[%s8429_s1 + $0x1220] sm:$0xff] }
 0x1b7   :  { %3780 = vmatpush3.msra.mxu0 %v601_v3  ;;  %3815 = vmatpush3.msra.mxu1 %v825_v39  ;;  %v860_v38 = vld [vmem:[%s8429_s1 + $0x1920] sm:$0xff]  ;;  %v1244_v39 = vadd.f32 %v1243_v15, %v1173_v36  ;;  %v2333_v36 = vld [vmem:[%s8431_s3 + $0x508] sm:$0xff] }
 0x1b8   :  { %3781 = vmatprep.subr.mxu0 %v706_v40  ;;  %3816 = vmatprep.subr.mxu1 %v930_v42  ;;  %v524_v3 = vld [vmem:[%s8429_s1 + $0xea0] sm:$0xff]  ;;  %v629_v40 = vld [vmem:[%s8429_s1 + $0x11e8] sm:$0xff] }
 0x1b9   :  { %3782 = vmatpush3.msra.mxu0 %v594_v43  ;;  %3817 = vmatpush3.msra.mxu1 %v818_v44  ;;  %v853_v42 = vld [vmem:[%s8429_s1 + $0x18e8] sm:$0xff]  ;;  %v1386_v44 = vadd.f32 %v1385_v11, %v969_v33  ;;  %v2220_v15 = vld [vmem:[%s8431_s3 + $0x180] sm:$0xff] }
 0x1ba   :  { %3783 = vmatprep.subr.mxu0 %v699_v13  ;;  %3818 = vmatprep.subr.mxu1 %v923_v46  ;;  %v517_v13 = vld [vmem:[%s8429_s1 + $0xe68] sm:$0xff]  ;;  %v2208_v33 = vld [vmem:[%s8431_s3 + $0x120] sm:$0xff] }
 0x1bb   :  { %3784 = vmatpush3.msra.mxu0 %v587_v47  ;;  %3819 = vmatpush3.msra.mxu1 %v811_v49  ;;  %v741_v46 = vld [vmem:[%s8429_s1 + $0x1568] sm:$0xff]  ;;  %v1456_v47 = vpop.f32.mrf.mxu1  ;;  %v622_v49 = vld [vmem:[%s8429_s1 + $0x11b0] sm:$0xff]  ;;  %v2204_v11 = vld [vmem:[%s8431_s3 + $0x100] sm:$0xff] }
 0x1bc   :  { %3785 = vmatprep.subr.mxu0 %v692_v50  ;;  %3820 = vmatprep.subr.mxu1 %v916_v51  ;;  %v846_v50 = vld [vmem:[%s8429_s1 + $0x18b0] sm:$0xff] }
 0x1bd   :  { %3786 = vmatpush3.msra.mxu0 %v580_v53  ;;  %3821 = vmatpush3.msra.mxu1 %v804_v54  ;;  %v510_v51 = vld [vmem:[%s8429_s1 + $0xe30] sm:$0xff]  ;;  %v6889_v53 = vadd.f32 %v1314_v30, %v1244_v39  ;;  %v2340_v30 = vld [vmem:[%s8431_s3 + $0x540] sm:$0xff] }
 0x1be   :  { %3787 = vmatprep.subr.mxu0 %v685_v55  ;;  %3822 = vmatprep.subr.mxu1 %v909_v56  ;;  %v734_v54 = vld [vmem:[%s8429_s1 + $0x1530] sm:$0xff]  ;;  %v2328_v39 = vld [vmem:[%s8431_s3 + $0x4e0] sm:$0xff] }
 0x1bf   :  { %3788 = vmatpush3.msra.mxu0 %v573_v57  ;;  %3823 = vmatpush3.msra.mxu1 %v797_v58  ;;  %v1457_v57 = vadd.f32 %v1456_v47, %v1386_v44  ;;  %v2233_v58 = vld [vmem:[%s8431_s3 + $0x1e8] sm:$0xff]  ;;  %v2196_v44 = vld [vmem:[%s8431_s3 + $0xc0] sm:$0xff] }
 0x1c0   :  { %3789 = vmatprep.subr.mxu0 %v678_v60  ;;  %3824 = vmatprep.subr.mxu1 %v902_v61  ;;  %v2361_v60 = vld [vmem:[%s8431_s3 + $0x5e8] sm:$0xff]  ;;  %v2232_v61 = vld [vmem:[%s8431_s3 + $0x1e0] sm:$0xff] }
 0x1c1   :  { %3790 = vmatpush3.msra.mxu0 %v566_v63  ;;  %3825 = vmatpush3.msra.mxu1 %v790_v0  ;;  %v2166_v0 = vmax.f32 %v6889_v53, 0.0  ;;  %v2321_v47 = vld [vmem:[%s8431_s3 + $0x4a8] sm:$0xff]  ;;  %v2223_v53 = vld [vmem:[%s8431_s3 + $0x198] sm:$0xff] }
 0x1c2   :  { %3791 = vmatprep.subr.mxu0 %v671_v1  ;;  %3826 = vmatprep.subr.mxu1 %v895_v2  ;;  %v2229_v1 = vld [vmem:[%s8431_s3 + $0x1c8] sm:$0xff] }
 0x1c3   :  { %3792 = vmatpush3.msra.mxu0 %v559_v4  ;;  %3827 = vmatpush3.msra.mxu1 %v783_v5  ;;  %v2357_v2 = vld [vmem:[%s8431_s3 + $0x5c8] sm:$0xff] }
 0x1c4   :  { %3793 = vmatprep.subr.mxu0 %v664_v9  ;;  %3828 = vmatprep.subr.mxu1 %v888_v10  ;;  %v2225_v4 = vld [vmem:[%s8431_s3 + $0x1a8] sm:$0xff]  ;;  %v2224_v9 = vld [vmem:[%s8431_s3 + $0x1a0] sm:$0xff] }
 0x1c5   :  { %3794 = vmatpush3.msra.mxu0 %v552_v12  ;;  %3829 = vmatpush3.msra.mxu1 %v776_v14  ;;  %v2352_v10 = vld [vmem:[%s8431_s3 + $0x5a0] sm:$0xff]  ;;  %v2221_v12 = vld [vmem:[%s8431_s3 + $0x188] sm:$0xff] }
 0x1c6   :  { %3795 = vmatprep.subr.mxu0 %v657_v17  ;;  %3830 = vmatprep.subr.mxu1 %v881_v18  ;;  %v2349_v14 = vld [vmem:[%s8431_s3 + $0x588] sm:$0xff]  ;;  %v2348_v17 = vld [vmem:[%s8431_s3 + $0x580] sm:$0xff] }
 0x1c7   :  { %3796 = vmatpush3.msra.mxu0 %v545_v20  ;;  %3831 = vmatpush3.msra.mxu1 %v769_v22  ;;  %v2217_v18 = vld [vmem:[%s8431_s3 + $0x168] sm:$0xff] }
 0x1c8   :  { %3797 = vmatprep.subr.mxu0 %v650_v52  ;;  %3832 = vmatprep.subr.mxu1 %v874_v26  ;;  %v2345_v22 = vld [vmem:[%s8431_s3 + $0x568] sm:$0xff]  ;;  %v2344_v52 = vld [vmem:[%s8431_s3 + $0x560] sm:$0xff] }
 0x1c9   :  { %3798 = vmatpush3.msra.mxu0 %v538_v27  ;;  %3833 = vmatpush3.msra.mxu1 %v762_v29  ;;  %v2213_v26 = vld [vmem:[%s8431_s3 + $0x148] sm:$0xff]  ;;  %v2212_v29 = vld [vmem:[%s8431_s3 + $0x140] sm:$0xff] }
 0x1ca   :  { %3799 = vmatprep.subr.mxu0 %v643_v31  ;;  %3834 = vmatprep.subr.mxu1 %v867_v32  ;;  %v6872_v43 = vpop.f32.mrf.mxu0  ;;  %v2341_v27 = vld [vmem:[%s8431_s3 + $0x548] sm:$0xff] }
 0x1cb   :  { %3800 = vmatpush3.msra.mxu0 %v531_v35  ;;  %3835 = vmatpush3.msra.mxu1 %v755_v8  ;;  %v2209_v31 = vld [vmem:[%s8431_s3 + $0x128] sm:$0xff]  ;;  %v2336_v35 = vld [vmem:[%s8431_s3 + $0x520] sm:$0xff] }
 0x1cc   :  { %3801 = vmatprep.subr.mxu0 %v636_v37  ;;  %3836 = vmatprep.subr.mxu1 %v860_v38  ;;  %v6894_v55 = vpop.f32.mrf.mxu1  ;;  %v1527_v56 = vpop.f32.mrf.mxu0  ;;  %v2337_v32 = vld [vmem:[%s8431_s3 + $0x528] sm:$0xff]  ;;  %v2332_v37 = vld [vmem:[%s8431_s3 + $0x500] sm:$0xff] }
 0x1cd   :  { %3802 = vmatpush3.msra.mxu0 %v524_v3  ;;  %3837 = vmatpush3.msra.mxu1 %v748_v34  ;;  %v1528_v63 = vadd.f32 %v1527_v56, %v1457_v57  ;;  %v2205_v8 = vld [vmem:[%s8431_s3 + $0x108] sm:$0xff]  ;;  %v2200_v34 = vld [vmem:[%s8431_s3 + $0xe0] sm:$0xff] }
 0x1ce   :  { %3803 = vmatprep.subr.mxu0 %v629_v40  ;;  %3838 = vmatprep.subr.mxu1 %v853_v42  ;;  %v2201_v38 = vld [vmem:[%s8431_s3 + $0xe8] sm:$0xff]  ;;  %v2188_v56 = vld [vmem:[%s8431_s3 + $0x80] sm:$0xff] }
 0x1cf   :  { %3804 = vmatpush3.msra.mxu0 %v517_v13  ;;  %3839 = vmatpush3.msra.mxu1 %v741_v46  ;;  %v2329_v3 = vld [vmem:[%s8431_s3 + $0x4e8] sm:$0xff]  ;;  %v2324_v13 = vld [vmem:[%s8431_s3 + $0x4c0] sm:$0xff] }
 0x1d0   :  { %3805 = vmatprep.subr.mxu0 %v622_v49  ;;  %3840 = vmatprep.subr.mxu1 %v846_v50  ;;  %v2197_v40 = vld [vmem:[%s8431_s3 + $0xc8] sm:$0xff]  ;;  %v2192_v49 = vld [vmem:[%s8431_s3 + $0xa0] sm:$0xff] }
 0x1d1   :  { %3806 = vmatpush3.msra.mxu0 %v510_v51  ;;  %2089 = vmatprep.mubr.f32.mxu0 %v4900_v25  ;;  %v2360_v25 = vld [vmem:[%s8431_s3 + $0x5e0] sm:$0xff]  ;;  %v2325_v42 = vld [vmem:[%s8431_s3 + $0x4c8] sm:$0xff] }
 0x1d2   :  { %3841 = vmatpush3.msra.mxu1 %v734_v54  ;;  %2159 = vmatprep.mubr.f32.mxu1 %v4910_v28  ;;  %v1598_v28 = vpop.f32.mrf.mxu1  ;;  %v2193_v46 = vld [vmem:[%s8431_s3 + $0xa8] sm:$0xff]  ;;  %v2320_v50 = vld [vmem:[%s8431_s3 + $0x4a0] sm:$0xff] }
 0x1d3   :  { %2090 = vmatmul.mubr.f32.vlgmr.msra.gmra.mxu0 %v4869_v16  ;;  %2160 = vmatmul.mubr.f32.vlgmr.msra.gmra.mxu1 %v4884_v21  ;;  %v2228_v16 = vld [vmem:[%s8431_s3 + $0x1c0] sm:$0xff]  ;;  %v6930_v5 = vadd.f32 %v1598_v28, %v1528_v63  ;;  %v2189_v51 = vld [vmem:[%s8431_s3 + $0x88] sm:$0xff] }
 0x1d4   :  { %2590 = vmatprep.subr.mxu0 %v2233_v58  ;;  %2661 = vmatprep.subr.mxu1 %v2361_v60  ;;  %v2356_v21 = vld [vmem:[%s8431_s3 + $0x5c0] sm:$0xff]  ;;  %v2317_v54 = vld [vmem:[%s8431_s3 + $0x488] sm:$0xff] }
 0x1d5   :  { %2591 = vmatpush1.msra.mxu0 %v2232_v61  ;;  %2654 = vmatprep.mubr.f32.mxu0 %v2166_v0  ;;  %v2168_v20 = vmax.f32 %v6930_v5, 0.0  ;;  %v2316_v57 = vld [vmem:[%s8431_s3 + $0x480] sm:$0xff]  ;;  %v2185_v58 = vld [vmem:[%s8431_s3 + $0x68] sm:$0xff]  ;;  %v2350_v5 = vld [vmem:[%s8431_s3 + $0x590] sm:$0xff] }
 0x1d6   :  { %2662 = vmatpush1.msra.mxu1 %v2360_v25  ;;  %2592 = vmatprep.subr.mxu0 %v2229_v1  ;;  %v2313_v60 = vld [vmem:[%s8431_s3 + $0x468] sm:$0xff]  ;;  %v2184_v61 = vld [vmem:[%s8431_s3 + $0x60] sm:$0xff] }
 0x1d7   :  { %2663 = vmatprep.subr.mxu1 %v2357_v2  ;;  %2593 = vmatpush1.msra.mxu0 %v2228_v16  ;;  %v2312_v63 = vld [vmem:[%s8431_s3 + $0x460] sm:$0xff]  ;;  %v2181_v25 = vld [vmem:[%s8431_s3 + $0x48] sm:$0xff] }
 0x1d8   :  { %2664 = vmatpush1.msra.mxu1 %v2356_v21  ;;  %2594 = vmatprep.subr.mxu0 %v2225_v4  ;;  %v2309_v1 = vld [vmem:[%s8431_s3 + $0x448] sm:$0xff]  ;;  %v2180_v28 = vld [vmem:[%s8431_s3 + $0x40] sm:$0xff] }
 0x1d9   :  { %2665 = vmatprep.subr.mxu1 %v2353_v7  ;;  %2595 = vmatpush1.msra.mxu0 %v2224_v9  ;;  %v2308_v2 = vld [vmem:[%s8431_s3 + $0x440] sm:$0xff]  ;;  %v2177_v16 = vld [vmem:[%s8431_s3 + $0x28] sm:$0xff] }
 0x1da   :  { %2666 = vmatpush1.msra.mxu1 %v2352_v10  ;;  %2596 = vmatprep.subr.mxu0 %v2221_v12  ;;  %v2305_v21 = vld [vmem:[%s8431_s3 + $0x428] sm:$0xff]  ;;  %v2176_v4 = vld [vmem:[%s8431_s3 + $0x20] sm:$0xff] }
 0x1db   :  { %2667 = vmatprep.subr.mxu1 %v2349_v14  ;;  %2597 = vmatpush1.msra.mxu0 %v2220_v15  ;;  %v2304_v7 = vld [vmem:[%s8431_s3 + $0x420] sm:$0xff]  ;;  %v2173_v9 = vld [vmem:[%s8431_s3 + $0x8] sm:$0xff] }
 0x1dc   :  { %2668 = vmatpush1.msra.mxu1 %v2348_v17  ;;  %2598 = vmatprep.subr.mxu0 %v2217_v18  ;;  %v2301_v10 = vld [vmem:[%s8431_s3 + $0x408] sm:$0xff]  ;;  %v2172_v12 = vld [vmem:[%s8431_s3] sm:$0xff] }
 0x1dd   :  { %2669 = vmatprep.subr.mxu1 %v2345_v22  ;;  %2599 = vmatpush1.msra.mxu0 %v2216_v23  ;;  %v2300_v14 = vld [vmem:[%s8431_s3 + $0x400] sm:$0xff]  ;;  %v2297_v15 = vld [vmem:[%s8431_s3 + $0x3e8] sm:$0xff] }
 0x1de   :  { %2670 = vmatpush1.msra.mxu1 %v2344_v52  ;;  %2725 = vmatprep.mubr.f32.mxu1 %v2168_v20  ;;  %v2425_v17 = vld [vmem:[%s8431_s3 + $0x7e8] sm:$0xff]  ;;  %v2296_v18 = vld [vmem:[%s8431_s3 + $0x3e0] sm:$0xff] }
 0x1df   :  { %2600 = vmatprep.subr.mxu0 %v2213_v26  ;;  %2671 = vmatprep.subr.mxu1 %v2341_v27  ;;  %v2424_v22 = vld [vmem:[%s8431_s3 + $0x7e0] sm:$0xff]  ;;  %v2293_v23 = vld [vmem:[%s8431_s3 + $0x3c8] sm:$0xff] }
 0x1e0   :  { %2601 = vmatpush1.msra.mxu0 %v2212_v29  ;;  %2672 = vmatpush1.msra.mxu1 %v2340_v30  ;;  %v2421_v52 = vld [vmem:[%s8431_s3 + $0x7c8] sm:$0xff]  ;;  %v2292_v26 = vld [vmem:[%s8431_s3 + $0x3c0] sm:$0xff] }
 0x1e1   :  { %2602 = vmatprep.subr.mxu0 %v2209_v31  ;;  %2673 = vmatprep.subr.mxu1 %v2337_v32  ;;  %v2420_v27 = vld [vmem:[%s8431_s3 + $0x7c0] sm:$0xff]  ;;  %v2289_v29 = vld [vmem:[%s8431_s3 + $0x3a8] sm:$0xff] }
 0x1e2   :  { %2603 = vmatpush1.msra.mxu0 %v2208_v33  ;;  %2674 = vmatpush1.msra.mxu1 %v2336_v35  ;;  %v2417_v30 = vld [vmem:[%s8431_s3 + $0x7a8] sm:$0xff]  ;;  %v2288_v31 = vld [vmem:[%s8431_s3 + $0x3a0] sm:$0xff] }
 0x1e3   :  { %2604 = vmatprep.subr.mxu0 %v2205_v8  ;;  %2675 = vmatprep.subr.mxu1 %v2333_v36  ;;  %v2416_v32 = vld [vmem:[%s8431_s3 + $0x7a0] sm:$0xff]  ;;  %v2285_v33 = vld [vmem:[%s8431_s3 + $0x388] sm:$0xff] }
 0x1e4   :  { %2605 = vmatpush1.msra.mxu0 %v2204_v11  ;;  %2676 = vmatpush1.msra.mxu1 %v2332_v37  ;;  %v2413_v35 = vld [vmem:[%s8431_s3 + $0x788] sm:$0xff]  ;;  %v2284_v8 = vld [vmem:[%s8431_s3 + $0x380] sm:$0xff] }
 0x1e5   :  { %2606 = vmatprep.subr.mxu0 %v2201_v38  ;;  %2677 = vmatprep.subr.mxu1 %v2329_v3  ;;  %v2412_v36 = vld [vmem:[%s8431_s3 + $0x780] sm:$0xff]  ;;  %v2281_v11 = vld [vmem:[%s8431_s3 + $0x368] sm:$0xff] }
 0x1e6   :  { %2607 = vmatpush1.msra.mxu0 %v2200_v34  ;;  %2678 = vmatpush1.msra.mxu1 %v2328_v39  ;;  %v2409_v37 = vld [vmem:[%s8431_s3 + $0x768] sm:$0xff]  ;;  %v2280_v38 = vld [vmem:[%s8431_s3 + $0x360] sm:$0xff] }
 0x1e7   :  { %2608 = vmatprep.subr.mxu0 %v2197_v40  ;;  %2679 = vmatprep.subr.mxu1 %v2325_v42  ;;  %v2408_v3 = vld [vmem:[%s8431_s3 + $0x760] sm:$0xff]  ;;  %v2277_v34 = vld [vmem:[%s8431_s3 + $0x348] sm:$0xff]  ;;  %v964_v40 = vsub.s32 2, %v4407_v41 }
 0x1e8   :  { %2609 = vmatpush1.msra.mxu0 %v2196_v44  ;;  %2680 = vmatpush1.msra.mxu1 %v2324_v13  ;;  %v2405_v39 = vld [vmem:[%s8431_s3 + $0x748] sm:$0xff]  ;;  %v2276_v42 = vld [vmem:[%s8431_s3 + $0x340] sm:$0xff] }
 0x1e9   :  { %2610 = vmatprep.subr.mxu0 %v2193_v46  ;;  %2681 = vmatprep.subr.mxu1 %v2321_v47  ;;  %v2404_v44 = vld [vmem:[%s8431_s3 + $0x740] sm:$0xff]  ;;  %v2273_v13 = vld [vmem:[%s8431_s3 + $0x328] sm:$0xff] }
 0x1ea   :  { %2611 = vmatpush1.msra.mxu0 %v2192_v49  ;;  %2682 = vmatpush1.msra.mxu1 %v2320_v50  ;;  %v2401_v46 = vld [vmem:[%s8431_s3 + $0x728] sm:$0xff]  ;;  %v2272_v47 = vld [vmem:[%s8431_s3 + $0x320] sm:$0xff] }
 0x1eb   :  { %2612 = vmatprep.subr.mxu0 %v2189_v51  ;;  %2683 = vmatprep.subr.mxu1 %v2317_v54  ;;  %v2400_v49 = vld [vmem:[%s8431_s3 + $0x720] sm:$0xff]  ;;  %v2269_v50 = vld [vmem:[%s8431_s3 + $0x308] sm:$0xff]  ;;  %v965_v54 = vrot.slane %v6791_v6, %v964_v40 }
 0x1ec   :  { %2613 = vmatpush1.msra.mxu0 %v2188_v56  ;;  %2684 = vmatpush1.msra.mxu1 %v2316_v57  ;;  %v2397_v51 = vld [vmem:[%s8431_s3 + $0x708] sm:$0xff]  ;;  %v2268_v56 = vld [vmem:[%s8431_s3 + $0x300] sm:$0xff] }
 0x1ed   :  { %2614 = vmatprep.subr.mxu0 %v2185_v58  ;;  %2685 = vmatprep.subr.mxu1 %v2313_v60  ;;  %v2396_v57 = vld [vmem:[%s8431_s3 + $0x700] sm:$0xff]  ;;  %v2265_v58 = vld [vmem:[%s8431_s3 + $0x2e8] sm:$0xff] }
 0x1ee   :  { %2615 = vmatpush1.msra.mxu0 %v2184_v61  ;;  %2686 = vmatpush1.msra.mxu1 %v2312_v63  ;;  %v2393_v60 = vld [vmem:[%s8431_s3 + $0x6e8] sm:$0xff]  ;;  %v2264_v61 = vld [vmem:[%s8431_s3 + $0x2e0] sm:$0xff] }
 0x1ef   :  { %2616 = vmatprep.subr.mxu0 %v2181_v25  ;;  %2687 = vmatprep.subr.mxu1 %v2309_v1  ;;  %v2392_v63 = vld [vmem:[%s8431_s3 + $0x6e0] sm:$0xff]  ;;  %v2261_v25 = vld [vmem:[%s8431_s3 + $0x2c8] sm:$0xff] }
 0x1f0   :  { %2617 = vmatpush1.msra.mxu0 %v2180_v28  ;;  %2688 = vmatpush1.msra.mxu1 %v2308_v2  ;;  %v2389_v1 = vld [vmem:[%s8431_s3 + $0x6c8] sm:$0xff]  ;;  %v1384_v28 = vadd.f32 %v6822_v24, %v965_v54  ;;  %v2260_v2 = vld [vmem:[%s8431_s3 + $0x2c0] sm:$0xff] }
 0x1f1   :  { %2618 = vmatprep.subr.mxu0 %v2177_v16  ;;  %2689 = vmatprep.subr.mxu1 %v2305_v21  ;;  %v2388_v16 = vld [vmem:[%s8431_s3 + $0x6c0] sm:$0xff]  ;;  %v2257_v21 = vld [vmem:[%s8431_s3 + $0x2a8] sm:$0xff] }
 0x1f2   :  { %2619 = vmatpush1.msra.mxu0 %v2176_v4  ;;  %2690 = vmatpush1.msra.mxu1 %v2304_v7  ;;  %v2385_v24 = vld [vmem:[%s8431_s3 + $0x6a8] sm:$0xff]  ;;  %v2256_v4 = vld [vmem:[%s8431_s3 + $0x2a0] sm:$0xff] }
 0x1f3   :  { %2620 = vmatprep.subr.mxu0 %v2173_v9  ;;  %2691 = vmatprep.subr.mxu1 %v2301_v10  ;;  %v2384_v7 = vld [vmem:[%s8431_s3 + $0x6a0] sm:$0xff]  ;;  %v2253_v9 = vld [vmem:[%s8431_s3 + $0x288] sm:$0xff] }
 0x1f4   :  { %2621 = vmatpush1.msra.mxu0 %v2172_v12  ;;  %2692 = vmatpush1.msra.mxu1 %v2300_v14  ;;  %v2381_v10 = vld [vmem:[%s8431_s3 + $0x688] sm:$0xff]  ;;  %v1455_v12 = vadd.f32 %v6852_v62, %v1384_v28  ;;  %v2252_v14 = vld [vmem:[%s8431_s3 + $0x280] sm:$0xff] }
 0x1f5   :  { %2622 = vmatprep.subr.mxu0 %v2297_v15  ;;  %2693 = vmatprep.subr.mxu1 %v2425_v17  ;;  %v2380_v15 = vld [vmem:[%s8431_s3 + $0x680] sm:$0xff]  ;;  %v2249_v17 = vld [vmem:[%s8431_s3 + $0x268] sm:$0xff] }
 0x1f6   :  { %2623 = vmatpush2.msra.mxu0 %v2296_v18  ;;  %2694 = vmatpush2.msra.mxu1 %v2424_v22  ;;  %v2377_v62 = vld [vmem:[%s8431_s3 + $0x668] sm:$0xff]  ;;  %v1526_v18 = vadd.f32 %v6872_v43, %v1455_v12  ;;  %v2248_v22 = vld [vmem:[%s8431_s3 + $0x260] sm:$0xff] }
 0x1f7   :  { %2624 = vmatprep.subr.mxu0 %v2293_v23  ;;  %2695 = vmatprep.subr.mxu1 %v2421_v52  ;;  %v2376_v23 = vld [vmem:[%s8431_s3 + $0x660] sm:$0xff]  ;;  %v2245_v52 = vld [vmem:[%s8431_s3 + $0x248] sm:$0xff] }
 0x1f8   :  { %2625 = vmatpush2.msra.mxu0 %v2292_v26  ;;  %2696 = vmatpush2.msra.mxu1 %v2420_v27  ;;  %v2373_v43 = vld [vmem:[%s8431_s3 + $0x648] sm:$0xff]  ;;  %v2244_v26 = vld [vmem:[%s8431_s3 + $0x240] sm:$0xff] }
 0x1f9   :  { %2626 = vmatprep.subr.mxu0 %v2289_v29  ;;  %2697 = vmatprep.subr.mxu1 %v2417_v30  ;;  %v2372_v27 = vld [vmem:[%s8431_s3 + $0x640] sm:$0xff]  ;;  %v2241_v29 = vld [vmem:[%s8431_s3 + $0x228] sm:$0xff] }
 0x1fa   :  { %2627 = vmatpush2.msra.mxu0 %v2288_v31  ;;  %2698 = vmatpush2.msra.mxu1 %v2416_v32  ;;  %v2369_v30 = vld [vmem:[%s8431_s3 + $0x628] sm:$0xff]  ;;  %v7282_v31 = vadd.f32 %v6894_v55, %v1526_v18  ;;  %v2240_v32 = vld [vmem:[%s8431_s3 + $0x220] sm:$0xff] }
 0x1fb   :  { %2628 = vmatprep.subr.mxu0 %v2285_v33  ;;  %2699 = vmatprep.subr.mxu1 %v2413_v35  ;;  %v2368_v33 = vld [vmem:[%s8431_s3 + $0x620] sm:$0xff]  ;;  %v2237_v35 = vld [vmem:[%s8431_s3 + $0x208] sm:$0xff] }
 0x1fc   :  { %2629 = vmatpush2.msra.mxu0 %v2284_v8  ;;  %2700 = vmatpush2.msra.mxu1 %v2412_v36  ;;  %v2365_v55 = vld [vmem:[%s8431_s3 + $0x608] sm:$0xff]  ;;  %v2236_v8 = vld [vmem:[%s8431_s3 + $0x200] sm:$0xff] }
 0x1fd   :  { %2630 = vmatprep.subr.mxu0 %v2281_v11  ;;  %2701 = vmatprep.subr.mxu1 %v2409_v37  ;;  %v2364_v36 = vld [vmem:[%s8431_s3 + $0x600] sm:$0xff]  ;;  %v2165_v11 = vmax.f32 %v6089_v45, 0.0  ;;  %v2167_v37 = vmax.f32 %v7282_v31, 0.0  ;;  %v2557_v54 = vld [vmem:[%s8431_s3 + $0xc08] sm:$0xff]  ;;  %v2231_v31 = vld [vmem:[%s8431_s3 + $0x1d8] sm:$0xff] }
 0x1fe   :  { %2631 = vmatpush2.msra.mxu0 %v2280_v38  ;;  %2702 = vmatpush2.msra.mxu1 %v2408_v3  ;;  %v2489_v38 = vld [vmem:[%s8431_s3 + $0x9e8] sm:$0xff]  ;;  %v2488_v3 = vld [vmem:[%s8431_s3 + $0x9e0] sm:$0xff]  ;;  %v2482_v45 = vld [vmem:[%s8431_s3 + $0x9b0] sm:$0xff] }
 0x1ff   :  { %2632 = vmatprep.subr.mxu0 %v2277_v34  ;;  %2703 = vmatprep.subr.mxu1 %v2405_v39  ;;  %v2485_v34 = vld [vmem:[%s8431_s3 + $0x9c8] sm:$0xff]  ;;  %v2484_v39 = vld [vmem:[%s8431_s3 + $0x9c0] sm:$0xff] }
 0x200   :  { %2633 = vmatpush2.msra.mxu0 %v2276_v42  ;;  %2704 = vmatpush2.msra.mxu1 %v2404_v44  ;;  %v2481_v42 = vld [vmem:[%s8431_s3 + $0x9a8] sm:$0xff]  ;;  %v2480_v44 = vld [vmem:[%s8431_s3 + $0x9a0] sm:$0xff] }
 0x201   :  { %2634 = vmatprep.subr.mxu0 %v2273_v13  ;;  %2705 = vmatprep.subr.mxu1 %v2401_v46  ;;  %v2477_v13 = vld [vmem:[%s8431_s3 + $0x988] sm:$0xff]  ;;  %v2476_v46 = vld [vmem:[%s8431_s3 + $0x980] sm:$0xff] }
 0x202   :  { %2635 = vmatpush2.msra.mxu0 %v2272_v47  ;;  %2706 = vmatpush2.msra.mxu1 %v2400_v49  ;;  %v2561_v47 = vld [vmem:[%s8431_s3 + $0xc28] sm:$0xff]  ;;  %v2460_v28 = vld [vmem:[%s8431_s3 + $0x900] sm:$0xff] }
 0x203   :  { %2636 = vmatprep.subr.mxu0 %v2269_v50  ;;  %2707 = vmatprep.subr.mxu1 %v2397_v51  ;;  %v2473_v49 = vld [vmem:[%s8431_s3 + $0x968] sm:$0xff]  ;;  %v2560_v50 = vld [vmem:[%s8431_s3 + $0xc20] sm:$0xff] }
 0x204   :  { %2637 = vmatpush2.msra.mxu0 %v2268_v56  ;;  %2708 = vmatpush2.msra.mxu1 %v2396_v57  ;;  %v2472_v51 = vld [vmem:[%s8431_s3 + $0x960] sm:$0xff]  ;;  %v2469_v57 = vld [vmem:[%s8431_s3 + $0x948] sm:$0xff] }
 0x205   :  { %2638 = vmatprep.subr.mxu0 %v2265_v58  ;;  %2709 = vmatprep.subr.mxu1 %v2393_v60  ;;  %v2556_v56 = vld [vmem:[%s8431_s3 + $0xc00] sm:$0xff]  ;;  %v2235_v58 = vld [vmem:[%s8431_s3 + $0x1f8] sm:$0xff]  ;;  %v2441_v12 = vld [vmem:[%s8431_s3 + $0x868] sm:$0xff] }
 0x206   :  { %2639 = vmatpush2.msra.mxu0 %v2264_v61  ;;  %2710 = vmatpush2.msra.mxu1 %v2392_v63  ;;  %v2468_v60 = vld [vmem:[%s8431_s3 + $0x940] sm:$0xff]  ;;  %v2465_v61 = vld [vmem:[%s8431_s3 + $0x928] sm:$0xff]  ;;  %v4011_v63 = vmov 0.0  }
 0x207   :  { %2640 = vmatprep.subr.mxu0 %v2261_v25  ;;  %2711 = vmatprep.subr.mxu1 %v2389_v1  ;;  %v2464_v25 = vld [vmem:[%s8431_s3 + $0x920] sm:$0xff]  ;;  %v2461_v1 = vld [vmem:[%s8431_s3 + $0x908] sm:$0xff] }
 0x208   :  { %2641 = vmatpush2.msra.mxu0 %v2260_v2  ;;  %2712 = vmatpush2.msra.mxu1 %v2388_v16  ;;  %v2457_v2 = vld [vmem:[%s8431_s3 + $0x8e8] sm:$0xff]  ;;  %v2456_v16 = vld [vmem:[%s8431_s3 + $0x8e0] sm:$0xff] }
 0x209   :  { %2642 = vmatprep.subr.mxu0 %v2257_v21  ;;  %2713 = vmatprep.subr.mxu1 %v2385_v24  ;;  %v2453_v21 = vld [vmem:[%s8431_s3 + $0x8c8] sm:$0xff]  ;;  %v2452_v24 = vld [vmem:[%s8431_s3 + $0x8c0] sm:$0xff] }
 0x20a   :  { %2643 = vmatpush2.msra.mxu0 %v2256_v4  ;;  %2714 = vmatpush2.msra.mxu1 %v2384_v7  ;;  %v2449_v4 = vld [vmem:[%s8431_s3 + $0x8a8] sm:$0xff]  ;;  %v2448_v7 = vld [vmem:[%s8431_s3 + $0x8a0] sm:$0xff] }
 0x20b   :  { %2644 = vmatprep.subr.mxu0 %v2253_v9  ;;  %2715 = vmatprep.subr.mxu1 %v2381_v10  ;;  %v2445_v9 = vld [vmem:[%s8431_s3 + $0x888] sm:$0xff]  ;;  %v2444_v10 = vld [vmem:[%s8431_s3 + $0x880] sm:$0xff] }
 0x20c   :  { %2645 = vmatpush2.msra.mxu0 %v2252_v14  ;;  %2716 = vmatpush2.msra.mxu1 %v2380_v15  ;;  %v2440_v14 = vld [vmem:[%s8431_s3 + $0x860] sm:$0xff]  ;;  %v2437_v15 = vld [vmem:[%s8431_s3 + $0x848] sm:$0xff] }
 0x20d   :  { %2646 = vmatprep.subr.mxu0 %v2249_v17  ;;  %2717 = vmatprep.subr.mxu1 %v2377_v62  ;;  %v2436_v17 = vld [vmem:[%s8431_s3 + $0x840] sm:$0xff]  ;;  %v2433_v62 = vld [vmem:[%s8431_s3 + $0x828] sm:$0xff] }
 0x20e   :  { %2647 = vmatpush2.msra.mxu0 %v2248_v22  ;;  %2718 = vmatpush2.msra.mxu1 %v2376_v23  ;;  %v2432_v18 = vld [vmem:[%s8431_s3 + $0x820] sm:$0xff]  ;;  %v2429_v22 = vld [vmem:[%s8431_s3 + $0x808] sm:$0xff] }
 0x20f   :  { %2648 = vmatprep.subr.mxu0 %v2245_v52  ;;  %2719 = vmatprep.subr.mxu1 %v2373_v43  ;;  %v2428_v23 = vld [vmem:[%s8431_s3 + $0x800] sm:$0xff]  ;;  %v2553_v52 = vld [vmem:[%s8431_s3 + $0xbe8] sm:$0xff] }
 0x210   :  { %2649 = vmatpush2.msra.mxu0 %v2244_v26  ;;  %2720 = vmatpush2.msra.mxu1 %v2372_v27  ;;  %v2552_v43 = vld [vmem:[%s8431_s3 + $0xbe0] sm:$0xff]  ;;  %v2549_v26 = vld [vmem:[%s8431_s3 + $0xbc8] sm:$0xff] }
 0x211   :  { %2650 = vmatprep.subr.mxu0 %v2241_v29  ;;  %2721 = vmatprep.subr.mxu1 %v2369_v30  ;;  %v2548_v27 = vld [vmem:[%s8431_s3 + $0xbc0] sm:$0xff]  ;;  %v2545_v29 = vld [vmem:[%s8431_s3 + $0xba8] sm:$0xff] }
 0x212   :  { %2651 = vmatpush2.msra.mxu0 %v2240_v32  ;;  %2722 = vmatpush2.msra.mxu1 %v2368_v33  ;;  %v2544_v30 = vld [vmem:[%s8431_s3 + $0xba0] sm:$0xff]  ;;  %v2541_v32 = vld [vmem:[%s8431_s3 + $0xb88] sm:$0xff] }
 0x213   :  { %2652 = vmatprep.subr.mxu0 %v2237_v35  ;;  %2723 = vmatprep.subr.mxu1 %v2365_v55  ;;  %v2540_v33 = vld [vmem:[%s8431_s3 + $0xb80] sm:$0xff]  ;;  %v2537_v35 = vld [vmem:[%s8431_s3 + $0xb68] sm:$0xff] }
 0x214   :  { %2653 = vmatpush2.msra.mxu0 %v2236_v8  ;;  %2724 = vmatpush2.msra.mxu1 %v2364_v36  ;;  %v2536_v55 = vld [vmem:[%s8431_s3 + $0xb60] sm:$0xff]  ;;  %v2533_v8 = vld [vmem:[%s8431_s3 + $0xb48] sm:$0xff] }
 0x215   :  { %2655 = vmatmul.mubr.f32.vlgmr.msra.gmra.mxu0 %v2165_v11  ;;  %2726 = vmatmul.mubr.f32.vlgmr.msra.gmra.mxu1 %v2167_v37  ;;  %v2532_v36 = vld [vmem:[%s8431_s3 + $0xb40] sm:$0xff] }
 0x216   :  { %2732 = vmatprep.subr.mxu0 %v2489_v38  ;;  %2831 = vmatprep.subr.mxu1 %v2561_v47  ;;  %v2529_v38 = vld [vmem:[%s8431_s3 + $0xb28] sm:$0xff]  ;;  %v2520_v47 = vld [vmem:[%s8431_s3 + $0xae0] sm:$0xff] }
 0x217   :  { %2733 = vmatpush1.msra.mxu0 %v2488_v3  ;;  %2832 = vmatpush1.msra.mxu1 %v2560_v50  ;;  %v2528_v3 = vld [vmem:[%s8431_s3 + $0xb20] sm:$0xff]  ;;  %v2517_v50 = vld [vmem:[%s8431_s3 + $0xac8] sm:$0xff] }
 0x218   :  { %2734 = vmatprep.subr.mxu0 %v2485_v34  ;;  %2833 = vmatprep.subr.mxu1 %v2557_v54  ;;  %v972_v34 = vsub.s32 4, %v4407_v41 }
 0x219   :  { %2735 = vmatpush1.msra.mxu0 %v2484_v39  ;;  %2834 = vmatpush1.msra.mxu1 %v2556_v56  ;;  %v2525_v39 = vld [vmem:[%s8431_s3 + $0xb08] sm:$0xff] }
 0x21a   :  { %2736 = vmatprep.subr.mxu0 %v2481_v42  ;;  %2867 = vmatprep.mubr.f32.mxu1 %v4011_v63  ;;  %v2524_v42 = vld [vmem:[%s8431_s3 + $0xb00] sm:$0xff]  ;;  %v2513_v56 = vld [vmem:[%s8431_s3 + $0xaa8] sm:$0xff] }
 0x21b   :  { %2737 = vmatpush1.msra.mxu0 %v2480_v44  ;;  %2874 = vmatprep.subr.mxu1 %v2235_v58  ;;  %v976_v44 = vsub.s32 5, %v4407_v41 }
 0x21c   :  { %2738 = vmatprep.subr.mxu0 %v2477_v13  ;;  %v2521_v13 = vld [vmem:[%s8431_s3 + $0xae8] sm:$0xff] }
 0x21d   :  { %2739 = vmatpush1.msra.mxu0 %v2476_v46  ;;  %v1667_v46 = vpop.f32.mrf.mxu0  ;;  %v977_v54 = vrot.slane %v6791_v6, %v976_v44  ;;  %v2334_v44 = vld [vmem:[%s8431_s3 + $0x510] sm:$0xff] }
 0x21e   :  { %2740 = vmatprep.subr.mxu0 %v2473_v49  ;;  %v973_v49 = vrot.slane %v6791_v6, %v972_v34  ;;  %v2508_v6 = vld [vmem:[%s8431_s3 + $0xa80] sm:$0xff]  ;;  %v2339_v34 = vld [vmem:[%s8431_s3 + $0x538] sm:$0xff] }
 0x21f   :  { %2741 = vmatpush1.msra.mxu0 %v2472_v51  ;;  %v2516_v51 = vld [vmem:[%s8431_s3 + $0xac0] sm:$0xff]  ;;  %v1669_v58 = vpop.f32.mrf.mxu0 }
 0x220   :  { %2742 = vmatprep.subr.mxu0 %v2469_v57  ;;  %v1738_v57 = vpop.f32.mrf.mxu1 }
 0x221   :  { %2743 = vmatpush1.msra.mxu0 %v2468_v60  ;;  %v2512_v60 = vld [vmem:[%s8431_s3 + $0xaa0] sm:$0xff] }
 0x222   :  { %2744 = vmatprep.subr.mxu0 %v2465_v61  ;;  %v1668_v61 = vadd.f32 %v1667_v46, %v973_v49  ;;  %v2330_v46 = vld [vmem:[%s8431_s3 + $0x4f0] sm:$0xff] }
 0x223   :  { %2745 = vmatpush1.msra.mxu0 %v2464_v25  ;;  %v2509_v25 = vld [vmem:[%s8431_s3 + $0xa88] sm:$0xff]  ;;  %v2326_v49 = vld [vmem:[%s8431_s3 + $0x4d0] sm:$0xff] }
 0x224   :  { %2746 = vmatprep.subr.mxu0 %v2461_v1  ;;  %v1670_v1 = vadd.f32 %v1669_v58, %v977_v54  ;;  %v2319_v54 = vld [vmem:[%s8431_s3 + $0x498] sm:$0xff]  ;;  %v2314_v58 = vld [vmem:[%s8431_s3 + $0x470] sm:$0xff] }
 0x225   :  { %2747 = vmatpush1.msra.mxu0 %v2460_v28  ;;  %v2505_v28 = vld [vmem:[%s8431_s3 + $0xa68] sm:$0xff] }
 0x226   :  { %2748 = vmatprep.subr.mxu0 %v2457_v2  ;;  %v1740_v2 = vpop.f32.mrf.mxu1 }
 0x227   :  { %2749 = vmatpush1.msra.mxu0 %v2456_v16  ;;  %v2504_v16 = vld [vmem:[%s8431_s3 + $0xa60] sm:$0xff] }
 0x228   :  { %2750 = vmatprep.subr.mxu0 %v2453_v21  ;;  %v1739_v21 = vadd.f32 %v1738_v57, %v1668_v61  ;;  %v2315_v57 = vld [vmem:[%s8431_s3 + $0x478] sm:$0xff]  ;;  %v2310_v61 = vld [vmem:[%s8431_s3 + $0x450] sm:$0xff] }
 0x229   :  { %2751 = vmatpush1.msra.mxu0 %v2452_v24  ;;  %v2501_v24 = vld [vmem:[%s8431_s3 + $0xa48] sm:$0xff] }
 0x22a   :  { %2752 = vmatprep.subr.mxu0 %v2449_v4 }
 0x22b   :  { %2753 = vmatpush1.msra.mxu0 %v2448_v7  ;;  %v2500_v7 = vld [vmem:[%s8431_s3 + $0xa40] sm:$0xff] }
 0x22c   :  { %2754 = vmatprep.subr.mxu0 %v2445_v9  ;;  %v1741_v9 = vadd.f32 %v1740_v2, %v1670_v1  ;;  %v2303_v1 = vld [vmem:[%s8431_s3 + $0x418] sm:$0xff] }
 0x22d   :  { %2755 = vmatpush1.msra.mxu0 %v2444_v10  ;;  %v2427_v2 = vld [vmem:[%s8431_s3 + $0x7f8] sm:$0xff] }
 0x22e   :  { %2756 = vmatprep.subr.mxu0 %v2441_v12  ;;  %v2497_v12 = vld [vmem:[%s8431_s3 + $0xa28] sm:$0xff] }
 0x22f   :  { %2757 = vmatpush1.msra.mxu0 %v2440_v14 }
 0x230   :  { %2758 = vmatprep.subr.mxu0 %v2437_v15 }
 0x231   :  { %2759 = vmatpush1.msra.mxu0 %v2436_v17  ;;  %v2496_v17 = vld [vmem:[%s8431_s3 + $0xa20] sm:$0xff] }
 0x232   :  { %2760 = vmatprep.subr.mxu0 %v2433_v62 }
 0x233   :  { %2761 = vmatpush1.msra.mxu0 %v2432_v18  ;;  %v2493_v18 = vld [vmem:[%s8431_s3 + $0xa08] sm:$0xff] }
 0x234   :  { %2762 = vmatprep.subr.mxu0 %v2429_v22 }
 0x235   :  { %2763 = vmatpush1.msra.mxu0 %v2428_v23 }
 0x236   :  { %2764 = vmatprep.subr.mxu0 %v2553_v52  ;;  %v2492_v52 = vld [vmem:[%s8431_s3 + $0xa00] sm:$0xff] }
 0x237   :  { %2765 = vmatpush2.msra.mxu0 %v2552_v43 }
 0x238   :  { %2766 = vmatprep.subr.mxu0 %v2549_v26  ;;  %v2363_v26 = vld [vmem:[%s8431_s3 + $0x5f8] sm:$0xff] }
 0x239   :  { %2767 = vmatpush2.msra.mxu0 %v2548_v27 }
 0x23a   :  { %2768 = vmatprep.subr.mxu0 %v2545_v29 }
 0x23b   :  { %2769 = vmatpush2.msra.mxu0 %v2544_v30  ;;  %v2362_v30 = vld [vmem:[%s8431_s3 + $0x5f0] sm:$0xff] }
 0x23c   :  { %2770 = vmatprep.subr.mxu0 %v2541_v32  ;;  %v2359_v32 = vld [vmem:[%s8431_s3 + $0x5d8] sm:$0xff] }
 0x23d   :  { %2771 = vmatpush2.msra.mxu0 %v2540_v33  ;;  %v2358_v33 = vld [vmem:[%s8431_s3 + $0x5d0] sm:$0xff] }
 0x23e   :  { %2772 = vmatprep.subr.mxu0 %v2537_v35  ;;  %v2355_v35 = vld [vmem:[%s8431_s3 + $0x5b8] sm:$0xff] }
 0x23f   :  { %2773 = vmatpush2.msra.mxu0 %v2536_v55  ;;  %v2354_v55 = vld [vmem:[%s8431_s3 + $0x5b0] sm:$0xff] }
 0x240   :  { %2774 = vmatprep.subr.mxu0 %v2533_v8  ;;  %v2351_v8 = vld [vmem:[%s8431_s3 + $0x598] sm:$0xff] }
 0x241   :  { %2775 = vmatpush2.msra.mxu0 %v2532_v36  ;;  %v2346_v36 = vld [vmem:[%s8431_s3 + $0x570] sm:$0xff] }
 0x242   :  { %2776 = vmatprep.subr.mxu0 %v2529_v38  ;;  %v2343_v38 = vld [vmem:[%s8431_s3 + $0x558] sm:$0xff] }
 0x243   :  { %2777 = vmatpush2.msra.mxu0 %v2528_v3  ;;  %v2342_v3 = vld [vmem:[%s8431_s3 + $0x550] sm:$0xff] }
 0x244   :  { %2778 = vmatprep.subr.mxu0 %v2525_v39  ;;  %v2338_v39 = vld [vmem:[%s8431_s3 + $0x530] sm:$0xff] }
 0x245   :  { %2779 = vmatpush2.msra.mxu0 %v2524_v42  ;;  %v2335_v42 = vld [vmem:[%s8431_s3 + $0x518] sm:$0xff] }
 0x246   :  { %2780 = vmatprep.subr.mxu0 %v2521_v13  ;;  %v2331_v13 = vld [vmem:[%s8431_s3 + $0x4f8] sm:$0xff] }
 0x247   :  { %2781 = vmatpush2.msra.mxu0 %v2520_v47  ;;  %v2327_v47 = vld [vmem:[%s8431_s3 + $0x4d8] sm:$0xff] }
 0x248   :  { %2782 = vmatprep.subr.mxu0 %v2517_v50  ;;  %v2323_v50 = vld [vmem:[%s8431_s3 + $0x4b8] sm:$0xff] }
 0x249   :  { %2783 = vmatpush2.msra.mxu0 %v2516_v51  ;;  %v2322_v51 = vld [vmem:[%s8431_s3 + $0x4b0] sm:$0xff] }
 0x24a   :  { %2784 = vmatprep.subr.mxu0 %v2513_v56  ;;  %v2318_v56 = vld [vmem:[%s8431_s3 + $0x490] sm:$0xff] }
 0x24b   :  { %2785 = vmatpush2.msra.mxu0 %v2512_v60  ;;  %v2311_v60 = vld [vmem:[%s8431_s3 + $0x458] sm:$0xff] }
 0x24c   :  { %2786 = vmatprep.subr.mxu0 %v2509_v25  ;;  %v2307_v25 = vld [vmem:[%s8431_s3 + $0x438] sm:$0xff] }
 0x24d   :  { %2787 = vmatpush2.msra.mxu0 %v2508_v6  ;;  %v2306_v6 = vld [vmem:[%s8431_s3 + $0x430] sm:$0xff] }
 0x24e   :  { %v1809_v4 = vpop.f32.mrf.mxu0  ;;  %2788 = vmatprep.subr.mxu0 %v2505_v28  ;;  %v2302_v28 = vld [vmem:[%s8431_s3 + $0x410] sm:$0xff] }
 0x24f   :  { %v1810_v10 = vadd.f32 %v1809_v4, %v1739_v21  ;;  %2789 = vmatpush2.msra.mxu0 %v2504_v16  ;;  %v2426_v16 = vld [vmem:[%s8431_s3 + $0x7f0] sm:$0xff]  ;;  %v2423_v21 = vld [vmem:[%s8431_s3 + $0x7d8] sm:$0xff] }
 0x250   :  { %v1880_v14 = vpop.f32.mrf.mxu1  ;;  %v1811_v15 = vpop.f32.mrf.mxu0  ;;  %2790 = vmatprep.subr.mxu0 %v2501_v24  ;;  %v2422_v24 = vld [vmem:[%s8431_s3 + $0x7d0] sm:$0xff]  ;;  %v2419_v4 = vld [vmem:[%s8431_s3 + $0x7b8] sm:$0xff] }
 0x251   :  { %v1812_v62 = vadd.f32 %v1811_v15, %v1741_v9  ;;  %2791 = vmatpush2.msra.mxu0 %v2500_v7  ;;  %v7517_v22 = vadd.f32 %v1880_v14, %v1810_v10  ;;  %v2418_v7 = vld [vmem:[%s8431_s3 + $0x7b0] sm:$0xff]  ;;  %v2415_v9 = vld [vmem:[%s8431_s3 + $0x798] sm:$0xff] }
 0x252   :  { %v1882_v23 = vpop.f32.mrf.mxu1  ;;  %2792 = vmatprep.subr.mxu0 %v2497_v12  ;;  %v2414_v10 = vld [vmem:[%s8431_s3 + $0x790] sm:$0xff]  ;;  %v2411_v12 = vld [vmem:[%s8431_s3 + $0x778] sm:$0xff] }
 0x253   :  { %v7522_v43 = vadd.f32 %v1882_v23, %v1812_v62  ;;  %2793 = vmatpush2.msra.mxu0 %v2496_v17  ;;  %v2169_v29 = vmax.f32 %v7517_v22, 0.0  ;;  %v2410_v14 = vld [vmem:[%s8431_s3 + $0x770] sm:$0xff]  ;;  %v2407_v15 = vld [vmem:[%s8431_s3 + $0x758] sm:$0xff]  ;;  %v3206_v22 = vld [vmem:[%s8433_s5 + $0x160] sm:$0xff] }
 0x254   :  { %2794 = vmatprep.subr.mxu0 %v2493_v18  ;;  %v2406_v17 = vld [vmem:[%s8431_s3 + $0x750] sm:$0xff]  ;;  %v2403_v62 = vld [vmem:[%s8431_s3 + $0x738] sm:$0xff] }
 0x255   :  { %v2170_v27 = vmax.f32 %v7522_v43, 0.0  ;;  %2795 = vmatpush2.msra.mxu0 %v2492_v52  ;;  %v2402_v18 = vld [vmem:[%s8431_s3 + $0x730] sm:$0xff]  ;;  %v2399_v23 = vld [vmem:[%s8431_s3 + $0x718] sm:$0xff] }
 0x256   :  { %2945 = vmatprep.subr.mxu0 %v2363_v26  ;;  %v2398_v52 = vld [vmem:[%s8431_s3 + $0x710] sm:$0xff]  ;;  %v2395_v26 = vld [vmem:[%s8431_s3 + $0x6f8] sm:$0xff] }
 0x257   :  { %2796 = vmatprep.mubr.f32.mxu0 %v2170_v27  ;;  %v2479_v43 = vld [vmem:[%s8431_s3 + $0x998] sm:$0xff] }
 0x258   :  { %2797 = vmatmul.mubr.f32.vlgmr.msra.gmra.mxu0 %v2169_v29 }
 0x259   :  { %2946 = vmatpush1.msra.mxu0 %v2362_v30  ;;  %3009 = vmatprep.mubr.f32.mxu0 %v2168_v20  ;;  %v2347_v20 = vld [vmem:[%s8431_s3 + $0x578] sm:$0xff]  ;;  %v2394_v30 = vld [vmem:[%s8431_s3 + $0x6f0] sm:$0xff] }
 0x25a   :  { %2947 = vmatprep.subr.mxu0 %v2359_v32 }
 0x25b   :  { %2948 = vmatpush1.msra.mxu0 %v2358_v33  ;;  %v2391_v33 = vld [vmem:[%s8431_s3 + $0x6d8] sm:$0xff] }
 0x25c   :  { %2949 = vmatprep.subr.mxu0 %v2355_v35  ;;  %v2390_v35 = vld [vmem:[%s8431_s3 + $0x6d0] sm:$0xff] }
 0x25d   :  { %2950 = vmatpush1.msra.mxu0 %v2354_v55  ;;  %v2387_v55 = vld [vmem:[%s8431_s3 + $0x6b8] sm:$0xff] }
 0x25e   :  { %2951 = vmatprep.subr.mxu0 %v2351_v8  ;;  %v980_v8 = vsub.s32 6, %v4407_v41 }
 0x25f   :  { %2952 = vmatpush1.msra.mxu0 %v2350_v5  ;;  %v2386_v5 = vld [vmem:[%s8431_s3 + $0x6b0] sm:$0xff] }
 0x260   :  { %2953 = vmatprep.subr.mxu0 %v2347_v20 }
 0x261   :  { %2954 = vmatpush1.msra.mxu0 %v2346_v36 }
 0x262   :  { %2955 = vmatprep.subr.mxu0 %v2343_v38  ;;  %v2383_v38 = vld [vmem:[%s8431_s3 + $0x698] sm:$0xff] }
 0x263   :  { %2956 = vmatpush1.msra.mxu0 %v2342_v3  ;;  %v2382_v3 = vld [vmem:[%s8431_s3 + $0x690] sm:$0xff] }
 0x264   :  { %2957 = vmatprep.subr.mxu0 %v2339_v34  ;;  %v2379_v34 = vld [vmem:[%s8431_s3 + $0x678] sm:$0xff] }
 0x265   :  { %2958 = vmatpush1.msra.mxu0 %v2338_v39  ;;  %v3965_v39 = vld [vmem:[%s8430_s2] sm:$0x7f] }
 0x266   :  { %2959 = vmatprep.subr.mxu0 %v2335_v42  ;;  %v981_v42 = vrot.slane %v3965_v39, %v980_v8  ;;  %v3189_v8 = vld [vmem:[%s8433_s5 + $0xd8] sm:$0xff] }
 0x267   :  { %2960 = vmatpush1.msra.mxu0 %v2334_v44  ;;  %v2207_v39 = vld [vmem:[%s8431_s3 + $0x118] sm:$0xff] }
 0x268   :  { %2961 = vmatprep.subr.mxu0 %v2331_v13  ;;  %v2378_v13 = vld [vmem:[%s8431_s3 + $0x670] sm:$0xff] }
 0x269   :  { %2962 = vmatpush1.msra.mxu0 %v2330_v46 }
 0x26a   :  { %2963 = vmatprep.subr.mxu0 %v2327_v47  ;;  %v2375_v47 = vld [vmem:[%s8431_s3 + $0x658] sm:$0xff] }
 0x26b   :  { %2964 = vmatpush1.msra.mxu0 %v2326_v49  ;;  %v2374_v49 = vld [vmem:[%s8431_s3 + $0x650] sm:$0xff] }
 0x26c   :  { %2965 = vmatprep.subr.mxu0 %v2323_v50  ;;  %v2371_v50 = vld [vmem:[%s8431_s3 + $0x638] sm:$0xff] }
 0x26d   :  { %2966 = vmatpush1.msra.mxu0 %v2322_v51 }
 0x26e   :  { %2967 = vmatprep.subr.mxu0 %v2319_v54 }
 0x26f   :  { %2968 = vmatpush1.msra.mxu0 %v2318_v56  ;;  %v2370_v56 = vld [vmem:[%s8431_s3 + $0x630] sm:$0xff] }
 0x270   :  { %2969 = vmatprep.subr.mxu0 %v2315_v57  ;;  %v3737_v32 = vpop.f32.mrf.mxu0 }
 0x271   :  { %2970 = vmatpush1.msra.mxu0 %v2314_v58 }
 0x272   :  { %2971 = vmatprep.subr.mxu0 %v2311_v60  ;;  %v3772_v20 = vpop.f32.mrf.mxu1  ;;  %v3738_v36 = vpop.f32.mrf.mxu0  ;;  %v2367_v60 = vld [vmem:[%s8431_s3 + $0x618] sm:$0xff] }
 0x273   :  { %2972 = vmatpush1.msra.mxu0 %v2310_v61  ;;  %v3739_v44 = vadd.f32 %v3738_v36, %v3737_v32  ;;  %v2366_v61 = vld [vmem:[%s8431_s3 + $0x610] sm:$0xff]  ;;  %v3190_v32 = vld [vmem:[%s8433_s5 + $0xe0] sm:$0xff]  ;;  %v2211_v36 = vld [vmem:[%s8431_s3 + $0x138] sm:$0xff] }
 0x274   :  { %2973 = vmatprep.subr.mxu0 %v2307_v25  ;;  %v3773_v46 = vpop.f32.mrf.mxu1 }
 0x275   :  { %2974 = vmatpush1.msra.mxu0 %v2306_v6  ;;  %v1952_v51 = vadd.f32 %v3739_v44, %v981_v42  ;;  %v3774_v54 = vadd.f32 %v3773_v46, %v3772_v20  ;;  %v3173_v20 = vld [vmem:[%s8433_s5 + $0x58] sm:$0xff]  ;;  %v3187_v42 = vld [vmem:[%s8433_s5 + $0xc8] sm:$0xff]  ;;  %v2206_v44 = vld [vmem:[%s8431_s3 + $0x110] sm:$0xff] }
 0x276   :  { %2975 = vmatprep.subr.mxu0 %v2303_v1  ;;  %v2563_v1 = vld [vmem:[%s8431_s3 + $0xc38] sm:$0xff] }
 0x277   :  { %2976 = vmatpush1.msra.mxu0 %v2302_v28  ;;  %v2022_v28 = vadd.f32 %v3774_v54, %v1952_v51  ;;  %v2203_v46 = vld [vmem:[%s8431_s3 + $0xf8] sm:$0xff] }
 0x278   :  { %2977 = vmatprep.subr.mxu0 %v2427_v2  ;;  %v2199_v51 = vld [vmem:[%s8431_s3 + $0xd8] sm:$0xff] }
 0x279   :  { %2978 = vmatpush2.msra.mxu0 %v2426_v16  ;;  %v2562_v16 = vld [vmem:[%s8431_s3 + $0xc30] sm:$0xff]  ;;  %v3185_v54 = vld [vmem:[%s8433_s5 + $0xb8] sm:$0xff] }
 0x27a   :  { %2979 = vmatprep.subr.mxu0 %v2423_v21  ;;  %v2559_v21 = vld [vmem:[%s8431_s3 + $0xc18] sm:$0xff] }
 0x27b   :  { %2980 = vmatpush2.msra.mxu0 %v2422_v24 }
 0x27c   :  { %2981 = vmatprep.subr.mxu0 %v2419_v4 }
 0x27d   :  { %2982 = vmatpush2.msra.mxu0 %v2418_v7  ;;  %v2558_v7 = vld [vmem:[%s8431_s3 + $0xc10] sm:$0xff] }
 0x27e   :  { %2983 = vmatprep.subr.mxu0 %v2415_v9 }
 0x27f   :  { %2984 = vmatpush2.msra.mxu0 %v2414_v10 }
 0x280   :  { %2985 = vmatprep.subr.mxu0 %v2411_v12  ;;  %v2234_v12 = vld [vmem:[%s8431_s3 + $0x1f0] sm:$0xff] }
 0x281   :  { %2986 = vmatpush2.msra.mxu0 %v2410_v14  ;;  %v3193_v14 = vld [vmem:[%s8433_s5 + $0xf8] sm:$0xff] }
 0x282   :  { %2987 = vmatprep.subr.mxu0 %v2407_v15  ;;  %v3177_v15 = vld [vmem:[%s8433_s5 + $0x78] sm:$0xff] }
 0x283   :  { %2988 = vmatpush2.msra.mxu0 %v2406_v17  ;;  %v2227_v17 = vld [vmem:[%s8431_s3 + $0x1b8] sm:$0xff] }
 0x284   :  { %2989 = vmatprep.subr.mxu0 %v2403_v62  ;;  %v3192_v62 = vld [vmem:[%s8433_s5 + $0xf0] sm:$0xff] }
 0x285   :  { %2990 = vmatpush2.msra.mxu0 %v2402_v18  ;;  %v2226_v18 = vld [vmem:[%s8431_s3 + $0x1b0] sm:$0xff] }
 0x286   :  { %2991 = vmatprep.subr.mxu0 %v2399_v23  ;;  %v3176_v23 = vld [vmem:[%s8433_s5 + $0x70] sm:$0xff] }
 0x287   :  { %2992 = vmatpush2.msra.mxu0 %v2398_v52  ;;  %v2222_v52 = vld [vmem:[%s8431_s3 + $0x190] sm:$0xff] }
 0x288   :  { %2993 = vmatprep.subr.mxu0 %v2395_v26  ;;  %v3175_v26 = vld [vmem:[%s8433_s5 + $0x68] sm:$0xff] }
 0x289   :  { %2994 = vmatpush2.msra.mxu0 %v2394_v30  ;;  %v2219_v30 = vld [vmem:[%s8431_s3 + $0x178] sm:$0xff] }
 0x28a   :  { %2995 = vmatprep.subr.mxu0 %v2391_v33  ;;  %v2218_v33 = vld [vmem:[%s8431_s3 + $0x170] sm:$0xff] }
 0x28b   :  { %2996 = vmatpush2.msra.mxu0 %v2390_v35  ;;  %v3174_v35 = vld [vmem:[%s8433_s5 + $0x60] sm:$0xff] }
 0x28c   :  { %2997 = vmatprep.subr.mxu0 %v2387_v55  ;;  %v2215_v55 = vld [vmem:[%s8431_s3 + $0x158] sm:$0xff] }
 0x28d   :  { %2998 = vmatpush2.msra.mxu0 %v2386_v5  ;;  %v2214_v5 = vld [vmem:[%s8431_s3 + $0x150] sm:$0xff] }
 0x28e   :  { %2999 = vmatprep.subr.mxu0 %v2383_v38  ;;  %v3188_v38 = vld [vmem:[%s8433_s5 + $0xd0] sm:$0xff] }
 0x28f   :  { %3000 = vmatpush2.msra.mxu0 %v2382_v3  ;;  %v2210_v3 = vld [vmem:[%s8431_s3 + $0x130] sm:$0xff] }
 0x290   :  { %3001 = vmatprep.subr.mxu0 %v2379_v34  ;;  %v3172_v34 = vld [vmem:[%s8433_s5 + $0x50] sm:$0xff] }
 0x291   :  { %3002 = vmatpush2.msra.mxu0 %v2378_v13  ;;  %v3171_v13 = vld [vmem:[%s8433_s5 + $0x48] sm:$0xff] }
 0x292   :  { %3003 = vmatprep.subr.mxu0 %v2375_v47  ;;  %v3186_v47 = vld [vmem:[%s8433_s5 + $0xc0] sm:$0xff] }
 0x293   :  { %v3807_v57 = vpop.f32.mrf.mxu0  ;;  %v3842_v58 = vpop.f32.mrf.mxu1  ;;  %3004 = vmatpush2.msra.mxu0 %v2374_v49  ;;  %v2202_v49 = vld [vmem:[%s8431_s3 + $0xf0] sm:$0xff] }
 0x294   :  { %3005 = vmatprep.subr.mxu0 %v2371_v50  ;;  %v3170_v50 = vld [vmem:[%s8433_s5 + $0x40] sm:$0xff] }
 0x295   :  { %v3808_v25 = vpop.f32.mrf.mxu0  ;;  %v3843_v6 = vpop.f32.mrf.mxu1  ;;  %3006 = vmatpush2.msra.mxu0 %v2370_v56  ;;  %v2198_v56 = vld [vmem:[%s8431_s3 + $0xd0] sm:$0xff] }
 0x296   :  { %v3809_v2 = vadd.f32 %v3808_v25, %v3807_v57  ;;  %3007 = vmatprep.subr.mxu0 %v2367_v60  ;;  %v3844_v4 = vadd.f32 %v3843_v6, %v3842_v58  ;;  %v3169_v57 = vld [vmem:[%s8433_s5 + $0x38] sm:$0xff]  ;;  %v3184_v60 = vld [vmem:[%s8433_s5 + $0xb0] sm:$0xff] }
 0x297   :  { %3008 = vmatpush2.msra.mxu0 %v2366_v61  ;;  %v2195_v58 = vld [vmem:[%s8431_s3 + $0xb8] sm:$0xff]  ;;  %v2194_v61 = vld [vmem:[%s8431_s3 + $0xb0] sm:$0xff] }
 0x298   :  { %v2092_v24 = vadd.f32 %v3809_v2, %v2022_v28  ;;  %3010 = vmatmul.mubr.f32.vlgmr.msra.gmra.mxu0 %v2167_v37  ;;  %3115 = vmatprep.subr.mxu0 %v2563_v1  ;;  %v2230_v37 = vld [vmem:[%s8431_s3 + $0x1d0] sm:$0xff]  ;;  %v2191_v6 = vld [vmem:[%s8431_s3 + $0x98] sm:$0xff]  ;;  %v3183_v1 = vld [vmem:[%s8433_s5 + $0xa8] sm:$0xff] }
 0x299   :  { %3116 = vmatpush1.msra.mxu0 %v2562_v16  ;;  %3151 = vmatprep.mubr.f32.mxu0 %v4011_v63  ;;  %v3168_v25 = vld [vmem:[%s8433_s5 + $0x30] sm:$0xff]  ;;  %v3167_v2 = vld [vmem:[%s8433_s5 + $0x28] sm:$0xff]  ;;  %v2187_v16 = vld [vmem:[%s8431_s3 + $0x78] sm:$0xff] }
 0x29a   :  { %v2162_v9 = vadd.f32 %v3844_v4, %v2092_v24  ;;  %3117 = vmatprep.subr.mxu0 %v2559_v21  ;;  %v2190_v28 = vld [vmem:[%s8431_s3 + $0x90] sm:$0xff]  ;;  %v2183_v24 = vld [vmem:[%s8431_s3 + $0x58] sm:$0xff] }
 0x29b   :  { %3118 = vmatpush1.msra.mxu0 %v2558_v7  ;;  %v2186_v21 = vld [vmem:[%s8431_s3 + $0x70] sm:$0xff]  ;;  %v2179_v7 = vld [vmem:[%s8431_s3 + $0x38] sm:$0xff] }
 0x29c   :  { %v2171_v10 = vmax.f32 %v2162_v9, 0.0  ;;  %3845 = vmatprep.subr.mxu0 %v3193_v14  ;;  %v2182_v4 = vld [vmem:[%s8431_s3 + $0x50] sm:$0xff]  ;;  %v2295_v14 = vld [vmem:[%s8431_s3 + $0x3d8] sm:$0xff] }
 0x29d   :  { %v2178_v9 = vld [vmem:[%s8431_s3 + $0x30] sm:$0xff] }
 0x29e   :  { %3693 = vmatmul.mubr.msk.f32.vlgmr.msra.gmra.mxu1 %vm2586_vm0, %v2171_v10  ;;  %3694 = vmatmul.mubr.msk.f32.vlgmr.msra.gmra.mxu0 %vm2586_vm0, %v2171_v10  ;;  %v2175_v10 = vld [vmem:[%s8431_s3 + $0x18] sm:$0xff] }
 0x29f   :  { %2875 = vmatpush1.msra.mxu1 %v2234_v12  ;;  %2938 = vmatprep.mubr.f32.mxu1 %v2166_v0  ;;  %v3191_v0 = vld [vmem:[%s8433_s5 + $0xe8] sm:$0xff]  ;;  %v2174_v12 = vld [vmem:[%s8431_s3 + $0x10] sm:$0xff] }
 0x2a0   :  { %2876 = vmatprep.subr.mxu1 %v2231_v31  ;;  %3846 = vmatpush3.msra.mxu0 %v3177_v15  ;;  %v2299_v31 = vld [vmem:[%s8431_s3 + $0x3f8] sm:$0xff]  ;;  %v2294_v15 = vld [vmem:[%s8431_s3 + $0x3d0] sm:$0xff] }
 0x2a1   :  { %2877 = vmatpush1.msra.mxu1 %v2230_v37  ;;  %3847 = vmatprep.subr.mxu0 %v3192_v62  ;;  %v2298_v37 = vld [vmem:[%s8431_s3 + $0x3f0] sm:$0xff] }
 0x2a2   :  { %2878 = vmatprep.subr.mxu1 %v2227_v17  ;;  %3848 = vmatpush3.msra.mxu0 %v3176_v23  ;;  %v2291_v17 = vld [vmem:[%s8431_s3 + $0x3b8] sm:$0xff]  ;;  %v2290_v62 = vld [vmem:[%s8431_s3 + $0x3b0] sm:$0xff] }
 0x2a3   :  { %2879 = vmatpush1.msra.mxu1 %v2226_v18  ;;  %3849 = vmatprep.subr.mxu0 %v3191_v0  ;;  %v2287_v18 = vld [vmem:[%s8431_s3 + $0x398] sm:$0xff]  ;;  %v2286_v23 = vld [vmem:[%s8431_s3 + $0x390] sm:$0xff] }
 0x2a4   :  { %2880 = vmatprep.subr.mxu1 %v2223_v53  ;;  %3850 = vmatpush3.msra.mxu0 %v3175_v26  ;;  %v2283_v53 = vld [vmem:[%s8431_s3 + $0x378] sm:$0xff]  ;;  %v2282_v0 = vld [vmem:[%s8431_s3 + $0x370] sm:$0xff] }
 0x2a5   :  { %2881 = vmatpush1.msra.mxu1 %v2222_v52  ;;  %3851 = vmatprep.subr.mxu0 %v3190_v32  ;;  %v2279_v52 = vld [vmem:[%s8431_s3 + $0x358] sm:$0xff]  ;;  %v2278_v26 = vld [vmem:[%s8431_s3 + $0x350] sm:$0xff] }
 0x2a6   :  { %2882 = vmatprep.subr.mxu1 %v2219_v30  ;;  %3852 = vmatpush3.msra.mxu0 %v3174_v35  ;;  %v2275_v30 = vld [vmem:[%s8431_s3 + $0x338] sm:$0xff]  ;;  %v2274_v32 = vld [vmem:[%s8431_s3 + $0x330] sm:$0xff] }
 0x2a7   :  { %2883 = vmatpush1.msra.mxu1 %v2218_v33  ;;  %3853 = vmatprep.subr.mxu0 %v3189_v8  ;;  %v2271_v33 = vld [vmem:[%s8431_s3 + $0x318] sm:$0xff]  ;;  %v2270_v35 = vld [vmem:[%s8431_s3 + $0x310] sm:$0xff] }
 0x2a8   :  { %2884 = vmatprep.subr.mxu1 %v2215_v55  ;;  %3854 = vmatpush3.msra.mxu0 %v3173_v20  ;;  %v2267_v55 = vld [vmem:[%s8431_s3 + $0x2f8] sm:$0xff]  ;;  %v2266_v8 = vld [vmem:[%s8431_s3 + $0x2f0] sm:$0xff] }
 0x2a9   :  { %2885 = vmatpush1.msra.mxu1 %v2214_v5  ;;  %3855 = vmatprep.subr.mxu0 %v3188_v38  ;;  %v2263_v5 = vld [vmem:[%s8431_s3 + $0x2d8] sm:$0xff]  ;;  %v2262_v20 = vld [vmem:[%s8431_s3 + $0x2d0] sm:$0xff] }
 0x2aa   :  { %2886 = vmatprep.subr.mxu1 %v2211_v36  ;;  %3856 = vmatpush3.msra.mxu0 %v3172_v34  ;;  %v2259_v36 = vld [vmem:[%s8431_s3 + $0x2b8] sm:$0xff]  ;;  %v2258_v38 = vld [vmem:[%s8431_s3 + $0x2b0] sm:$0xff] }
 0x2ab   :  { %2887 = vmatpush1.msra.mxu1 %v2210_v3  ;;  %3857 = vmatprep.subr.mxu0 %v3187_v42  ;;  %v2255_v3 = vld [vmem:[%s8431_s3 + $0x298] sm:$0xff]  ;;  %v2254_v34 = vld [vmem:[%s8431_s3 + $0x290] sm:$0xff] }
 0x2ac   :  { %2888 = vmatprep.subr.mxu1 %v2207_v39  ;;  %3858 = vmatpush3.msra.mxu0 %v3171_v13  ;;  %v2251_v39 = vld [vmem:[%s8431_s3 + $0x278] sm:$0xff]  ;;  %v2250_v42 = vld [vmem:[%s8431_s3 + $0x270] sm:$0xff] }
 0x2ad   :  { %2889 = vmatpush1.msra.mxu1 %v2206_v44  ;;  %3859 = vmatprep.subr.mxu0 %v3186_v47  ;;  %v2247_v44 = vld [vmem:[%s8431_s3 + $0x258] sm:$0xff]  ;;  %v2246_v13 = vld [vmem:[%s8431_s3 + $0x250] sm:$0xff] }
 0x2ae   :  { %2890 = vmatprep.subr.mxu1 %v2203_v46  ;;  %3860 = vmatpush3.msra.mxu0 %v3170_v50  ;;  %v2243_v46 = vld [vmem:[%s8431_s3 + $0x238] sm:$0xff]  ;;  %v2242_v47 = vld [vmem:[%s8431_s3 + $0x230] sm:$0xff]  ;;  %v3166_v50 = vld [vmem:[%s8433_s5 + $0x20] sm:$0xff] }
 0x2af   :  { %2891 = vmatpush1.msra.mxu1 %v2202_v49  ;;  %3861 = vmatprep.subr.mxu0 %v3185_v54  ;;  %v3182_v49 = vld [vmem:[%s8433_s5 + $0xa0] sm:$0xff]  ;;  %v2238_v54 = vld [vmem:[%s8431_s3 + $0x210] sm:$0xff] }
 0x2b0   :  { %2892 = vmatprep.subr.mxu1 %v2199_v51  ;;  %3862 = vmatpush3.msra.mxu0 %v3169_v57  ;;  %v2239_v51 = vld [vmem:[%s8431_s3 + $0x218] sm:$0xff]  ;;  %v2490_v57 = vld [vmem:[%s8431_s3 + $0x9f0] sm:$0xff] }
 0x2b1   :  { %2893 = vmatpush1.msra.mxu1 %v2198_v56  ;;  %3863 = vmatprep.subr.mxu0 %v3184_v60  ;;  %v2491_v56 = vld [vmem:[%s8431_s3 + $0x9f8] sm:$0xff]  ;;  %v2486_v60 = vld [vmem:[%s8431_s3 + $0x9d0] sm:$0xff] }
 0x2b2   :  { %2894 = vmatprep.subr.mxu1 %v2195_v58  ;;  %3864 = vmatpush3.msra.mxu0 %v3168_v25  ;;  %v2487_v58 = vld [vmem:[%s8431_s3 + $0x9d8] sm:$0xff] }
 0x2b3   :  { %2895 = vmatpush1.msra.mxu1 %v2194_v61  ;;  %3865 = vmatprep.subr.mxu0 %v3183_v1  ;;  %v2483_v61 = vld [vmem:[%s8431_s3 + $0x9b8] sm:$0xff] }
 0x2b4   :  { %2896 = vmatprep.subr.mxu1 %v2191_v6  ;;  %3866 = vmatpush3.msra.mxu0 %v3167_v2  ;;  %v3181_v25 = vld [vmem:[%s8433_s5 + $0x98] sm:$0xff]  ;;  %v2478_v6 = vld [vmem:[%s8431_s3 + $0x990] sm:$0xff]  ;;  %v3179_v2 = vld [vmem:[%s8433_s5 + $0x88] sm:$0xff] }
 0x2b5   :  { %2897 = vmatpush1.msra.mxu1 %v2190_v28  ;;  %3867 = vmatprep.subr.mxu0 %v3182_v49  ;;  %v2475_v1 = vld [vmem:[%s8431_s3 + $0x978] sm:$0xff]  ;;  %v3164_v28 = vld [vmem:[%s8433_s5 + $0x10] sm:$0xff] }
 0x2b6   :  { %2898 = vmatprep.subr.mxu1 %v2187_v16  ;;  %3868 = vmatpush3.msra.mxu0 %v3166_v50  ;;  %v3163_v16 = vld [vmem:[%s8433_s5 + $0x8] sm:$0xff]  ;;  %v2531_v49 = vld [vmem:[%s8431_s3 + $0xb38] sm:$0xff]  ;;  %v2530_v50 = vld [vmem:[%s8431_s3 + $0xb30] sm:$0xff] }
 0x2b7   :  { %2899 = vmatpush1.msra.mxu1 %v2186_v21  ;;  %3869 = vmatprep.subr.mxu0 %v3181_v25  ;;  %v3178_v21 = vld [vmem:[%s8433_s5 + $0x80] sm:$0xff]  ;;  %v2514_v25 = vld [vmem:[%s8431_s3 + $0xab0] sm:$0xff] }
 0x2b8   :  { %2900 = vmatprep.subr.mxu1 %v2183_v24  ;;  %v2474_v24 = vld [vmem:[%s8431_s3 + $0x970] sm:$0xff] }
 0x2b9   :  { %2901 = vmatpush1.msra.mxu1 %v2182_v4  ;;  %v3162_v4 = vld [vmem:[%s8433_s5] sm:$0xff] }
 0x2ba   :  { %2902 = vmatprep.subr.mxu1 %v2179_v7  ;;  %v2471_v7 = vld [vmem:[%s8431_s3 + $0x958] sm:$0xff] }
 0x2bb   :  { %2903 = vmatpush1.msra.mxu1 %v2178_v9  ;;  %v2470_v9 = vld [vmem:[%s8431_s3 + $0x950] sm:$0xff] }
 0x2bc   :  { %2904 = vmatprep.subr.mxu1 %v2175_v10  ;;  %v2467_v10 = vld [vmem:[%s8431_s3 + $0x938] sm:$0xff] }
 0x2bd   :  { %2905 = vmatpush1.msra.mxu1 %v2174_v12  ;;  %v2466_v12 = vld [vmem:[%s8431_s3 + $0x930] sm:$0xff] }
 0x2be   :  { %2906 = vmatprep.subr.mxu1 %v2299_v31  ;;  %v2463_v31 = vld [vmem:[%s8431_s3 + $0x918] sm:$0xff] }
 0x2bf   :  { %2907 = vmatpush2.msra.mxu1 %v2298_v37  ;;  %v2462_v37 = vld [vmem:[%s8431_s3 + $0x910] sm:$0xff] }
 0x2c0   :  { %2908 = vmatprep.subr.mxu1 %v2295_v14  ;;  %v2459_v14 = vld [vmem:[%s8431_s3 + $0x8f8] sm:$0xff] }
 0x2c1   :  { %2909 = vmatpush2.msra.mxu1 %v2294_v15  ;;  %v2458_v15 = vld [vmem:[%s8431_s3 + $0x8f0] sm:$0xff] }
 0x2c2   :  { %2910 = vmatprep.subr.mxu1 %v2291_v17  ;;  %v2455_v17 = vld [vmem:[%s8431_s3 + $0x8d8] sm:$0xff] }
 0x2c3   :  { %2911 = vmatpush2.msra.mxu1 %v2290_v62  ;;  %v2454_v62 = vld [vmem:[%s8431_s3 + $0x8d0] sm:$0xff] }
 0x2c4   :  { %2912 = vmatprep.subr.mxu1 %v2287_v18  ;;  %v2451_v18 = vld [vmem:[%s8431_s3 + $0x8b8] sm:$0xff] }
 0x2c5   :  { %2913 = vmatpush2.msra.mxu1 %v2286_v23  ;;  %v2450_v23 = vld [vmem:[%s8431_s3 + $0x8b0] sm:$0xff] }
 0x2c6   :  { %2914 = vmatprep.subr.mxu1 %v2283_v53  ;;  %v2447_v53 = vld [vmem:[%s8431_s3 + $0x898] sm:$0xff] }
 0x2c7   :  { %2915 = vmatpush2.msra.mxu1 %v2282_v0  ;;  %v2446_v0 = vld [vmem:[%s8431_s3 + $0x890] sm:$0xff] }
 0x2c8   :  { %2916 = vmatprep.subr.mxu1 %v2279_v52  ;;  %v2443_v52 = vld [vmem:[%s8431_s3 + $0x878] sm:$0xff] }
 0x2c9   :  { %2917 = vmatpush2.msra.mxu1 %v2278_v26  ;;  %v2442_v26 = vld [vmem:[%s8431_s3 + $0x870] sm:$0xff] }
 0x2ca   :  { %2918 = vmatprep.subr.mxu1 %v2275_v30  ;;  %v2439_v30 = vld [vmem:[%s8431_s3 + $0x858] sm:$0xff] }
 0x2cb   :  { %2919 = vmatpush2.msra.mxu1 %v2274_v32  ;;  %v2438_v32 = vld [vmem:[%s8431_s3 + $0x850] sm:$0xff] }
 0x2cc   :  { %2920 = vmatprep.subr.mxu1 %v2271_v33  ;;  %v2435_v33 = vld [vmem:[%s8431_s3 + $0x838] sm:$0xff] }
 0x2cd   :  { %2921 = vmatpush2.msra.mxu1 %v2270_v35  ;;  %v2434_v35 = vld [vmem:[%s8431_s3 + $0x830] sm:$0xff] }
 0x2ce   :  { %2922 = vmatprep.subr.mxu1 %v2267_v55  ;;  %v2431_v55 = vld [vmem:[%s8431_s3 + $0x818] sm:$0xff] }
 0x2cf   :  { %2923 = vmatpush2.msra.mxu1 %v2266_v8  ;;  %v2430_v8 = vld [vmem:[%s8431_s3 + $0x810] sm:$0xff] }
 0x2d0   :  { %2924 = vmatprep.subr.mxu1 %v2263_v5  ;;  %v2555_v5 = vld [vmem:[%s8431_s3 + $0xbf8] sm:$0xff] }
 0x2d1   :  { %2925 = vmatpush2.msra.mxu1 %v2262_v20  ;;  %v2554_v20 = vld [vmem:[%s8431_s3 + $0xbf0] sm:$0xff] }
 0x2d2   :  { %2926 = vmatprep.subr.mxu1 %v2259_v36  ;;  %v2551_v36 = vld [vmem:[%s8431_s3 + $0xbd8] sm:$0xff] }
 0x2d3   :  { %2927 = vmatpush2.msra.mxu1 %v2258_v38  ;;  %v2550_v38 = vld [vmem:[%s8431_s3 + $0xbd0] sm:$0xff] }
 0x2d4   :  { %2928 = vmatprep.subr.mxu1 %v2255_v3  ;;  %v2547_v3 = vld [vmem:[%s8431_s3 + $0xbb8] sm:$0xff] }
 0x2d5   :  { %2929 = vmatpush2.msra.mxu1 %v2254_v34  ;;  %v2546_v34 = vld [vmem:[%s8431_s3 + $0xbb0] sm:$0xff] }
 0x2d6   :  { %2930 = vmatprep.subr.mxu1 %v2251_v39  ;;  %v2543_v39 = vld [vmem:[%s8431_s3 + $0xb98] sm:$0xff] }
 0x2d7   :  { %2931 = vmatpush2.msra.mxu1 %v2250_v42  ;;  %v2542_v42 = vld [vmem:[%s8431_s3 + $0xb90] sm:$0xff] }
 0x2d8   :  { %2932 = vmatprep.subr.mxu1 %v2247_v44  ;;  %v2539_v44 = vld [vmem:[%s8431_s3 + $0xb78] sm:$0xff] }
 0x2d9   :  { %2933 = vmatpush2.msra.mxu1 %v2246_v13  ;;  %v2538_v13 = vld [vmem:[%s8431_s3 + $0xb70] sm:$0xff] }
 0x2da   :  { %2934 = vmatprep.subr.mxu1 %v2243_v46  ;;  %v2535_v46 = vld [vmem:[%s8431_s3 + $0xb58] sm:$0xff] }
 0x2db   :  { %2935 = vmatpush2.msra.mxu1 %v2242_v47  ;;  %v2534_v47 = vld [vmem:[%s8431_s3 + $0xb50] sm:$0xff] }
 0x2dc   :  { %2936 = vmatprep.subr.mxu1 %v2239_v51  ;;  %v2527_v51 = vld [vmem:[%s8431_s3 + $0xb18] sm:$0xff] }
 0x2dd   :  { %2937 = vmatpush2.msra.mxu1 %v2238_v54  ;;  %v2526_v54 = vld [vmem:[%s8431_s3 + $0xb10] sm:$0xff] }
 0x2de   :  { %2939 = vmatmul.mubr.f32.vlgmr.msra.gmra.mxu1 %v2165_v11  ;;  %3016 = vmatprep.subr.mxu1 %v2491_v56  ;;  %v3165_v11 = vld [vmem:[%s8433_s5 + $0x18] sm:$0xff] }
 0x2df   :  { %3017 = vmatpush1.msra.mxu1 %v2490_v57  ;;  %3080 = vmatprep.mubr.f32.mxu1 %v2170_v27  ;;  %v3180_v27 = vld [vmem:[%s8433_s5 + $0x90] sm:$0xff]  ;;  %v2523_v56 = vld [vmem:[%s8431_s3 + $0xaf8] sm:$0xff] }
 0x2e0   :  { %3018 = vmatprep.subr.mxu1 %v2487_v58  ;;  %3870 = vmatpush3.msra.mxu0 %v3165_v11  ;;  %v2522_v57 = vld [vmem:[%s8431_s3 + $0xaf0] sm:$0xff]  ;;  %v2519_v58 = vld [vmem:[%s8431_s3 + $0xad8] sm:$0xff] }
 0x2e1   :  { %3019 = vmatpush1.msra.mxu1 %v2486_v60  ;;  %3871 = vmatprep.subr.mxu0 %v3180_v27  ;;  %v2518_v60 = vld [vmem:[%s8431_s3 + $0xad0] sm:$0xff] }
 0x2e2   :  { %3020 = vmatprep.subr.mxu1 %v2483_v61  ;;  %3872 = vmatpush3.msra.mxu0 %v3164_v28  ;;  %v2515_v61 = vld [vmem:[%s8431_s3 + $0xab8] sm:$0xff]  ;;  %v2510_v11 = vld [vmem:[%s8431_s3 + $0xa90] sm:$0xff] }
 0x2e3   :  { %3021 = vmatpush1.msra.mxu1 %v2482_v45  ;;  %3873 = vmatprep.subr.mxu0 %v3179_v2  ;;  %v2511_v45 = vld [vmem:[%s8431_s3 + $0xa98] sm:$0xff]  ;;  %v2506_v27 = vld [vmem:[%s8431_s3 + $0xa70] sm:$0xff] }
 0x2e4   :  { %3022 = vmatprep.subr.mxu1 %v2479_v43  ;;  %3874 = vmatpush3.msra.mxu0 %v3163_v16  ;;  %v2507_v43 = vld [vmem:[%s8431_s3 + $0xa78] sm:$0xff]  ;;  %v2498_v2 = vld [vmem:[%s8431_s3 + $0xa30] sm:$0xff] }
 0x2e5   :  { %3023 = vmatpush1.msra.mxu1 %v2478_v6  ;;  %3875 = vmatprep.subr.mxu0 %v3178_v21  ;;  %v2503_v6 = vld [vmem:[%s8431_s3 + $0xa58] sm:$0xff]  ;;  %v2494_v21 = vld [vmem:[%s8431_s3 + $0xa10] sm:$0xff] }
 0x2e6   :  { %3024 = vmatprep.subr.mxu1 %v2475_v1  ;;  %3876 = vmatpush3.msra.mxu0 %v3162_v4  ;;  %v2502_v1 = vld [vmem:[%s8431_s3 + $0xa50] sm:$0xff]  ;;  %v2499_v28 = vld [vmem:[%s8431_s3 + $0xa38] sm:$0xff] }
 0x2e7   :  { %3025 = vmatpush1.msra.mxu1 %v2474_v24  ;;  %3903 = vmatprep.subr.mxu0 %v4011_v63  ;;  %v2495_v16 = vld [vmem:[%s8431_s3 + $0xa18] sm:$0xff]  ;;  %v3208_v4 = vld [vmem:[%s8433_s5 + $0x170] sm:$0xff] }
 0x2e8   :  { %3026 = vmatprep.subr.mxu1 %v2471_v7  ;;  %v3209_v24 = vld [vmem:[%s8433_s5 + $0x178] sm:$0xff]  ;;  %v3207_v7 = vld [vmem:[%s8433_s5 + $0x168] sm:$0xff] }
 0x2e9   :  { %3027 = vmatpush1.msra.mxu1 %v2470_v9  ;;  %v3204_v9 = vld [vmem:[%s8433_s5 + $0x150] sm:$0xff] }
 0x2ea   :  { %3028 = vmatprep.subr.mxu1 %v2467_v10  ;;  %v3203_v10 = vld [vmem:[%s8433_s5 + $0x148] sm:$0xff] }
 0x2eb   :  { %3029 = vmatpush1.msra.mxu1 %v2466_v12  ;;  %v3202_v12 = vld [vmem:[%s8433_s5 + $0x140] sm:$0xff] }
 0x2ec   :  { %3030 = vmatprep.subr.mxu1 %v2463_v31  ;;  %v3201_v31 = vld [vmem:[%s8433_s5 + $0x138] sm:$0xff] }
 0x2ed   :  { %3031 = vmatpush1.msra.mxu1 %v2462_v37  ;;  %v3200_v37 = vld [vmem:[%s8433_s5 + $0x130] sm:$0xff] }
 0x2ee   :  { %3032 = vmatprep.subr.mxu1 %v2459_v14  ;;  %v3199_v14 = vld [vmem:[%s8433_s5 + $0x128] sm:$0xff] }
 0x2ef   :  { %3033 = vmatpush1.msra.mxu1 %v2458_v15  ;;  %v3198_v15 = vld [vmem:[%s8433_s5 + $0x120] sm:$0xff] }
 0x2f0   :  { %3034 = vmatprep.subr.mxu1 %v2455_v17  ;;  %v3197_v17 = vld [vmem:[%s8433_s5 + $0x118] sm:$0xff] }
 0x2f1   :  { %3035 = vmatpush1.msra.mxu1 %v2454_v62  ;;  %v2564_v62 = vld [vmem:[%s8432_s4] sm:$0xf] }
 0x2f2   :  { %3036 = vmatprep.subr.mxu1 %v2451_v18  ;;  %v2656_v18 = vpop.f32.mrf.mxu0 }
 0x2f3   :  { %3037 = vmatpush1.msra.mxu1 %v2450_v23  ;;  %v2569_v23 = vrot.slane %v2564_v62, %v956_v48 }
 0x2f4   :  { %3038 = vmatprep.subr.mxu1 %v2447_v53  ;;  %v2573_v53 = vrot.slane %v2564_v62, %v960_v59 }
 0x2f5   :  { %3039 = vmatpush1.msra.mxu1 %v2446_v0  ;;  %v2658_v0 = vpop.f32.mrf.mxu0 }
 0x2f6   :  { %3040 = vmatprep.subr.mxu1 %v2443_v52  ;;  %v2657_v52 = vadd.f32 %v2656_v18, %v2569_v23  ;;  %v3487_v18 = vld [vmem:[%s8439_s11 + $0x38] sm:$0xff]  ;;  %v3486_v23 = vld [vmem:[%s8439_s11 + $0x30] sm:$0xff] }
 0x2f7   :  { %3041 = vmatpush1.msra.mxu1 %v2442_v26  ;;  %v2727_v26 = vpop.f32.mrf.mxu1 }
 0x2f8   :  { %3042 = vmatprep.subr.mxu1 %v2439_v30 }
 0x2f9   :  { %3043 = vmatpush1.msra.mxu1 %v2438_v32  ;;  %v2659_v32 = vadd.f32 %v2658_v0, %v2573_v53  ;;  %v3485_v53 = vld [vmem:[%s8439_s11 + $0x28] sm:$0xff]  ;;  %v3484_v0 = vld [vmem:[%s8439_s11 + $0x20] sm:$0xff] }
 0x2fa   :  { %3044 = vmatprep.subr.mxu1 %v2435_v33  ;;  %v2728_v33 = vadd.f32 %v2727_v26, %v2657_v52  ;;  %v3483_v52 = vld [vmem:[%s8439_s11 + $0x18] sm:$0xff] }
 0x2fb   :  { %3045 = vmatpush1.msra.mxu1 %v2434_v35  ;;  %v2729_v35 = vpop.f32.mrf.mxu1 }
 0x2fc   :  { %3046 = vmatprep.subr.mxu1 %v2431_v55 }
 0x2fd   :  { %3047 = vmatpush1.msra.mxu1 %v2430_v8  ;;  %v2730_v8 = vadd.f32 %v2729_v35, %v2659_v32  ;;  %v3697_v35 = vld [vmem:[%s8435_s7] ss:$0 sm:$0xff]  ;;  %s4013_s7 = smov [#allocation2]  }
 0x2fe   :  { %3048 = vmatprep.subr.mxu1 %v2555_v5  ;;  %s3671_s3 = sshll.u32 %s4013_s7, 4  ;;  %s3672_s3 = int_to_ptr.vmem [resolvable:$true] %s3671_s3 }
 0x2ff   :  { %3049 = vmatpush2.msra.mxu1 %v2554_v20  ;;  %p3971_p1 = scmp.lt.s32.totalorder %s3672_s3, %s3672_s3 }
 0x300   :  { %3050 = vmatprep.subr.mxu1 %v2551_v36 }
 0x301   :  { %3051 = vmatpush2.msra.mxu1 %v2550_v38  ;;  %v3196_v38 = vld [vmem:[%s8433_s5 + $0x110] sm:$0xff] }
 0x302   :  { %3052 = vmatprep.subr.mxu1 %v2547_v3 }
 0x303   :  { %3053 = vmatpush2.msra.mxu1 %v2546_v34  ;;  %v3195_v34 = vld [vmem:[%s8433_s5 + $0x108] sm:$0xff] }
 0x304   :  { %3054 = vmatprep.subr.mxu1 %v2543_v39 }
 0x305   :  { %3055 = vmatpush2.msra.mxu1 %v2542_v42  ;;  %v3194_v42 = vld [vmem:[%s8433_s5 + $0x100] sm:$0xff] }
 0x306   :  { %3056 = vmatprep.subr.mxu1 %v2539_v44 }
 0x307   :  { %3057 = vmatpush2.msra.mxu1 %v2538_v13  ;;  %v3211_v13 = vld [vmem:[%s8433_s5 + $0x188] sm:$0xff] }
 0x308   :  { %3058 = vmatprep.subr.mxu1 %v2535_v46  ;;  %v3210_v46 = vld [vmem:[%s8433_s5 + $0x180] sm:$0xff] }
 0x309   :  { %3059 = vmatpush2.msra.mxu1 %v2534_v47 }
 0x30a   :  { %3060 = vmatprep.subr.mxu1 %v2531_v49  ;;  %v2577_v49 = vrot.slane %v2564_v62, %v964_v40 }
 0x30b   :  { %3061 = vmatpush2.msra.mxu1 %v2530_v50 }
 0x30c   :  { %3062 = vmatprep.subr.mxu1 %v2527_v51  ;;  %v2581_v51 = vrot.slane %v2564_v62, %v968_v19  ;;  %v3394_v62 = vld [vmem:[%s8437_s9] sm:$0xff] }
 0x30d   :  { %3063 = vmatpush2.msra.mxu1 %v2526_v54 }
 0x30e   :  { %3064 = vmatprep.subr.mxu1 %v2523_v56 }
 0x30f   :  { %3065 = vmatpush2.msra.mxu1 %v2522_v57 }
 0x310   :  { %3066 = vmatprep.subr.mxu1 %v2519_v58 }
 0x311   :  { %3067 = vmatpush2.msra.mxu1 %v2518_v60 }
 0x312   :  { %3068 = vmatprep.subr.mxu1 %v2515_v61 }
 0x313   :  { %3069 = vmatpush2.msra.mxu1 %v2514_v25 }
 0x314   :  { %3070 = vmatprep.subr.mxu1 %v2511_v45 }
 0x315   :  { %3071 = vmatpush2.msra.mxu1 %v2510_v11 }
 0x316   :  { %3072 = vmatprep.subr.mxu1 %v2507_v43 }
 0x317   :  { %3073 = vmatpush2.msra.mxu1 %v2506_v27 }
 0x318   :  { %3074 = vmatprep.subr.mxu1 %v2503_v6  ;;  %v2798_v30 = vpop.f32.mrf.mxu0 }
 0x319   :  { %3075 = vmatpush2.msra.mxu1 %v2502_v1  ;;  %v2799_v5 = vadd.f32 %v2798_v30, %v2728_v33 }
 0x31a   :  { %3076 = vmatprep.subr.mxu1 %v2499_v28  ;;  %v2800_v55 = vpop.f32.mrf.mxu0 }
 0x31b   :  { %3077 = vmatpush2.msra.mxu1 %v2498_v2  ;;  %v2801_v36 = vadd.f32 %v2800_v55, %v2730_v8  ;;  %v3698_v8 = vld [vmem:[%s8436_s8] ss:$0 sm:$0xff] }
 0x31c   :  { %3078 = vmatprep.subr.mxu1 %v2495_v16 }
 0x31d   :  { %3079 = vmatpush2.msra.mxu1 %v2494_v21  ;;  %v3695_v21 = vld [vmem:[%s8434_s6] ss:$0 sm:$0xff] }
 0x31e   :  { %3081 = vmatmul.mubr.f32.vlgmr.msra.gmra.mxu1 %v2169_v29  ;;  %3292 = vmatprep.subr.mxu1 %v4011_v63  ;;  %v3205_v29 = vld [vmem:[%s8433_s5 + $0x158] sm:$0xff] }
 0x31f   :  { %3293 = vmatpush1.msra.mxu1 %v3209_v24 }
 0x320   :  { %3294 = vmatprep.subr.mxu1 %v4011_v63 }
 0x321   :  { %3295 = vmatpush1.msra.mxu1 %v3208_v4 }
 0x322   :  { %3296 = vmatprep.subr.mxu1 %v4011_v63 }
 0x323   :  { %3297 = vmatpush1.msra.mxu1 %v3207_v7 }
 0x324   :  { %3298 = vmatprep.subr.mxu1 %v4011_v63 }
 0x325   :  { %3299 = vmatpush1.msra.mxu1 %v3206_v22 }
 0x326   :  { %3300 = vmatprep.subr.mxu1 %v4011_v63 }
 0x327   :  { %3301 = vmatpush1.msra.mxu1 %v3205_v29 }
 0x328   :  { %3302 = vmatprep.subr.mxu1 %v4011_v63 }
 0x329   :  { %3303 = vmatpush1.msra.mxu1 %v3204_v9 }
 0x32a   :  { %3304 = vmatprep.subr.mxu1 %v4011_v63 }
 0x32b   :  { %3305 = vmatpush1.msra.mxu1 %v3203_v10 }
 0x32c   :  { %3306 = vmatprep.subr.mxu1 %v4011_v63 }
 0x32d   :  { %3307 = vmatpush1.msra.mxu1 %v3202_v12 }
 0x32e   :  { %3308 = vmatprep.subr.mxu1 %v4011_v63 }
 0x32f   :  { %3309 = vmatpush1.msra.mxu1 %v3201_v31 }
 0x330   :  { %3310 = vmatprep.subr.mxu1 %v4011_v63 }
 0x331   :  { %3311 = vmatpush1.msra.mxu1 %v3200_v37 }
 0x332   :  { %3312 = vmatprep.subr.mxu1 %v4011_v63 }
 0x333   :  { %3313 = vmatpush1.msra.mxu1 %v3199_v14  ;;  %v3397_v14 = vld [vmem:[%s8437_s9 + $0x18] sm:$0xff] }
 0x334   :  { %3314 = vmatprep.subr.mxu1 %v4011_v63 }
 0x335   :  { %3315 = vmatpush1.msra.mxu1 %v3198_v15  ;;  %v3396_v15 = vld [vmem:[%s8437_s9 + $0x10] sm:$0xff] }
 0x336   :  { %3316 = vmatprep.subr.mxu1 %v4011_v63 }
 0x337   :  { %3317 = vmatpush1.msra.mxu1 %v3197_v17  ;;  %v3395_v17 = vld [vmem:[%s8437_s9 + $0x8] sm:$0xff] }
 0x338   :  { %3318 = vmatprep.subr.mxu1 %v4011_v63 }
 0x339   :  { %3319 = vmatpush1.msra.mxu1 %v3196_v38  ;;  %v3482_v38 = vld [vmem:[%s8439_s11 + $0x10] sm:$0xff] }
 0x33a   :  { %3320 = vmatprep.subr.mxu1 %v4011_v63 }
 0x33b   :  { %3321 = vmatpush1.msra.mxu1 %v3195_v34  ;;  %v3576_v34 = vld [vmem:[%s8441_s13 + $0x30] sm:$0xff] }
 0x33c   :  { %3322 = vmatprep.subr.mxu1 %v4011_v63 }
 0x33d   :  { %3323 = vmatpush1.msra.mxu1 %v3194_v42  ;;  %v3574_v42 = vld [vmem:[%s8441_s13 + $0x20] sm:$0xff] }
 0x33e   :  { %3352 = vmatprep.subr.mxu1 %v4011_v63 }
 0x33f   :  { %3353 = vmatpush2.msra.mxu1 %v3211_v13  ;;  %v3699_v13 = vld [vmem:[%s8438_s10] ss:$0 sm:$0xff] }
 0x340   :  { %3354 = vmatprep.subr.mxu1 %v4011_v63 }
 0x341   :  { %3355 = vmatpush2.msra.mxu1 %v3210_v46 }
 0x342   :  { %3914 = vmatprep.subr.mxu1 %v4011_v63 }
 0x358   :  { %v3011_v50 = vpop.f32.mrf.mxu0 }
 0x35a   :  { %v3013_v57 = vpop.f32.mrf.mxu0 }
 0x35e   :  { %v2869_v20 = vpop.f32.mrf.mxu1  ;;  %v3153_v61 = vpop.f32.mrf.mxu0 }
 0x35f   :  { %v2870_v48 = vadd.f32 %v2869_v20, %v2799_v5 }
 0x360   :  { %v2871_v3 = vpop.f32.mrf.mxu1  ;;  %v3155_v6 = vpop.f32.mrf.mxu0 }
 0x361   :  { %v2872_v59 = vadd.f32 %v2871_v3, %v2801_v36  ;;  %v3158_v44 = vmax.f32 %v2870_v48, 0.0  ;;  %v3481_v48 = vld [vmem:[%s8439_s11 + $0x8] sm:$0xff]  ;;  %v3480_v3 = vld [vmem:[%s8439_s11] sm:$0xff] }
 0x363   :  { %v3159_v39 = vmax.f32 %v2872_v59, 0.0  ;;  %v3577_v59 = vld [vmem:[%s8441_s13 + $0x38] sm:$0xff] }
 0x365   :  { %3286 = vmatprep.mubr.f32.mxu0 %v3159_v39  ;;  %v3575_v39 = vld [vmem:[%s8441_s13 + $0x28] sm:$0xff] }
 0x366   :  { %3287 = vmatmul.mubr.f32.vlgmr.msra.gmra.mxu0 %v3158_v44  ;;  %v3573_v44 = vld [vmem:[%s8441_s13 + $0x18] sm:$0xff] }
 0x367   :  { %3904 = vmatpush3.msra.mxu0 %v3397_v14  ;;  %3911 = vmatprep.mubr.msk.f32.mxu0 %vm4012_vm2, %v4011_v63 }
 0x368   :  { %3905 = vmatprep.subr.mxu0 %v4011_v63 }
 0x369   :  { %3906 = vmatpush3.msra.mxu0 %v3396_v15 }
 0x36a   :  { %3907 = vmatprep.subr.mxu0 %v4011_v63 }
 0x36b   :  { %3908 = vmatpush3.msra.mxu0 %v3395_v17 }
 0x36c   :  { %3909 = vmatprep.subr.mxu0 %v4011_v63 }
 0x36d   :  { %3910 = vmatpush3.msra.mxu0 %v3394_v62 }
 0x36e   :  { %3933 = vmatprep.subr.mxu0 %v4011_v63 }
 0x39e   :  { %v2940_v47 = vpop.f32.mrf.mxu1 }
 0x39f   :  { %v2941_v56 = vadd.f32 %v2940_v47, %v2577_v49 }
 0x3a0   :  { %v2942_v54 = vpop.f32.mrf.mxu1 }
 0x3a1   :  { %v2943_v58 = vadd.f32 %v2942_v54, %v2581_v51  ;;  %v3012_v60 = vadd.f32 %v3011_v50, %v2941_v56  ;;  %v3572_v51 = vld [vmem:[%s8441_s13 + $0x10] sm:$0xff]  ;;  %v3571_v54 = vld [vmem:[%s8441_s13 + $0x8] sm:$0xff]  ;;  %v3570_v56 = vld [vmem:[%s8441_s13] sm:$0xff]  ;;  %s4014_s13 = smov 122  }
 0x3a3   :  { %v3014_v11 = vadd.f32 %v3013_v57, %v2943_v58  ;;  %v3701_v57 = vld [vmem:[%s8440_s12] ss:$0 sm:$0xff]  ;;  %s3966_s12 = scalar_lea.vmem %s3672_s3, 32 }
 0x3a4   :  { %p3967_p0 = scmp.ne.s32.totalorder %s3672_s3, %s3966_s12  ;;  %p3972_p2 = scmp.lt.s32.totalorder %s3966_s12, %s3966_s12 }
 0x3a6   :  { %p3973_p3 = por %p3972_p2, %p3971_p1 }
 0x3a8   :  { %p3974_p4 = pnand %p3973_p3, %p3967_p0 }
 0x3de   :  { %v3082_v25 = vpop.f32.mrf.mxu1 }
 0x3df   :  { %v3083_v45 = vadd.f32 %v3082_v25, %v3012_v60 }
 0x3e0   :  { %v3084_v43 = vpop.f32.mrf.mxu1 }
 0x3e1   :  { %v3085_v27 = vadd.f32 %v3084_v43, %v3014_v11  ;;  %v3154_v1 = vadd.f32 %v3153_v61, %v3083_v45  ;;  %v3703_v45 = vld [vmem:[%s8442_s14] ss:$0 sm:$0xff] }
 0x3e3   :  { %v3156_v28 = vadd.f32 %v3155_v6, %v3085_v27  ;;  %v3160_v40 = vmax.f32 %v3154_v1, 0.0 }
 0x3e5   :  { %v3161_v2 = vmax.f32 %v3156_v28, 0.0 }
 0x3e7   :  { %3696 = vmatprep.mubr.msk.f32.mxu1 %vm2586_vm0, %v3161_v2 }
 0x3e8   :  { %3357 = vmatmul.mubr.f32.vlgmr.msra.gmra.mxu1 %v3160_v40 }
 0x3e9   :  { %3930 = vmatprep.mubr.msk.f32.mxu1 %vm4012_vm2, %v4011_v63  ;;  %3915 = vmatpush3.msra.mxu1 %v3487_v18 }
 0x3ea   :  { %3916 = vmatprep.subr.mxu1 %v4011_v63 }
 0x3eb   :  { %3917 = vmatpush3.msra.mxu1 %v3486_v23 }
 0x3ec   :  { %3918 = vmatprep.subr.mxu1 %v4011_v63 }
 0x3ed   :  { %3919 = vmatpush3.msra.mxu1 %v3485_v53 }
 0x3ee   :  { %3920 = vmatprep.subr.mxu1 %v4011_v63 }
 0x3ef   :  { %3921 = vmatpush3.msra.mxu1 %v3484_v0 }
 0x3f0   :  { %3922 = vmatprep.subr.mxu1 %v4011_v63 }
 0x3f1   :  { %3923 = vmatpush3.msra.mxu1 %v3483_v52 }
 0x3f2   :  { %3924 = vmatprep.subr.mxu1 %v4011_v63 }
 0x3f3   :  { %3925 = vmatpush3.msra.mxu1 %v3482_v38 }
 0x3f4   :  { %3926 = vmatprep.subr.mxu1 %v4011_v63 }
 0x3f5   :  { %3927 = vmatpush3.msra.mxu1 %v3481_v48 }
 0x3f6   :  { %3928 = vmatprep.subr.mxu1 %v4011_v63 }
 0x3f7   :  { %3929 = vmatpush3.msra.mxu1 %v3480_v3 }
 0x426   :  { %v3877_v41 = vpop.f32.mrf.mxu0 }
 0x428   :  { %v3878_v19 = vpop.f32.mrf.mxu0 }
 0x429   :  { %v3879_v16 = vadd.f32 %v3878_v19, %v3877_v41 }
 0x42b   :  { %v3289_v24 = vadd.f32 %v3879_v16, %v3695_v21 }
 0x4a8   :  { %v3358_v4 = vpop.f32.mrf.mxu1 }
 0x4a9   :  { %v3359_v7 = vadd.f32 %v3358_v4, %v3289_v24 }
 0x4aa   :  { %v3360_v22 = vpop.f32.mrf.mxu1 }
 0x4ab   :  { %v3363_v29 = vsel %vm3362_vm1, %v3359_v7, 0.0 }
 0x4ac   :  { %3364 = vadd.xlane.f32.xlu0 %v3363_v29 }
 0x535   :  { %v3365_v9 = vpop.xlane.xlu0 %3364 }
 0x536   :  { %v3367_v10 = vmul.f32 0.03125, %v3365_v9 }
 0x538   :  { %v3368_v12 = vsub.f32 %v3359_v7, %v3367_v10 }
 0x53a   :  { %v3369_v31 = vmul.f32 %v3368_v12, %v3368_v12 }
 0x53c   :  { %v3370_v37 = vsel %vm3362_vm1, %v3369_v31, 0.0 }
 0x53d   :  { %3371 = vadd.xlane.f32.xlu0 %v3370_v37 }
 0x5c6   :  { %v3372_v26 = vpop.xlane.xlu0 %3371 }
 0x5c7   :  { %v3373_v30 = vmul.f32 0.03125, %v3372_v26 }
 0x5c9   :  { %v3374_v32 = vadd.f32 1e-05, %v3373_v30 }
 0x5cb   :  { %3960 = vrsqrt.f32 %v3374_v32 }
 0x5d8   :  { %v3961_v33 = vpop.eup %3960 }
 0x5d9   :  { %v3376_v55 = vmul.f32 %v3961_v33, %v3368_v12 }
 0x5db   :  { %v3384_v5 = vmul.f32 %v3697_v35, %v3376_v55 }
 0x5dd   :  { %v3392_v20 = vadd.f32 %v3698_v8, %v3384_v5 }
 0x5df   :  { %3962 = vtanh.f32 %v3392_v20 }
 0x5ec   :  { %v3963_v36 = vpop.eup %3962 }
 0x5ed   :  { %3912 = vmatmul.mubr.msk.f32.vlgmr.msra.gmra.mxu0 %vm3405_vm3, %v3963_v36 }
 0x5ee   :  { %3949 = vmatprep.mubr.msk.f32.mxu0 %vm4012_vm2, %v4011_v63  ;;  %3934 = vmatpush3.msra.mxu0 %v3577_v59 }
 0x5ef   :  { %3935 = vmatprep.subr.mxu0 %v4011_v63 }
 0x5f0   :  { %3936 = vmatpush3.msra.mxu0 %v3576_v34 }
 0x5f1   :  { %3937 = vmatprep.subr.mxu0 %v4011_v63 }
 0x5f2   :  { %3938 = vmatpush3.msra.mxu0 %v3575_v39 }
 0x5f3   :  { %3939 = vmatprep.subr.mxu0 %v4011_v63 }
 0x5f4   :  { %3940 = vmatpush3.msra.mxu0 %v3574_v42 }
 0x5f5   :  { %3941 = vmatprep.subr.mxu0 %v4011_v63 }
 0x5f6   :  { %3942 = vmatpush3.msra.mxu0 %v3573_v44 }
 0x5f7   :  { %3943 = vmatprep.subr.mxu0 %v4011_v63 }
 0x5f8   :  { %3944 = vmatpush3.msra.mxu0 %v3572_v51 }
 0x5f9   :  { %3945 = vmatprep.subr.mxu0 %v4011_v63 }
 0x5fa   :  { %3946 = vmatpush3.msra.mxu0 %v3571_v54 }
 0x5fb   :  { %3947 = vmatprep.subr.mxu0 %v4011_v63 }
 0x5fc   :  { %3948 = vmatpush3.msra.mxu0 %v3570_v56 }
 0x6ad   :  { %v3475_v46 = vpop.f32.mrf.mxu0 }
 0x6ae   :  { %v3476_v47 = vadd.f32 %v3699_v13, %v3475_v46 }
 0x6af   :  { %v3913_v49 = vpop.f32.mrf.mxu0 }
 0x6b0   :  { %v3479_v50 = vmax.f32 %v3476_v47, 0.0 }
 0x6b2   :  { %3931 = vmatmul.mubr.msk.f32.vlgmr.msra.gmra.mxu1 %vm3495_vm4, %v3479_v50 }
 0x772   :  { %v3565_v58 = vpop.f32.mrf.mxu1 }
 0x773   :  { %v3566_v60 = vadd.f32 %v3701_v57, %v3565_v58 }
 0x774   :  { %v3932_v61 = vpop.f32.mrf.mxu1 }
 0x775   :  { %v3569_v25 = vmax.f32 %v3566_v60, 0.0 }
 0x777   :  { %3950 = vmatmul.mubr.msk.f32.vlgmr.msra.gmra.mxu0 %vm3495_vm4, %v3569_v25 }
 0x837   :  { %v3654_v11 = vpop.f32.mrf.mxu0 }
 0x838   :  { %v3655_v63 = vadd.f32 %v3703_v45, %v3654_v11 }
 0x839   :  { %v3951_v43 = vpop.f32.mrf.mxu0 }
 0x83a   :  { %3661 = vrot.lane.b32.xlu1 %v3655_v63, %s4014_s13  ;;  %3659 = vst.msk [vmem:[#allocation2] sm:$0x3] %vm3658_vm5, %v3655_v63 }
 0x83b   :  { %3977 = shalt.err (!%p3974_p4)
}
 0x83c   :  { %3674 = dma.vmem_to_hbm [thread:$0]  %s3672_s3, 32, %s8443_s15, [#allocation3]  }
 0x83d   :  { %s4015_s27 = smov [#allocation4]  }
 0x83e   :  { %s3681_s6 = sshll.u32 %s4015_s27, 4  ;;  %s3682_s6 = int_to_ptr.vmem [resolvable:$true] %s3681_s6 }
 0x83f   :  { %s3986_s28 = scalar_lea.vmem %s3682_s6, 32  ;;  %p3991_p6 = scmp.lt.s32.totalorder %s3682_s6, %s3682_s6 }
 0x840   :  { %p3987_p5 = scmp.ne.s32.totalorder %s3682_s6, %s3986_s28  ;;  %p3992_p7 = scmp.lt.s32.totalorder %s3986_s28, %s3986_s28 }
 0x842   :  { %p3993_p8 = por %p3992_p7, %p3991_p6 }
 0x844   :  { %p3994_p9 = pnand %p3993_p8, %p3987_p5 }
 0x8ac   :  { %v3662_v27 = vpop.permute.xlu1 %3661 }
 0x8ad   :  { %3664 = vst.msk [vmem:[#allocation4] sm:$0x3] %vm3658_vm5, %v3662_v27 }
 0x8ae   :  { %3997 = shalt.err (!%p3994_p9)
}
 0x8af   :  { %3684 = dma.vmem_to_hbm [thread:$0]  %s3682_s6, 32, %s8444_s16, [#allocation5]  }
 0x8b0   :  { %4006 = dma.done.wait [#allocation3], 32  }
 0x8b1   :  { %4007 = vsyncadd [#allocation3], 4294967264 }
 0x8b2   :  { %4008 = dma.done.wait [#allocation5], 32  }
 0x8b3   :  { %4009 = vsyncadd [#allocation5], 4294967264 }
 0x8b4   :  { %3691 = vsyncpa [#allocation3], 1 }
 0x8b5   :  { %3692 = vsyncpa [#allocation5], 1 }

</bundles_post_ra>
